<compile_context>
chip_gen: v6e
topology: v6e:2x2x1
jax: 0.10.0
libtpu: 0.0.40
codegen_flags: <defaults>
</compile_context>

<pallas_src>
import functools

import jax
import jax.numpy as jnp
from jax.experimental import pallas as pl
from jax.experimental.pallas import tpu as pltpu


# ----------------------------------------------------------------------------
# Helpers / generation-gated tiling config
# ----------------------------------------------------------------------------
def _round_up(x, m):
    return ((x + m - 1) // m) * m


def _tpu_config():
    """Tile caps + scoped-VMEM limit gated on the chip's physical VMEM size."""
    cap = 64 * 1024 * 1024
    try:
        info = pltpu.get_tpu_info()
        cap = int(getattr(info, "vmem_capacity_bytes", cap))
    except Exception:  # pragma: no cover - conservative fallback (v7x-safe)
        pass
    if cap >= 128 * 1024 * 1024:
        # v5e / v6e: 128 MiB VMEM -> big tiles, generous scoped limit.
        return 256, 512, 1024, 96 * 1024 * 1024
    # v7x: 64 MiB VMEM -> keep tiles modest and limit ~30 MiB.
    return 256, 256, 512, 30 * 1024 * 1024


_TM_MAX, _TN_MAX, _TK_MAX, _VMEM_LIMIT = _tpu_config()


def _pick_tile(dim, cap):
    """Tile = full dim when it fits (no padding ever needed); else the MXU-shaped cap."""
    if dim <= cap:
        return dim, dim
    return cap, _round_up(dim, cap)


# ----------------------------------------------------------------------------
# Pallas kernel: tiled matmul (bf16 operands, f32 accumulate) + fused epilogue
# ----------------------------------------------------------------------------
def _matmul_kernel(a_ref, b_ref, bias_ref, o_ref, acc_ref, *, activation):
    @pl.when(pl.program_id(2) == 0)
    def _():
        acc_ref[...] = jnp.zeros_like(acc_ref)

    # bf16 x bf16 -> f32 on the MXU.
    acc_ref[...] += jnp.dot(a_ref[...], b_ref[...],
                            preferred_element_type=jnp.float32)

    @pl.when(pl.program_id(2) == pl.num_programs(2) - 1)
    def _():
        y = acc_ref[...] + bias_ref[...]
        if activation == 'relu':
            y = jnp.maximum(y, 0.0)
        o_ref[...] = y.astype(o_ref.dtype)


def pallas_matmul(a, b, bias=None, activation=None, out_dtype=jnp.bfloat16):
    """a: (M, K) @ b: (K, N) [+ bias (N,)] [relu]; bf16 MXU operands, f32 acc."""
    M, K = a.shape
    K2, N = b.shape
    assert K == K2

    if M < 8:
        # Tiny-row path (e.g. B*num_slots rows): launch-overhead-bound in Pallas,
        # leave it to XLA.
        y = jnp.dot(a.astype(jnp.float32), b.astype(jnp.float32),
                    preferred_element_type=jnp.float32)
        if bias is not None:
            y = y + bias.astype(jnp.float32)
        if activation == 'relu':
            y = jnp.maximum(y, 0.0)
        return y.astype(out_dtype)

    tm, Mp = _pick_tile(M, _TM_MAX)
    tn, Np = _pick_tile(N, _TN_MAX)
    tk, Kp = _pick_tile(K, _TK_MAX)

    a_bf = a.astype(jnp.bfloat16)
    b_bf = b.astype(jnp.bfloat16)
    # Padding fallback only for oversized non-tile-multiple dims; never taken for
    # the shapes this model produces (tiles equal the full dim when it fits).
    if (Mp, Kp) != (M, K):
        a_bf = jnp.pad(a_bf, ((0, Mp - M), (0, Kp - K)))
    if (Kp, Np) != (K, N):
        b_bf = jnp.pad(b_bf, ((0, Kp - K), (0, Np - N)))
    if bias is None:
        bias_p = jnp.zeros((1, Np), jnp.float32)
    else:
        bias_p = bias.astype(jnp.float32).reshape(1, N)
        if Np != N:
            bias_p = jnp.pad(bias_p, ((0, 0), (0, Np - N)))

    out = pl.pallas_call(
        functools.partial(_matmul_kernel, activation=activation),
        out_shape=jax.ShapeDtypeStruct((Mp, Np), out_dtype),
        grid=(Mp // tm, Np // tn, Kp // tk),
        in_specs=[pl.BlockSpec((tm, tk), lambda i, j, k: (i, k)),
                  pl.BlockSpec((tk, tn), lambda i, j, k: (k, j)),
                  pl.BlockSpec((1, tn), lambda i, j, k: (0, j))],
        out_specs=pl.BlockSpec((tm, tn), lambda i, j, k: (i, j)),
        scratch_shapes=[pltpu.VMEM((tm, tn), jnp.float32)],
        compiler_params=pltpu.CompilerParams(
            dimension_semantics=("parallel", "parallel", "arbitrary"),
            vmem_limit_bytes=_VMEM_LIMIT),
    )(a_bf, b_bf, bias_p)
    if (Mp, Np) != (M, N):
        out = out[:M, :N]
    return out


# ----------------------------------------------------------------------------
# Pallas kernel: row-tiled LayerNorm (f32 math, bf16 in/out)
# ----------------------------------------------------------------------------
def _layernorm_kernel(x_ref, g_ref, b_ref, o_ref):
    x = x_ref[...].astype(jnp.float32)
    mu = jnp.mean(x, axis=-1, keepdims=True)
    var = jnp.mean(jnp.square(x - mu), axis=-1, keepdims=True)
    y = (x - mu) * jax.lax.rsqrt(var + 1e-5)
    o_ref[...] = (y * g_ref[...] + b_ref[...]).astype(o_ref.dtype)


def pallas_layernorm2d(x2d, gamma, beta, out_dtype=jnp.bfloat16):
    R, D = x2d.shape
    if R < 8:
        # Tiny-row path (slot-attention inner loop): leave it to XLA.
        x = x2d.astype(jnp.float32)
        mu = jnp.mean(x, -1, keepdims=True)
        var = jnp.mean(jnp.square(x - mu), -1, keepdims=True)
        y = (x - mu) * jax.lax.rsqrt(var + 1e-5)
        return (y * gamma + beta).astype(out_dtype)

    tr, Rp = _pick_tile(R, 256)
    xp = jnp.pad(x2d, ((0, Rp - R), (0, 0))) if Rp != R else x2d
    out = pl.pallas_call(
        _layernorm_kernel,
        out_shape=jax.ShapeDtypeStruct((Rp, D), out_dtype),
        grid=(Rp // tr,),
        in_specs=[pl.BlockSpec((tr, D), lambda i: (i, 0)),
                  pl.BlockSpec((1, D), lambda i: (0, 0)),
                  pl.BlockSpec((1, D), lambda i: (0, 0))],
        out_specs=pl.BlockSpec((tr, D), lambda i: (i, 0)),
        compiler_params=pltpu.CompilerParams(
            dimension_semantics=("parallel",), vmem_limit_bytes=_VMEM_LIMIT),
    )(xp, gamma.reshape(1, D), beta.reshape(1, D))
    return out[:R] if Rp != R else out


# ----------------------------------------------------------------------------
# Pallas kernel: fused multi-head attention, one head per grid step
# ----------------------------------------------------------------------------
def _mha_kernel(q_ref, k_ref, v_ref, o_ref, *, causal, scale):
    q = q_ref[0, 0]                                  # (T, dh)  bf16
    k = k_ref[0, 0]                                  # (S, dh)  bf16
    v = v_ref[0, 0]                                  # (S, dh)  bf16
    s = jax.lax.dot_general(q, k, (((1,), (1,)), ((), ())),
                            preferred_element_type=jnp.float32) * scale   # (T, S) f32
    if causal:
        T, S = s.shape
        row = jax.lax.broadcasted_iota(jnp.int32, (T, S), 0)
        col = jax.lax.broadcasted_iota(jnp.int32, (T, S), 1)
        s = jnp.where(col > row, -1e30, s)
    m = jnp.max(s, axis=-1, keepdims=True)
    p = jnp.exp(s - m)
    p = p / jnp.sum(p, axis=-1, keepdims=True)       # exact f32 division
    o = jnp.dot(p.astype(jnp.bfloat16), v, preferred_element_type=jnp.float32)
    o_ref[0, 0] = o.astype(o_ref.dtype)


def pallas_mha(q, k, v, num_heads, causal):
    """q: (B, T, D), k/v: (B, S, D) -> (B, T, D); grid = (B, num_heads)."""
    B, T, D = q.shape
    S = k.shape[1]
    dh = D // num_heads
    qh = q.reshape(B, T, num_heads, dh).transpose(0, 2, 1, 3).astype(jnp.bfloat16)
    kh = k.reshape(B, S, num_heads, dh).transpose(0, 2, 1, 3).astype(jnp.bfloat16)
    vh = v.reshape(B, S, num_heads, dh).transpose(0, 2, 1, 3).astype(jnp.bfloat16)
    out = pl.pallas_call(
        functools.partial(_mha_kernel, causal=causal, scale=float(dh) ** -0.5),
        out_shape=jax.ShapeDtypeStruct((B, num_heads, T, dh), jnp.bfloat16),
        grid=(B, num_heads),
        in_specs=[pl.BlockSpec((1, 1, T, dh), lambda b, h: (b, h, 0, 0)),
                  pl.BlockSpec((1, 1, S, dh), lambda b, h: (b, h, 0, 0)),
                  pl.BlockSpec((1, 1, S, dh), lambda b, h: (b, h, 0, 0))],
        out_specs=pl.BlockSpec((1, 1, T, dh), lambda b, h: (b, h, 0, 0)),
        compiler_params=pltpu.CompilerParams(
            dimension_semantics=("parallel", "parallel"),
            vmem_limit_bytes=_VMEM_LIMIT),
    )(qh, kh, vh)
    return out.transpose(0, 2, 1, 3).reshape(B, T, D)


# ----------------------------------------------------------------------------
# Pallas kernel: fused slot-attention core (inverted attention + updates)
# ----------------------------------------------------------------------------
def _slot_attn_kernel(k_ref, v_ref, q_ref, upd_ref, vis_ref, *, num_heads, eps):
    # Joint softmax over heads*slots couples the heads, so the whole batch element
    # is processed in one step (grid=(B,)).
    N, Sd = k_ref.shape[1], k_ref.shape[2]
    K = q_ref.shape[1]
    dh = Sd // num_heads

    logits = []
    for h in range(num_heads):
        kh = k_ref[0, :, h * dh:(h + 1) * dh]                       # bf16
        qh = q_ref[0, :, h * dh:(h + 1) * dh]                       # bf16
        logits.append(jax.lax.dot_general(kh, qh, (((1,), (1,)), ((), ())),
                                          preferred_element_type=jnp.float32))
    lg = logits[0] if num_heads == 1 else jnp.concatenate(logits, axis=-1)   # (N, H*K)
    m = jnp.max(lg, axis=-1, keepdims=True)
    p = jnp.exp(lg - m)
    attn = p / jnp.sum(p, axis=-1, keepdims=True)                    # exact f32

    vis = attn[:, 0:K]
    for h in range(num_heads):
        a_h = attn[:, h * K:(h + 1) * K]                             # (N, K) f32
        if h > 0:
            vis = vis + a_h
        a_h = a_h + eps
        a_h = a_h / jnp.sum(a_h, axis=0, keepdims=True)              # exact f32 renorm
        vh = v_ref[0, :, h * dh:(h + 1) * dh].astype(jnp.float32)
        upd = jax.lax.dot_general(a_h, vh, (((0,), (0,)), ((), ())),
                                  preferred_element_type=jnp.float32)  # (K, dh)
        upd_ref[0, :, h * dh:(h + 1) * dh] = upd.astype(upd_ref.dtype)
    vis_ref[0] = vis.astype(vis_ref.dtype)


def pallas_slot_attention_core(k, v, q, num_heads, eps=1e-8):
    B, N, Sd = k.shape
    K = q.shape[1]
    kern = functools.partial(_slot_attn_kernel, num_heads=num_heads, eps=eps)
    upd, vis = pl.pallas_call(
        kern,
        out_shape=(jax.ShapeDtypeStruct((B, K, Sd), jnp.float32),
                   jax.ShapeDtypeStruct((B, N, K), jnp.float32)),
        grid=(B,),
        in_specs=[pl.BlockSpec((1, N, Sd), lambda b: (b, 0, 0)),
                  pl.BlockSpec((1, N, Sd), lambda b: (b, 0, 0)),
                  pl.BlockSpec((1, K, Sd), lambda b: (b, 0, 0))],
        out_specs=(pl.BlockSpec((1, K, Sd), lambda b: (b, 0, 0)),
                   pl.BlockSpec((1, N, K), lambda b: (b, 0, 0))),
        compiler_params=pltpu.CompilerParams(
            dimension_semantics=("parallel",), vmem_limit_bytes=_VMEM_LIMIT),
    )(k.astype(jnp.bfloat16), v.astype(jnp.bfloat16), q.astype(jnp.bfloat16))
    return upd, vis


# ----------------------------------------------------------------------------
# Building blocks (Pallas for the compute, JAX for the glue)
# ----------------------------------------------------------------------------
def linear_fwd(x, w, b=None, activation=None, out_dtype=jnp.bfloat16):
    shp = x.shape
    y = pallas_matmul(x.reshape(-1, shp[-1]), w, bias=b, activation=activation,
                      out_dtype=out_dtype)
    return y.reshape(shp[:-1] + (w.shape[1],))


def layernorm_fwd(x, ln, out_dtype=jnp.bfloat16):
    shp = x.shape
    y = pallas_layernorm2d(x.reshape(-1, shp[-1]), ln['g'], ln['b'], out_dtype=out_dtype)
    return y.reshape(shp)


def space_to_depth(x, r):
    """NHWC space-to-depth (zero-copy im2col for a kernel==stride conv)."""
    B, H, W, C = x.shape
    x = x.reshape(B, H // r, r, W // r, r, C).transpose(0, 1, 3, 5, 2, 4)
    return x.reshape(B, H // r, W // r, C * r * r)


def pixel_shuffle_nhwc(x, r):
    B, H, W, C = x.shape
    Co = C // (r * r)
    x = x.reshape(B, H, W, Co, r, r).transpose(0, 1, 4, 2, 5, 3)
    return x.reshape(B, H * r, W * r, Co)


def conv1x1_fwd(p, x, relu=False, out_dtype=jnp.bfloat16):
    """1x1 conv on NHWC via the tiled Pallas matmul (weight pre-baked as (Cin, Cout))."""
    B, H, W, Cin = x.shape
    y = pallas_matmul(x.reshape(-1, Cin), p['w'], bias=p['b'],
                      activation='relu' if relu else None, out_dtype=out_dtype)
    return y.reshape(B, H, W, p['w'].shape[1])


def conv3x3_fwd(p, x, relu=False):
    # TODO(synk): 3x3 stride-1 convs use XLA's native TPU conv (tiled/pipelined) to avoid
    # HBM-materialized im2col; all 1x1 / kernel==stride convs run through Pallas matmuls.
    y = jax.lax.conv_general_dilated(
        x.astype(jnp.bfloat16), p['w'], (1, 1), 'SAME',
        dimension_numbers=('NHWC', 'HWIO', 'NHWC'),
        preferred_element_type=jnp.float32) + p['b']
    if relu:
        y = jnp.maximum(y, 0.0)
    return y.astype(jnp.bfloat16)


def gumbel_softmax(key, logits, tau, hard, axis):
    tiny = jnp.finfo(logits.dtype).tiny
    e = jax.random.exponential(key, logits.shape, dtype=logits.dtype)
    g = -jnp.log(e + tiny)
    y = jax.nn.softmax((logits + g) / tau, axis=axis)
    if hard:
        idx = jnp.argmax(y, axis=axis)
        y = jax.nn.one_hot(idx, logits.shape[axis], axis=axis, dtype=logits.dtype)
    return y


# ----------------------------------------------------------------------------
# dVAE (NHWC internally)
# ----------------------------------------------------------------------------
def dvae_encoder_fwd(ps, x_nhwc):
    x = space_to_depth(x_nhwc, 4)                       # 4x4 stride-4 conv as matmul
    x = conv1x1_fwd(ps[0], x, relu=True)
    x = conv1x1_fwd(ps[1], x, relu=True)
    x = conv1x1_fwd(ps[2], x, relu=True)
    return conv1x1_fwd(ps[3], x, out_dtype=jnp.float32)  # -> vocab logits (f32)


def dvae_decoder_fwd(ps, z):
    x = conv1x1_fwd(ps[0], z, relu=True)
    x = conv3x3_fwd(ps[1], x, relu=True)
    x = conv1x1_fwd(ps[2], x, relu=True)
    x = pixel_shuffle_nhwc(x, 2)
    x = conv3x3_fwd(ps[3], x, relu=True)
    x = conv1x1_fwd(ps[4], x, relu=True)
    x = pixel_shuffle_nhwc(x, 2)
    return conv1x1_fwd(ps[5], x, out_dtype=jnp.float32)  # -> img channels (f32)


# ----------------------------------------------------------------------------
# Slot attention
# ----------------------------------------------------------------------------
def gru_cell_fwd(p, x, h):
    """Fused GRUCell: one (2S x 4S) matmul producing [rz | i_n | h_n] (f32 math)."""
    S = h.shape[-1]
    g = pallas_matmul(jnp.concatenate([x, h], axis=-1), p['w'], bias=p['b'],
                      out_dtype=jnp.float32)
    rz = jax.nn.sigmoid(g[:, :2 * S])
    r, z = rz[:, :S], rz[:, S:]
    n = jnp.tanh(g[:, 2 * S:3 * S] + r * g[:, 3 * S:4 * S])
    return (1.0 - z) * n + z * h


def slot_attention_fwd(p, inputs, key, num_iterations, num_slots, slot_size, num_heads):
    B, N, _ = inputs.shape

    inputs = layernorm_fwd(inputs, p['norm_inputs'])
    kv = linear_fwd(inputs, p['wkv'])                          # fused K/V projection
    k, v = kv[..., :slot_size], kv[..., slot_size:]
    k = k * (slot_size ** -0.5)

    slots = jax.random.normal(key, (B, num_slots, slot_size), dtype=jnp.float32)
    slots = p['slot_mu'] + jnp.exp(p['slot_log_sigma']) * slots

    attn_vis = None
    for _ in range(num_iterations):
        slots_prev = slots
        slots_n = layernorm_fwd(slots, p['norm_slots'])        # tiny-row XLA path
        q = linear_fwd(slots_n, p['wq'])                       # tiny-row XLA path
        updates, attn_vis = pallas_slot_attention_core(k, v, q, num_heads)

        slots = gru_cell_fwd(p['gru'],
                             updates.reshape(-1, slot_size),
                             slots_prev.reshape(-1, slot_size)).reshape(B, num_slots,
                                                                        slot_size)
        h = layernorm_fwd(slots, p['norm_mlp'])
        h = linear_fwd(h, p['mlp_w1'], p['mlp_b1'], activation='relu')
        h = linear_fwd(h, p['mlp_w2'], p['mlp_b2'])
        slots = slots + h
    return slots, attn_vis


def slot_attention_encoder_fwd(p, x, key, cfg):
    x = layernorm_fwd(x, p['ln'])
    x = linear_fwd(x, p['enc_mlp_w1'], p['enc_mlp_b1'], activation='relu')
    x = linear_fwd(x, p['enc_mlp_w2'], p['enc_mlp_b2'])
    return slot_attention_fwd(p, x, key, cfg['num_iterations'], cfg['num_slots'],
                              cfg['slot_size'], cfg['num_slot_heads'])


# ----------------------------------------------------------------------------
# Transformer decoder
# ----------------------------------------------------------------------------
def self_attention_fwd(p, x, num_heads):
    D = x.shape[-1]
    qkv = linear_fwd(x, p['wqkv'])                             # fused QKV projection
    q, k, v = qkv[..., :D], qkv[..., D:2 * D], qkv[..., 2 * D:]
    out = pallas_mha(q, k, v, num_heads, causal=True)
    return linear_fwd(out, p['wo'])


def cross_attention_fwd(p, xq, xkv, num_heads):
    D = xq.shape[-1]
    q = linear_fwd(xq, p['wq'])
    kv = linear_fwd(xkv, p['wkv'])                             # fused K/V projection
    k, v = kv[..., :D], kv[..., D:]
    out = pallas_mha(q, k, v, num_heads, causal=False)
    return linear_fwd(out, p['wo'])


def tf_dec_block_fwd(p, x, enc, num_heads, is_first):
    if is_first:
        x = layernorm_fwd(x, p['ln1'])
        x = x + self_attention_fwd(p['self_attn'], x, num_heads)
    else:
        h = layernorm_fwd(x, p['ln1'])
        x = x + self_attention_fwd(p['self_attn'], h, num_heads)
    h = layernorm_fwd(x, p['ln2'])
    x = x + cross_attention_fwd(p['cross_attn'], h, enc, num_heads)
    h = layernorm_fwd(x, p['ln3'])
    h = linear_fwd(h, p['ffn_w1'], p['ffn_b1'], activation='relu')
    h = linear_fwd(h, p['ffn_w2'], p['ffn_b2'])
    return x + h


def tf_decoder_fwd(p, x, enc, num_heads):
    for i, blk in enumerate(p['blocks']):
        x = tf_dec_block_fwd(blk, x, enc, num_heads, is_first=(i == 0))
    return layernorm_fwd(x, p['final_ln'])


# ----------------------------------------------------------------------------
# SLATE forward
# ----------------------------------------------------------------------------
def slate_forward(params, image, tau, hard, key, cfg):
    B, C, H, W = image.shape
    k_soft, k_hard, k_slots = jax.random.split(key, 3)
    x_nhwc = jnp.transpose(image, (0, 2, 3, 1))

    # dVAE
    z_logits = jax.nn.log_softmax(dvae_encoder_fwd(params['dvae_enc'], x_nhwc), axis=-1)
    He, We = z_logits.shape[1], z_logits.shape[2]
    z = gumbel_softmax(k_soft, z_logits, tau, hard, axis=-1)
    recon = jnp.transpose(dvae_decoder_fwd(params['dvae_dec'], z), (0, 3, 1, 2))
    mse = jnp.sum((image - recon) ** 2) / B
    z_hard = gumbel_softmax(k_hard, z_logits, tau, True, axis=-1)   # detached in torch

    # transformer target / input token streams
    ztt = z_hard.reshape(B, He * We, -1)                             # (B, N, vocab)
    zin = jnp.concatenate([jnp.zeros_like(ztt[..., :1]), ztt], axis=-1)
    zin = jnp.concatenate([jnp.zeros_like(zin[:, :1, :]), zin], axis=-2)
    zin = zin.at[:, 0, 0].set(1.0)

    tokens = jnp.argmax(zin, axis=-1)                                # OneHotDictionary
    emb_input = jnp.take(params['dictionary'], tokens, axis=0)       # (B, 1+N, d_model)
    emb_input = emb_input + params['pe'][:, :emb_input.shape[1]]     # pos enc (eval)
    # TODO(synk): latent_cnn branch is train-only; skipped for eval forward.

    # slot attention
    slots, attns = slot_attention_encoder_fwd(params['slot_attn'], emb_input[:, 1:],
                                              k_slots, cfg)
    K = cfg['num_slots']
    attns = jnp.swapaxes(attns, -1, -2)                              # (B, num_slots, N)
    # repeat_interleave upsample done by broadcast (no HBM-materialized repeats)
    attns = attns.reshape(B, K, 1, He, 1, We, 1)
    attns = jnp.broadcast_to(attns, (B, K, 1, He, H // He, We, W // We))
    attns = attns.reshape(B, K, 1, H, W)
    attns = image[:, None] * attns + 1.0 - attns
    slots = linear_fwd(slots, params['slot_proj_w'])

    # autoregressive transformer decoder + cross entropy
    dec_out = tf_decoder_fwd(params['tf_dec'], emb_input[:, :-1], slots, cfg['num_heads'])
    pred = linear_fwd(dec_out, params['out_w'], out_dtype=jnp.float32)
    cross_entropy = -(ztt * jax.nn.log_softmax(pred, axis=-1)).reshape(B, -1).sum(-1).mean()

    return jnp.clip(recon, 0.0, 1.0), cross_entropy, mse, attns


# ----------------------------------------------------------------------------
# Deterministic parameter init (bf16 matmul weights, f32 biases / LN / losses)
# ----------------------------------------------------------------------------
def init_params(key, cfg):
    kit = iter(jax.random.split(key, 256))
    nrm = lambda *s: 0.02 * jax.random.normal(next(kit), s, dtype=jnp.float32)
    bfw = lambda *s: nrm(*s).astype(jnp.bfloat16)                    # bf16 weight
    zeros = lambda *s: jnp.zeros(s, jnp.float32)
    ones = lambda *s: jnp.ones(s, jnp.float32)
    ln = lambda d: {'g': ones(d), 'b': zeros(d)}
    cmat = lambda cin, cout: {'w': bfw(cin, cout), 'b': zeros(cout)}     # 1x1 / s2d conv
    c3x3 = lambda cin, cout: {'w': bfw(3, 3, cin, cout), 'b': zeros(cout)}  # HWIO

    D, V, S, C = cfg['d_model'], cfg['vocab_size'], cfg['slot_size'], cfg['img_channels']
    Hm, hid = cfg['mlp_hidden_size'], 64

    def mha_self(d):
        return {'wqkv': bfw(d, 3 * d), 'wo': bfw(d, d)}

    def mha_cross(d):
        return {'wq': bfw(d, d), 'wkv': bfw(d, 2 * d), 'wo': bfw(d, d)}

    def gru(s):
        w_ih, w_hh = nrm(s, 3 * s), nrm(s, 3 * s)
        # fused layout: [x ; h] @ W -> [r+z gates (2S) | i_n (S) | h_n (S)]
        w = jnp.concatenate([
            jnp.concatenate([w_ih[:, :2 * s], w_ih[:, 2 * s:], jnp.zeros((s, s))], axis=1),
            jnp.concatenate([w_hh[:, :2 * s], jnp.zeros((s, s)), w_hh[:, 2 * s:]], axis=1),
        ], axis=0)
        return {'w': w, 'b': zeros(4 * s)}

    def dec_block():
        return {'ln1': ln(D), 'self_attn': mha_self(D),
                'ln2': ln(D), 'cross_attn': mha_cross(D),
                'ln3': ln(D),
                'ffn_w1': bfw(D, 4 * D), 'ffn_b1': zeros(4 * D),
                'ffn_w2': bfw(4 * D, D), 'ffn_b2': zeros(D)}

    return {
        'dvae_enc': [cmat(C * 16, hid), cmat(hid, hid), cmat(hid, hid), cmat(hid, V)],
        'dvae_dec': [cmat(V, hid), c3x3(hid, hid), cmat(hid, hid * 4),
                     c3x3(hid, hid), cmat(hid, hid * 4), cmat(hid, C)],
        'dictionary': nrm(V + 1, D),
        'pe': nrm(1, 1 + cfg['num_tokens'], D),
        'slot_attn': {
            'ln': ln(D),
            'enc_mlp_w1': bfw(D, D), 'enc_mlp_b1': zeros(D),
            'enc_mlp_w2': bfw(D, D), 'enc_mlp_b2': zeros(D),
            'norm_inputs': ln(D), 'norm_slots': ln(S), 'norm_mlp': ln(S),
            'slot_mu': nrm(1, 1, S), 'slot_log_sigma': nrm(1, 1, S),
            'wq': nrm(S, S), 'wkv': bfw(D, 2 * S),
            'gru': gru(S),
            'mlp_w1': nrm(S, Hm), 'mlp_b1': zeros(Hm),
            'mlp_w2': nrm(Hm, S), 'mlp_b2': zeros(S),
        },
        'slot_proj_w': nrm(S, D),
        'tf_dec': {'blocks': [dec_block() for _ in range(cfg['num_dec_blocks'])],
                   'final_ln': ln(D)},
        'out_w': bfw(D, V),
    }


# ----------------------------------------------------------------------------
if __name__ == "__main__":
    CFG = dict(
        img_channels=3, image_size=16, vocab_size=32, d_model=32,
        num_slots=3, slot_size=32, mlp_hidden_size=64, num_iterations=2,
        num_dec_blocks=2, num_heads=4, num_slot_heads=1,
        num_tokens=(16 // 4) ** 2,
    )
    B, C, H, W = 2, CFG['img_channels'], CFG['image_size'], CFG['image_size']

    root = jax.random.PRNGKey(0)
    k_params, k_img, k_fwd = jax.random.split(root, 3)
    params = init_params(k_params, CFG)
    image = jax.random.uniform(k_img, (B, C, H, W), dtype=jnp.float32)

    fwd = jax.jit(lambda p, img, k: slate_forward(p, img, 1.0, False, k, CFG))
    recon, cross_entropy, mse, attns = fwd(params, image, k_fwd)
    jax.block_until_ready((recon, cross_entropy, mse, attns))

    assert recon.shape == (B, C, H, W)
    assert attns.shape == (B, CFG['num_slots'], C, H, W)
    assert cross_entropy.shape == () and mse.shape == ()
    assert bool(jnp.isfinite(cross_entropy)) and bool(jnp.isfinite(mse))
    print("KERNEL_OK")
</pallas_src>

<mosaic_0001>
module attributes {stable_mosaic.version = 11 : i64} {
  func.func @_matmul_kernel(%arg0: i32, %arg1: i32, %arg2: i32, %arg3: memref<32x48xbf16, #tpu.memory_space<vmem>>, %arg4: memref<48x64xbf16, #tpu.memory_space<vmem>>, %arg5: memref<1x64xf32, #tpu.memory_space<vmem>>, %arg6: memref<32x64xbf16, #tpu.memory_space<vmem>>, %arg7: memref<32x64xf32, #tpu.memory_space<vmem>>) attributes {dimension_semantics = [#tpu.dimension_semantics<parallel>, #tpu.dimension_semantics<parallel>, #tpu.dimension_semantics<arbitrary>], iteration_bounds = array<i64: 1, 1, 1>, scalar_prefetch = 0 : i64, scratch_operands = 1 : i64, tpu.core_type = #tpu.core_type<tc>, window_params = [{transform_indices = @transform_0, window_bounds = array<i64: 32, 48>}, {transform_indices = @transform_1, window_bounds = array<i64: 48, 64>}, {transform_indices = @transform_2, window_bounds = array<i64: 1, 64>}, {transform_indices = @transform_3, window_bounds = array<i64: 32, 64>}]} {
    %c0_i32 = arith.constant 0 : i32
    %0 = arith.cmpi eq, %arg2, %c0_i32 : i32
    %1 = arith.extui %0 : i1 to i32
    %c0_i32_0 = arith.constant 0 : i32
    %2 = arith.cmpi ne, %1, %c0_i32_0 : i32
    scf.if %2 {
      %cst_10 = arith.constant 0.000000e+00 : f32
      %12 = vector.broadcast %cst_10 : f32 to vector<32x64xf32>
      %c0_11 = arith.constant 0 : index
      %c0_12 = arith.constant 0 : index
      %13 = vector.load %arg7[%c0_11, %c0_12] : memref<32x64xf32, #tpu.memory_space<vmem>>, vector<32x64xf32>
      tpu.vector_store %arg7[%c0_11, %c0_12], %12 {strides = array<i32>} : memref<32x64xf32, #tpu.memory_space<vmem>>, vector<32x64xf32>,
    } else {
    }
    %c0 = arith.constant 0 : index
    %c0_1 = arith.constant 0 : index
    %3 = vector.load %arg7[%c0, %c0_1] : memref<32x64xf32, #tpu.memory_space<vmem>>, vector<32x64xf32>
    %c0_2 = arith.constant 0 : index
    %c0_3 = arith.constant 0 : index
    %4 = vector.load %arg3[%c0_2, %c0_3] : memref<32x48xbf16, #tpu.memory_space<vmem>>, vector<32x48xbf16>
    %c0_4 = arith.constant 0 : index
    %c0_5 = arith.constant 0 : index
    %5 = vector.load %arg4[%c0_4, %c0_5] : memref<48x64xbf16, #tpu.memory_space<vmem>>, vector<48x64xbf16>
    %cst = arith.constant dense<0.000000e+00> : vector<32x64xf32>
    %6 = tpu.matmul %4, %5, %cst {dimension_numbers = #tpu.dot_dimension_numbers<[1], [0], [0], [1], [0, 0, 1, 1], [], []>} : vector<32x48xbf16>, vector<48x64xbf16>, vector<32x64xf32> -> vector<32x64xf32>
    %7 = arith.addf %3, %6 : vector<32x64xf32>
    %c0_6 = arith.constant 0 : index
    %c0_7 = arith.constant 0 : index
    %8 = vector.load %arg7[%c0_6, %c0_7] : memref<32x64xf32, #tpu.memory_space<vmem>>, vector<32x64xf32>
    tpu.vector_store %arg7[%c0_6, %c0_7], %7 {strides = array<i32>} : memref<32x64xf32, #tpu.memory_space<vmem>>, vector<32x64xf32>,
    %c0_i32_8 = arith.constant 0 : i32
    %9 = arith.cmpi eq, %arg2, %c0_i32_8 : i32
    %10 = arith.extui %9 : i1 to i32
    %c0_i32_9 = arith.constant 0 : i32
    %11 = arith.cmpi ne, %10, %c0_i32_9 : i32
    scf.if %11 {
      %c0_10 = arith.constant 0 : index
      %c0_11 = arith.constant 0 : index
      %12 = vector.load %arg7[%c0_10, %c0_11] : memref<32x64xf32, #tpu.memory_space<vmem>>, vector<32x64xf32>
      %c0_12 = arith.constant 0 : index
      %c0_13 = arith.constant 0 : index
      %13 = vector.load %arg5[%c0_12, %c0_13] : memref<1x64xf32, #tpu.memory_space<vmem>>, vector<1x64xf32>
      %14 = vector.broadcast %13 : vector<1x64xf32> to vector<32x64xf32>
      %15 = arith.addf %12, %14 : vector<32x64xf32>
      %cst_14 = arith.constant 0.000000e+00 : f32
      %16 = vector.broadcast %cst_14 : f32 to vector<32x64xf32>
      %17 = arith.maximumf %15, %16 : vector<32x64xf32>
      %18 = arith.truncf %17 : vector<32x64xf32> to vector<32x64xbf16>
      %c0_15 = arith.constant 0 : index
      %c0_16 = arith.constant 0 : index
      %19 = vector.load %arg6[%c0_15, %c0_16] : memref<32x64xbf16, #tpu.memory_space<vmem>>, vector<32x64xbf16>
      tpu.vector_store %arg6[%c0_15, %c0_16], %18 {strides = array<i32>} : memref<32x64xbf16, #tpu.memory_space<vmem>>, vector<32x64xbf16>,
    } else {
    }
    return
  }
  func.func @transform_0(%arg0: i32, %arg1: i32, %arg2: i32) -> (i32, i32) {
    %c0_i32 = arith.constant 0 : i32
    return %arg0, %arg2 : i32, i32
  }
  func.func @transform_1(%arg0: i32, %arg1: i32, %arg2: i32) -> (i32, i32) {
    %c0_i32 = arith.constant 0 : i32
    return %arg2, %arg1 : i32, i32
  }
  func.func @transform_2(%arg0: i32, %arg1: i32, %arg2: i32) -> (i32, i32) {
    %c0_i32 = arith.constant 0 : i32
    %c0_i32_0 = arith.constant 0 : i32
    return %c0_i32, %arg1 : i32, i32
  }
  func.func @transform_3(%arg0: i32, %arg1: i32, %arg2: i32) -> (i32, i32) {
    %c0_i32 = arith.constant 0 : i32
    return %arg0, %arg1 : i32, i32
  }
}

module attributes {stable_mosaic.version = 11 : i64} {
  func.func @_matmul_kernel(%arg0: i32, %arg1: i32, %arg2: i32, %arg3: memref<32x64xbf16, #tpu.memory_space<vmem>>, %arg4: memref<64x64xbf16, #tpu.memory_space<vmem>>, %arg5: memref<1x64xf32, #tpu.memory_space<vmem>>, %arg6: memref<32x64xbf16, #tpu.memory_space<vmem>>, %arg7: memref<32x64xf32, #tpu.memory_space<vmem>>) attributes {dimension_semantics = [#tpu.dimension_semantics<parallel>, #tpu.dimension_semantics<parallel>, #tpu.dimension_semantics<arbitrary>], iteration_bounds = array<i64: 1, 1, 1>, scalar_prefetch = 0 : i64, scratch_operands = 1 : i64, tpu.core_type = #tpu.core_type<tc>, window_params = [{transform_indices = @transform_0, window_bounds = array<i64: 32, 64>}, {transform_indices = @transform_1, window_bounds = array<i64: 64, 64>}, {transform_indices = @transform_2, window_bounds = array<i64: 1, 64>}, {transform_indices = @transform_3, window_bounds = array<i64: 32, 64>}]} {
    %c0_i32 = arith.constant 0 : i32
    %0 = arith.cmpi eq, %arg2, %c0_i32 : i32
    %1 = arith.extui %0 : i1 to i32
    %c0_i32_0 = arith.constant 0 : i32
    %2 = arith.cmpi ne, %1, %c0_i32_0 : i32
    scf.if %2 {
      %cst_10 = arith.constant 0.000000e+00 : f32
      %12 = vector.broadcast %cst_10 : f32 to vector<32x64xf32>
      %c0_11 = arith.constant 0 : index
      %c0_12 = arith.constant 0 : index
      %13 = vector.load %arg7[%c0_11, %c0_12] : memref<32x64xf32, #tpu.memory_space<vmem>>, vector<32x64xf32>
      tpu.vector_store %arg7[%c0_11, %c0_12], %12 {strides = array<i32>} : memref<32x64xf32, #tpu.memory_space<vmem>>, vector<32x64xf32>,
    } else {
    }
    %c0 = arith.constant 0 : index
    %c0_1 = arith.constant 0 : index
    %3 = vector.load %arg7[%c0, %c0_1] : memref<32x64xf32, #tpu.memory_space<vmem>>, vector<32x64xf32>
    %c0_2 = arith.constant 0 : index
    %c0_3 = arith.constant 0 : index
    %4 = vector.load %arg3[%c0_2, %c0_3] : memref<32x64xbf16, #tpu.memory_space<vmem>>, vector<32x64xbf16>
    %c0_4 = arith.constant 0 : index
    %c0_5 = arith.constant 0 : index
    %5 = vector.load %arg4[%c0_4, %c0_5] : memref<64x64xbf16, #tpu.memory_space<vmem>>, vector<64x64xbf16>
    %cst = arith.constant dense<0.000000e+00> : vector<32x64xf32>
    %6 = tpu.matmul %4, %5, %cst {dimension_numbers = #tpu.dot_dimension_numbers<[1], [0], [0], [1], [0, 0, 1, 1], [], []>} : vector<32x64xbf16>, vector<64x64xbf16>, vector<32x64xf32> -> vector<32x64xf32>
    %7 = arith.addf %3, %6 : vector<32x64xf32>
    %c0_6 = arith.constant 0 : index
    %c0_7 = arith.constant 0 : index
    %8 = vector.load %arg7[%c0_6, %c0_7] : memref<32x64xf32, #tpu.memory_space<vmem>>, vector<32x64xf32>
    tpu.vector_store %arg7[%c0_6, %c0_7], %7 {strides = array<i32>} : memref<32x64xf32, #tpu.memory_space<vmem>>, vector<32x64xf32>,
    %c0_i32_8 = arith.constant 0 : i32
    %9 = arith.cmpi eq, %arg2, %c0_i32_8 : i32
    %10 = arith.extui %9 : i1 to i32
    %c0_i32_9 = arith.constant 0 : i32
    %11 = arith.cmpi ne, %10, %c0_i32_9 : i32
    scf.if %11 {
      %c0_10 = arith.constant 0 : index
      %c0_11 = arith.constant 0 : index
      %12 = vector.load %arg7[%c0_10, %c0_11] : memref<32x64xf32, #tpu.memory_space<vmem>>, vector<32x64xf32>
      %c0_12 = arith.constant 0 : index
      %c0_13 = arith.constant 0 : index
      %13 = vector.load %arg5[%c0_12, %c0_13] : memref<1x64xf32, #tpu.memory_space<vmem>>, vector<1x64xf32>
      %14 = vector.broadcast %13 : vector<1x64xf32> to vector<32x64xf32>
      %15 = arith.addf %12, %14 : vector<32x64xf32>
      %cst_14 = arith.constant 0.000000e+00 : f32
      %16 = vector.broadcast %cst_14 : f32 to vector<32x64xf32>
      %17 = arith.maximumf %15, %16 : vector<32x64xf32>
      %18 = arith.truncf %17 : vector<32x64xf32> to vector<32x64xbf16>
      %c0_15 = arith.constant 0 : index
      %c0_16 = arith.constant 0 : index
      %19 = vector.load %arg6[%c0_15, %c0_16] : memref<32x64xbf16, #tpu.memory_space<vmem>>, vector<32x64xbf16>
      tpu.vector_store %arg6[%c0_15, %c0_16], %18 {strides = array<i32>} : memref<32x64xbf16, #tpu.memory_space<vmem>>, vector<32x64xbf16>,
    } else {
    }
    return
  }
  func.func @transform_0(%arg0: i32, %arg1: i32, %arg2: i32) -> (i32, i32) {
    %c0_i32 = arith.constant 0 : i32
    return %arg0, %arg2 : i32, i32
  }
  func.func @transform_1(%arg0: i32, %arg1: i32, %arg2: i32) -> (i32, i32) {
    %c0_i32 = arith.constant 0 : i32
    return %arg2, %arg1 : i32, i32
  }
  func.func @transform_2(%arg0: i32, %arg1: i32, %arg2: i32) -> (i32, i32) {
    %c0_i32 = arith.constant 0 : i32
    %c0_i32_0 = arith.constant 0 : i32
    return %c0_i32, %arg1 : i32, i32
  }
  func.func @transform_3(%arg0: i32, %arg1: i32, %arg2: i32) -> (i32, i32) {
    %c0_i32 = arith.constant 0 : i32
    return %arg0, %arg1 : i32, i32
  }
}

module attributes {stable_mosaic.version = 11 : i64} {
  func.func @_matmul_kernel(%arg0: i32, %arg1: i32, %arg2: i32, %arg3: memref<32x64xbf16, #tpu.memory_space<vmem>>, %arg4: memref<64x32xbf16, #tpu.memory_space<vmem>>, %arg5: memref<1x32xf32, #tpu.memory_space<vmem>>, %arg6: memref<32x32xf32, #tpu.memory_space<vmem>>, %arg7: memref<32x32xf32, #tpu.memory_space<vmem>>) attributes {dimension_semantics = [#tpu.dimension_semantics<parallel>, #tpu.dimension_semantics<parallel>, #tpu.dimension_semantics<arbitrary>], iteration_bounds = array<i64: 1, 1, 1>, scalar_prefetch = 0 : i64, scratch_operands = 1 : i64, tpu.core_type = #tpu.core_type<tc>, window_params = [{transform_indices = @transform_0, window_bounds = array<i64: 32, 64>}, {transform_indices = @transform_1, window_bounds = array<i64: 64, 32>}, {transform_indices = @transform_2, window_bounds = array<i64: 1, 32>}, {transform_indices = @transform_3, window_bounds = array<i64: 32, 32>}]} {
    %c0_i32 = arith.constant 0 : i32
    %0 = arith.cmpi eq, %arg2, %c0_i32 : i32
    %1 = arith.extui %0 : i1 to i32
    %c0_i32_0 = arith.constant 0 : i32
    %2 = arith.cmpi ne, %1, %c0_i32_0 : i32
    scf.if %2 {
      %cst_10 = arith.constant 0.000000e+00 : f32
      %12 = vector.broadcast %cst_10 : f32 to vector<32x32xf32>
      %c0_11 = arith.constant 0 : index
      %c0_12 = arith.constant 0 : index
      %13 = vector.load %arg7[%c0_11, %c0_12] : memref<32x32xf32, #tpu.memory_space<vmem>>, vector<32x32xf32>
      tpu.vector_store %arg7[%c0_11, %c0_12], %12 {strides = array<i32>} : memref<32x32xf32, #tpu.memory_space<vmem>>, vector<32x32xf32>,
    } else {
    }
    %c0 = arith.constant 0 : index
    %c0_1 = arith.constant 0 : index
    %3 = vector.load %arg7[%c0, %c0_1] : memref<32x32xf32, #tpu.memory_space<vmem>>, vector<32x32xf32>
    %c0_2 = arith.constant 0 : index
    %c0_3 = arith.constant 0 : index
    %4 = vector.load %arg3[%c0_2, %c0_3] : memref<32x64xbf16, #tpu.memory_space<vmem>>, vector<32x64xbf16>
    %c0_4 = arith.constant 0 : index
    %c0_5 = arith.constant 0 : index
    %5 = vector.load %arg4[%c0_4, %c0_5] : memref<64x32xbf16, #tpu.memory_space<vmem>>, vector<64x32xbf16>
    %cst = arith.constant dense<0.000000e+00> : vector<32x32xf32>
    %6 = tpu.matmul %4, %5, %cst {dimension_numbers = #tpu.dot_dimension_numbers<[1], [0], [0], [1], [0, 0, 1, 1], [], []>} : vector<32x64xbf16>, vector<64x32xbf16>, vector<32x32xf32> -> vector<32x32xf32>
    %7 = arith.addf %3, %6 : vector<32x32xf32>
    %c0_6 = arith.constant 0 : index
    %c0_7 = arith.constant 0 : index
    %8 = vector.load %arg7[%c0_6, %c0_7] : memref<32x32xf32, #tpu.memory_space<vmem>>, vector<32x32xf32>
    tpu.vector_store %arg7[%c0_6, %c0_7], %7 {strides = array<i32>} : memref<32x32xf32, #tpu.memory_space<vmem>>, vector<32x32xf32>,
    %c0_i32_8 = arith.constant 0 : i32
    %9 = arith.cmpi eq, %arg2, %c0_i32_8 : i32
    %10 = arith.extui %9 : i1 to i32
    %c0_i32_9 = arith.constant 0 : i32
    %11 = arith.cmpi ne, %10, %c0_i32_9 : i32
    scf.if %11 {
      %c0_10 = arith.constant 0 : index
      %c0_11 = arith.constant 0 : index
      %12 = vector.load %arg7[%c0_10, %c0_11] : memref<32x32xf32, #tpu.memory_space<vmem>>, vector<32x32xf32>
      %c0_12 = arith.constant 0 : index
      %c0_13 = arith.constant 0 : index
      %13 = vector.load %arg5[%c0_12, %c0_13] : memref<1x32xf32, #tpu.memory_space<vmem>>, vector<1x32xf32>
      %14 = vector.broadcast %13 : vector<1x32xf32> to vector<32x32xf32>
      %15 = arith.addf %12, %14 : vector<32x32xf32>
      %c0_14 = arith.constant 0 : index
      %c0_15 = arith.constant 0 : index
      %16 = vector.load %arg6[%c0_14, %c0_15] : memref<32x32xf32, #tpu.memory_space<vmem>>, vector<32x32xf32>
      tpu.vector_store %arg6[%c0_14, %c0_15], %15 {strides = array<i32>} : memref<32x32xf32, #tpu.memory_space<vmem>>, vector<32x32xf32>,
    } else {
    }
    return
  }
  func.func @transform_0(%arg0: i32, %arg1: i32, %arg2: i32) -> (i32, i32) {
    %c0_i32 = arith.constant 0 : i32
    return %arg0, %arg2 : i32, i32
  }
  func.func @transform_1(%arg0: i32, %arg1: i32, %arg2: i32) -> (i32, i32) {
    %c0_i32 = arith.constant 0 : i32
    return %arg2, %arg1 : i32, i32
  }
  func.func @transform_2(%arg0: i32, %arg1: i32, %arg2: i32) -> (i32, i32) {
    %c0_i32 = arith.constant 0 : i32
    %c0_i32_0 = arith.constant 0 : i32
    return %c0_i32, %arg1 : i32, i32
  }
  func.func @transform_3(%arg0: i32, %arg1: i32, %arg2: i32) -> (i32, i32) {
    %c0_i32 = arith.constant 0 : i32
    return %arg0, %arg1 : i32, i32
  }
}

module attributes {stable_mosaic.version = 11 : i64} {
  func.func @_matmul_kernel(%arg0: i32, %arg1: i32, %arg2: i32, %arg3: memref<32x32xbf16, #tpu.memory_space<vmem>>, %arg4: memref<32x64xbf16, #tpu.memory_space<vmem>>, %arg5: memref<1x64xf32, #tpu.memory_space<vmem>>, %arg6: memref<32x64xbf16, #tpu.memory_space<vmem>>, %arg7: memref<32x64xf32, #tpu.memory_space<vmem>>) attributes {dimension_semantics = [#tpu.dimension_semantics<parallel>, #tpu.dimension_semantics<parallel>, #tpu.dimension_semantics<arbitrary>], iteration_bounds = array<i64: 1, 1, 1>, scalar_prefetch = 0 : i64, scratch_operands = 1 : i64, tpu.core_type = #tpu.core_type<tc>, window_params = [{transform_indices = @transform_0, window_bounds = array<i64: 32, 32>}, {transform_indices = @transform_1, window_bounds = array<i64: 32, 64>}, {transform_indices = @transform_2, window_bounds = array<i64: 1, 64>}, {transform_indices = @transform_3, window_bounds = array<i64: 32, 64>}]} {
    %c0_i32 = arith.constant 0 : i32
    %0 = arith.cmpi eq, %arg2, %c0_i32 : i32
    %1 = arith.extui %0 : i1 to i32
    %c0_i32_0 = arith.constant 0 : i32
    %2 = arith.cmpi ne, %1, %c0_i32_0 : i32
    scf.if %2 {
      %cst_10 = arith.constant 0.000000e+00 : f32
      %12 = vector.broadcast %cst_10 : f32 to vector<32x64xf32>
      %c0_11 = arith.constant 0 : index
      %c0_12 = arith.constant 0 : index
      %13 = vector.load %arg7[%c0_11, %c0_12] : memref<32x64xf32, #tpu.memory_space<vmem>>, vector<32x64xf32>
      tpu.vector_store %arg7[%c0_11, %c0_12], %12 {strides = array<i32>} : memref<32x64xf32, #tpu.memory_space<vmem>>, vector<32x64xf32>,
    } else {
    }
    %c0 = arith.constant 0 : index
    %c0_1 = arith.constant 0 : index
    %3 = vector.load %arg7[%c0, %c0_1] : memref<32x64xf32, #tpu.memory_space<vmem>>, vector<32x64xf32>
    %c0_2 = arith.constant 0 : index
    %c0_3 = arith.constant 0 : index
    %4 = vector.load %arg3[%c0_2, %c0_3] : memref<32x32xbf16, #tpu.memory_space<vmem>>, vector<32x32xbf16>
    %c0_4 = arith.constant 0 : index
    %c0_5 = arith.constant 0 : index
    %5 = vector.load %arg4[%c0_4, %c0_5] : memref<32x64xbf16, #tpu.memory_space<vmem>>, vector<32x64xbf16>
    %cst = arith.constant dense<0.000000e+00> : vector<32x64xf32>
    %6 = tpu.matmul %4, %5, %cst {dimension_numbers = #tpu.dot_dimension_numbers<[1], [0], [0], [1], [0, 0, 1, 1], [], []>} : vector<32x32xbf16>, vector<32x64xbf16>, vector<32x64xf32> -> vector<32x64xf32>
    %7 = arith.addf %3, %6 : vector<32x64xf32>
    %c0_6 = arith.constant 0 : index
    %c0_7 = arith.constant 0 : index
    %8 = vector.load %arg7[%c0_6, %c0_7] : memref<32x64xf32, #tpu.memory_space<vmem>>, vector<32x64xf32>
    tpu.vector_store %arg7[%c0_6, %c0_7], %7 {strides = array<i32>} : memref<32x64xf32, #tpu.memory_space<vmem>>, vector<32x64xf32>,
    %c0_i32_8 = arith.constant 0 : i32
    %9 = arith.cmpi eq, %arg2, %c0_i32_8 : i32
    %10 = arith.extui %9 : i1 to i32
    %c0_i32_9 = arith.constant 0 : i32
    %11 = arith.cmpi ne, %10, %c0_i32_9 : i32
    scf.if %11 {
      %c0_10 = arith.constant 0 : index
      %c0_11 = arith.constant 0 : index
      %12 = vector.load %arg7[%c0_10, %c0_11] : memref<32x64xf32, #tpu.memory_space<vmem>>, vector<32x64xf32>
      %c0_12 = arith.constant 0 : index
      %c0_13 = arith.constant 0 : index
      %13 = vector.load %arg5[%c0_12, %c0_13] : memref<1x64xf32, #tpu.memory_space<vmem>>, vector<1x64xf32>
      %14 = vector.broadcast %13 : vector<1x64xf32> to vector<32x64xf32>
      %15 = arith.addf %12, %14 : vector<32x64xf32>
      %cst_14 = arith.constant 0.000000e+00 : f32
      %16 = vector.broadcast %cst_14 : f32 to vector<32x64xf32>
      %17 = arith.maximumf %15, %16 : vector<32x64xf32>
      %18 = arith.truncf %17 : vector<32x64xf32> to vector<32x64xbf16>
      %c0_15 = arith.constant 0 : index
      %c0_16 = arith.constant 0 : index
      %19 = vector.load %arg6[%c0_15, %c0_16] : memref<32x64xbf16, #tpu.memory_space<vmem>>, vector<32x64xbf16>
      tpu.vector_store %arg6[%c0_15, %c0_16], %18 {strides = array<i32>} : memref<32x64xbf16, #tpu.memory_space<vmem>>, vector<32x64xbf16>,
    } else {
    }
    return
  }
  func.func @transform_0(%arg0: i32, %arg1: i32, %arg2: i32) -> (i32, i32) {
    %c0_i32 = arith.constant 0 : i32
    return %arg0, %arg2 : i32, i32
  }
  func.func @transform_1(%arg0: i32, %arg1: i32, %arg2: i32) -> (i32, i32) {
    %c0_i32 = arith.constant 0 : i32
    return %arg2, %arg1 : i32, i32
  }
  func.func @transform_2(%arg0: i32, %arg1: i32, %arg2: i32) -> (i32, i32) {
    %c0_i32 = arith.constant 0 : i32
    %c0_i32_0 = arith.constant 0 : i32
    return %c0_i32, %arg1 : i32, i32
  }
  func.func @transform_3(%arg0: i32, %arg1: i32, %arg2: i32) -> (i32, i32) {
    %c0_i32 = arith.constant 0 : i32
    return %arg0, %arg1 : i32, i32
  }
}

module attributes {stable_mosaic.version = 11 : i64} {
  func.func @_matmul_kernel(%arg0: i32, %arg1: i32, %arg2: i32, %arg3: memref<32x64xbf16, #tpu.memory_space<vmem>>, %arg4: memref<64x256xbf16, #tpu.memory_space<vmem>>, %arg5: memref<1x256xf32, #tpu.memory_space<vmem>>, %arg6: memref<32x256xbf16, #tpu.memory_space<vmem>>, %arg7: memref<32x256xf32, #tpu.memory_space<vmem>>) attributes {dimension_semantics = [#tpu.dimension_semantics<parallel>, #tpu.dimension_semantics<parallel>, #tpu.dimension_semantics<arbitrary>], iteration_bounds = array<i64: 1, 1, 1>, scalar_prefetch = 0 : i64, scratch_operands = 1 : i64, tpu.core_type = #tpu.core_type<tc>, window_params = [{transform_indices = @transform_0, window_bounds = array<i64: 32, 64>}, {transform_indices = @transform_1, window_bounds = array<i64: 64, 256>}, {transform_indices = @transform_2, window_bounds = array<i64: 1, 256>}, {transform_indices = @transform_3, window_bounds = array<i64: 32, 256>}]} {
    %c0_i32 = arith.constant 0 : i32
    %0 = arith.cmpi eq, %arg2, %c0_i32 : i32
    %1 = arith.extui %0 : i1 to i32
    %c0_i32_0 = arith.constant 0 : i32
    %2 = arith.cmpi ne, %1, %c0_i32_0 : i32
    scf.if %2 {
      %cst_10 = arith.constant 0.000000e+00 : f32
      %12 = vector.broadcast %cst_10 : f32 to vector<32x256xf32>
      %c0_11 = arith.constant 0 : index
      %c0_12 = arith.constant 0 : index
      %13 = vector.load %arg7[%c0_11, %c0_12] : memref<32x256xf32, #tpu.memory_space<vmem>>, vector<32x256xf32>
      tpu.vector_store %arg7[%c0_11, %c0_12], %12 {strides = array<i32>} : memref<32x256xf32, #tpu.memory_space<vmem>>, vector<32x256xf32>,
    } else {
    }
    %c0 = arith.constant 0 : index
    %c0_1 = arith.constant 0 : index
    %3 = vector.load %arg7[%c0, %c0_1] : memref<32x256xf32, #tpu.memory_space<vmem>>, vector<32x256xf32>
    %c0_2 = arith.constant 0 : index
    %c0_3 = arith.constant 0 : index
    %4 = vector.load %arg3[%c0_2, %c0_3] : memref<32x64xbf16, #tpu.memory_space<vmem>>, vector<32x64xbf16>
    %c0_4 = arith.constant 0 : index
    %c0_5 = arith.constant 0 : index
    %5 = vector.load %arg4[%c0_4, %c0_5] : memref<64x256xbf16, #tpu.memory_space<vmem>>, vector<64x256xbf16>
    %cst = arith.constant dense<0.000000e+00> : vector<32x256xf32>
    %6 = tpu.matmul %4, %5, %cst {dimension_numbers = #tpu.dot_dimension_numbers<[1], [0], [0], [1], [0, 0, 1, 1], [], []>} : vector<32x64xbf16>, vector<64x256xbf16>, vector<32x256xf32> -> vector<32x256xf32>
    %7 = arith.addf %3, %6 : vector<32x256xf32>
    %c0_6 = arith.constant 0 : index
    %c0_7 = arith.constant 0 : index
    %8 = vector.load %arg7[%c0_6, %c0_7] : memref<32x256xf32, #tpu.memory_space<vmem>>, vector<32x256xf32>
    tpu.vector_store %arg7[%c0_6, %c0_7], %7 {strides = array<i32>} : memref<32x256xf32, #tpu.memory_space<vmem>>, vector<32x256xf32>,
    %c0_i32_8 = arith.constant 0 : i32
    %9 = arith.cmpi eq, %arg2, %c0_i32_8 : i32
    %10 = arith.extui %9 : i1 to i32
    %c0_i32_9 = arith.constant 0 : i32
    %11 = arith.cmpi ne, %10, %c0_i32_9 : i32
    scf.if %11 {
      %c0_10 = arith.constant 0 : index
      %c0_11 = arith.constant 0 : index
      %12 = vector.load %arg7[%c0_10, %c0_11] : memref<32x256xf32, #tpu.memory_space<vmem>>, vector<32x256xf32>
      %c0_12 = arith.constant 0 : index
      %c0_13 = arith.constant 0 : index
      %13 = vector.load %arg5[%c0_12, %c0_13] : memref<1x256xf32, #tpu.memory_space<vmem>>, vector<1x256xf32>
      %14 = vector.broadcast %13 : vector<1x256xf32> to vector<32x256xf32>
      %15 = arith.addf %12, %14 : vector<32x256xf32>
      %cst_14 = arith.constant 0.000000e+00 : f32
      %16 = vector.broadcast %cst_14 : f32 to vector<32x256xf32>
      %17 = arith.maximumf %15, %16 : vector<32x256xf32>
      %18 = arith.truncf %17 : vector<32x256xf32> to vector<32x256xbf16>
      %c0_15 = arith.constant 0 : index
      %c0_16 = arith.constant 0 : index
      %19 = vector.load %arg6[%c0_15, %c0_16] : memref<32x256xbf16, #tpu.memory_space<vmem>>, vector<32x256xbf16>
      tpu.vector_store %arg6[%c0_15, %c0_16], %18 {strides = array<i32>} : memref<32x256xbf16, #tpu.memory_space<vmem>>, vector<32x256xbf16>,
    } else {
    }
    return
  }
  func.func @transform_0(%arg0: i32, %arg1: i32, %arg2: i32) -> (i32, i32) {
    %c0_i32 = arith.constant 0 : i32
    return %arg0, %arg2 : i32, i32
  }
  func.func @transform_1(%arg0: i32, %arg1: i32, %arg2: i32) -> (i32, i32) {
    %c0_i32 = arith.constant 0 : i32
    return %arg2, %arg1 : i32, i32
  }
  func.func @transform_2(%arg0: i32, %arg1: i32, %arg2: i32) -> (i32, i32) {
    %c0_i32 = arith.constant 0 : i32
    %c0_i32_0 = arith.constant 0 : i32
    return %c0_i32, %arg1 : i32, i32
  }
  func.func @transform_3(%arg0: i32, %arg1: i32, %arg2: i32) -> (i32, i32) {
    %c0_i32 = arith.constant 0 : i32
    return %arg0, %arg1 : i32, i32
  }
}

module attributes {stable_mosaic.version = 11 : i64} {
  func.func @_matmul_kernel(%arg0: i32, %arg1: i32, %arg2: i32, %arg3: memref<128x64xbf16, #tpu.memory_space<vmem>>, %arg4: memref<64x256xbf16, #tpu.memory_space<vmem>>, %arg5: memref<1x256xf32, #tpu.memory_space<vmem>>, %arg6: memref<128x256xbf16, #tpu.memory_space<vmem>>, %arg7: memref<128x256xf32, #tpu.memory_space<vmem>>) attributes {dimension_semantics = [#tpu.dimension_semantics<parallel>, #tpu.dimension_semantics<parallel>, #tpu.dimension_semantics<arbitrary>], iteration_bounds = array<i64: 1, 1, 1>, scalar_prefetch = 0 : i64, scratch_operands = 1 : i64, tpu.core_type = #tpu.core_type<tc>, window_params = [{transform_indices = @transform_0, window_bounds = array<i64: 128, 64>}, {transform_indices = @transform_1, window_bounds = array<i64: 64, 256>}, {transform_indices = @transform_2, window_bounds = array<i64: 1, 256>}, {transform_indices = @transform_3, window_bounds = array<i64: 128, 256>}]} {
    %c0_i32 = arith.constant 0 : i32
    %0 = arith.cmpi eq, %arg2, %c0_i32 : i32
    %1 = arith.extui %0 : i1 to i32
    %c0_i32_0 = arith.constant 0 : i32
    %2 = arith.cmpi ne, %1, %c0_i32_0 : i32
    scf.if %2 {
      %cst_10 = arith.constant 0.000000e+00 : f32
      %12 = vector.broadcast %cst_10 : f32 to vector<128x256xf32>
      %c0_11 = arith.constant 0 : index
      %c0_12 = arith.constant 0 : index
      %13 = vector.load %arg7[%c0_11, %c0_12] : memref<128x256xf32, #tpu.memory_space<vmem>>, vector<128x256xf32>
      tpu.vector_store %arg7[%c0_11, %c0_12], %12 {strides = array<i32>} : memref<128x256xf32, #tpu.memory_space<vmem>>, vector<128x256xf32>,
    } else {
    }
    %c0 = arith.constant 0 : index
    %c0_1 = arith.constant 0 : index
    %3 = vector.load %arg7[%c0, %c0_1] : memref<128x256xf32, #tpu.memory_space<vmem>>, vector<128x256xf32>
    %c0_2 = arith.constant 0 : index
    %c0_3 = arith.constant 0 : index
    %4 = vector.load %arg3[%c0_2, %c0_3] : memref<128x64xbf16, #tpu.memory_space<vmem>>, vector<128x64xbf16>
    %c0_4 = arith.constant 0 : index
    %c0_5 = arith.constant 0 : index
    %5 = vector.load %arg4[%c0_4, %c0_5] : memref<64x256xbf16, #tpu.memory_space<vmem>>, vector<64x256xbf16>
    %cst = arith.constant dense<0.000000e+00> : vector<128x256xf32>
    %6 = tpu.matmul %4, %5, %cst {dimension_numbers = #tpu.dot_dimension_numbers<[1], [0], [0], [1], [0, 0, 1, 1], [], []>} : vector<128x64xbf16>, vector<64x256xbf16>, vector<128x256xf32> -> vector<128x256xf32>
    %7 = arith.addf %3, %6 : vector<128x256xf32>
    %c0_6 = arith.constant 0 : index
    %c0_7 = arith.constant 0 : index
    %8 = vector.load %arg7[%c0_6, %c0_7] : memref<128x256xf32, #tpu.memory_space<vmem>>, vector<128x256xf32>
    tpu.vector_store %arg7[%c0_6, %c0_7], %7 {strides = array<i32>} : memref<128x256xf32, #tpu.memory_space<vmem>>, vector<128x256xf32>,
    %c0_i32_8 = arith.constant 0 : i32
    %9 = arith.cmpi eq, %arg2, %c0_i32_8 : i32
    %10 = arith.extui %9 : i1 to i32
    %c0_i32_9 = arith.constant 0 : i32
    %11 = arith.cmpi ne, %10, %c0_i32_9 : i32
    scf.if %11 {
      %c0_10 = arith.constant 0 : index
      %c0_11 = arith.constant 0 : index
      %12 = vector.load %arg7[%c0_10, %c0_11] : memref<128x256xf32, #tpu.memory_space<vmem>>, vector<128x256xf32>
      %c0_12 = arith.constant 0 : index
      %c0_13 = arith.constant 0 : index
      %13 = vector.load %arg5[%c0_12, %c0_13] : memref<1x256xf32, #tpu.memory_space<vmem>>, vector<1x256xf32>
      %14 = vector.broadcast %13 : vector<1x256xf32> to vector<128x256xf32>
      %15 = arith.addf %12, %14 : vector<128x256xf32>
      %cst_14 = arith.constant 0.000000e+00 : f32
      %16 = vector.broadcast %cst_14 : f32 to vector<128x256xf32>
      %17 = arith.maximumf %15, %16 : vector<128x256xf32>
      %18 = arith.truncf %17 : vector<128x256xf32> to vector<128x256xbf16>
      %c0_15 = arith.constant 0 : index
      %c0_16 = arith.constant 0 : index
      %19 = vector.load %arg6[%c0_15, %c0_16] : memref<128x256xbf16, #tpu.memory_space<vmem>>, vector<128x256xbf16>
      tpu.vector_store %arg6[%c0_15, %c0_16], %18 {strides = array<i32>} : memref<128x256xbf16, #tpu.memory_space<vmem>>, vector<128x256xbf16>,
    } else {
    }
    return
  }
  func.func @transform_0(%arg0: i32, %arg1: i32, %arg2: i32) -> (i32, i32) {
    %c0_i32 = arith.constant 0 : i32
    return %arg0, %arg2 : i32, i32
  }
  func.func @transform_1(%arg0: i32, %arg1: i32, %arg2: i32) -> (i32, i32) {
    %c0_i32 = arith.constant 0 : i32
    return %arg2, %arg1 : i32, i32
  }
  func.func @transform_2(%arg0: i32, %arg1: i32, %arg2: i32) -> (i32, i32) {
    %c0_i32 = arith.constant 0 : i32
    %c0_i32_0 = arith.constant 0 : i32
    return %c0_i32, %arg1 : i32, i32
  }
  func.func @transform_3(%arg0: i32, %arg1: i32, %arg2: i32) -> (i32, i32) {
    %c0_i32 = arith.constant 0 : i32
    return %arg0, %arg1 : i32, i32
  }
}

module attributes {stable_mosaic.version = 11 : i64} {
  func.func @_matmul_kernel(%arg0: i32, %arg1: i32, %arg2: i32, %arg3: memref<256x64xbf16, #tpu.memory_space<vmem>>, %arg4: memref<64x3xbf16, #tpu.memory_space<vmem>>, %arg5: memref<1x3xf32, #tpu.memory_space<vmem>>, %arg6: memref<256x3xf32, #tpu.memory_space<vmem>>, %arg7: memref<256x3xf32, #tpu.memory_space<vmem>>) attributes {dimension_semantics = [#tpu.dimension_semantics<parallel>, #tpu.dimension_semantics<parallel>, #tpu.dimension_semantics<arbitrary>], iteration_bounds = array<i64: 2, 1, 1>, scalar_prefetch = 0 : i64, scratch_operands = 1 : i64, tpu.core_type = #tpu.core_type<tc>, window_params = [{transform_indices = @transform_0, window_bounds = array<i64: 256, 64>}, {transform_indices = @transform_1, window_bounds = array<i64: 64, 3>}, {transform_indices = @transform_2, window_bounds = array<i64: 1, 3>}, {transform_indices = @transform_3, window_bounds = array<i64: 256, 3>}]} {
    %c0_i32 = arith.constant 0 : i32
    %0 = arith.cmpi eq, %arg2, %c0_i32 : i32
    %1 = arith.extui %0 : i1 to i32
    %c0_i32_0 = arith.constant 0 : i32
    %2 = arith.cmpi ne, %1, %c0_i32_0 : i32
    scf.if %2 {
      %cst_10 = arith.constant 0.000000e+00 : f32
      %12 = vector.broadcast %cst_10 : f32 to vector<256x3xf32>
      %c0_11 = arith.constant 0 : index
      %c0_12 = arith.constant 0 : index
      %13 = vector.load %arg7[%c0_11, %c0_12] : memref<256x3xf32, #tpu.memory_space<vmem>>, vector<256x3xf32>
      tpu.vector_store %arg7[%c0_11, %c0_12], %12 {strides = array<i32>} : memref<256x3xf32, #tpu.memory_space<vmem>>, vector<256x3xf32>,
    } else {
    }
    %c0 = arith.constant 0 : index
    %c0_1 = arith.constant 0 : index
    %3 = vector.load %arg7[%c0, %c0_1] : memref<256x3xf32, #tpu.memory_space<vmem>>, vector<256x3xf32>
    %c0_2 = arith.constant 0 : index
    %c0_3 = arith.constant 0 : index
    %4 = vector.load %arg3[%c0_2, %c0_3] : memref<256x64xbf16, #tpu.memory_space<vmem>>, vector<256x64xbf16>
    %c0_4 = arith.constant 0 : index
    %c0_5 = arith.constant 0 : index
    %5 = vector.load %arg4[%c0_4, %c0_5] : memref<64x3xbf16, #tpu.memory_space<vmem>>, vector<64x3xbf16>
    %cst = arith.constant dense<0.000000e+00> : vector<256x3xf32>
    %6 = tpu.matmul %4, %5, %cst {dimension_numbers = #tpu.dot_dimension_numbers<[1], [0], [0], [1], [0, 0, 1, 1], [], []>} : vector<256x64xbf16>, vector<64x3xbf16>, vector<256x3xf32> -> vector<256x3xf32>
    %7 = arith.addf %3, %6 : vector<256x3xf32>
    %c0_6 = arith.constant 0 : index
    %c0_7 = arith.constant 0 : index
    %8 = vector.load %arg7[%c0_6, %c0_7] : memref<256x3xf32, #tpu.memory_space<vmem>>, vector<256x3xf32>
    tpu.vector_store %arg7[%c0_6, %c0_7], %7 {strides = array<i32>} : memref<256x3xf32, #tpu.memory_space<vmem>>, vector<256x3xf32>,
    %c0_i32_8 = arith.constant 0 : i32
    %9 = arith.cmpi eq, %arg2, %c0_i32_8 : i32
    %10 = arith.extui %9 : i1 to i32
    %c0_i32_9 = arith.constant 0 : i32
    %11 = arith.cmpi ne, %10, %c0_i32_9 : i32
    scf.if %11 {
      %c0_10 = arith.constant 0 : index
      %c0_11 = arith.constant 0 : index
      %12 = vector.load %arg7[%c0_10, %c0_11] : memref<256x3xf32, #tpu.memory_space<vmem>>, vector<256x3xf32>
      %c0_12 = arith.constant 0 : index
      %c0_13 = arith.constant 0 : index
      %13 = vector.load %arg5[%c0_12, %c0_13] : memref<1x3xf32, #tpu.memory_space<vmem>>, vector<1x3xf32>
      %14 = vector.broadcast %13 : vector<1x3xf32> to vector<256x3xf32>
      %15 = arith.addf %12, %14 : vector<256x3xf32>
      %c0_14 = arith.constant 0 : index
      %c0_15 = arith.constant 0 : index
      %16 = vector.load %arg6[%c0_14, %c0_15] : memref<256x3xf32, #tpu.memory_space<vmem>>, vector<256x3xf32>
      tpu.vector_store %arg6[%c0_14, %c0_15], %15 {strides = array<i32>} : memref<256x3xf32, #tpu.memory_space<vmem>>, vector<256x3xf32>,
    } else {
    }
    return
  }
  func.func @transform_0(%arg0: i32, %arg1: i32, %arg2: i32) -> (i32, i32) {
    %c0_i32 = arith.constant 0 : i32
    return %arg0, %arg2 : i32, i32
  }
  func.func @transform_1(%arg0: i32, %arg1: i32, %arg2: i32) -> (i32, i32) {
    %c0_i32 = arith.constant 0 : i32
    return %arg2, %arg1 : i32, i32
  }
  func.func @transform_2(%arg0: i32, %arg1: i32, %arg2: i32) -> (i32, i32) {
    %c0_i32 = arith.constant 0 : i32
    %c0_i32_0 = arith.constant 0 : i32
    return %c0_i32, %arg1 : i32, i32
  }
  func.func @transform_3(%arg0: i32, %arg1: i32, %arg2: i32) -> (i32, i32) {
    %c0_i32 = arith.constant 0 : i32
    return %arg0, %arg1 : i32, i32
  }
}

module attributes {stable_mosaic.version = 11 : i64} {
  func.func @_layernorm_kernel(%arg0: i32, %arg1: memref<32x32xf32, #tpu.memory_space<vmem>>, %arg2: memref<1x32xf32, #tpu.memory_space<vmem>>, %arg3: memref<1x32xf32, #tpu.memory_space<vmem>>, %arg4: memref<32x32xbf16, #tpu.memory_space<vmem>>) attributes {dimension_semantics = [#tpu.dimension_semantics<parallel>], iteration_bounds = array<i64: 1>, scalar_prefetch = 0 : i64, scratch_operands = 0 : i64, tpu.core_type = #tpu.core_type<tc>, window_params = [{transform_indices = @transform_0, window_bounds = array<i64: 32, 32>}, {pipeline_mode = #tpu.pipeline_mode<synchronous>, transform_indices = @transform_1, window_bounds = array<i64: 1, 32>}, {pipeline_mode = #tpu.pipeline_mode<synchronous>, transform_indices = @transform_2, window_bounds = array<i64: 1, 32>}, {transform_indices = @transform_3, window_bounds = array<i64: 32, 32>}]} {
    %c0 = arith.constant 0 : index
    %c0_0 = arith.constant 0 : index
    %0 = vector.load %arg1[%c0, %c0_0] : memref<32x32xf32, #tpu.memory_space<vmem>>, vector<32x32xf32>
    %cst = arith.constant dense<0.000000e+00> : vector<32xf32>
    %1 = vector.multi_reduction <add>, %0, %cst [1] : vector<32x32xf32> to vector<32xf32>
    %2 = vector.shape_cast %1 : vector<32xf32> to vector<32x1xf32>
    %cst_1 = arith.constant 3.200000e+01 : f32
    %3 = vector.broadcast %cst_1 : f32 to vector<32x1xf32>
    %4 = arith.divf %2, %3 : vector<32x1xf32>
    %5 = vector.broadcast %4 : vector<32x1xf32> to vector<32x32xf32>
    %6 = arith.subf %0, %5 : vector<32x32xf32>
    %7 = arith.mulf %6, %6 : vector<32x32xf32>
    %cst_2 = arith.constant dense<0.000000e+00> : vector<32xf32>
    %8 = vector.multi_reduction <add>, %7, %cst_2 [1] : vector<32x32xf32> to vector<32xf32>
    %9 = vector.shape_cast %8 : vector<32xf32> to vector<32x1xf32>
    %cst_3 = arith.constant 3.200000e+01 : f32
    %10 = vector.broadcast %cst_3 : f32 to vector<32x1xf32>
    %11 = arith.divf %9, %10 : vector<32x1xf32>
    %12 = vector.broadcast %4 : vector<32x1xf32> to vector<32x32xf32>
    %13 = arith.subf %0, %12 : vector<32x32xf32>
    %cst_4 = arith.constant 9.99999974E-6 : f32
    %14 = vector.broadcast %cst_4 : f32 to vector<32x1xf32>
    %15 = arith.addf %11, %14 : vector<32x1xf32>
    %16 = math.rsqrt %15 : vector<32x1xf32>
    %17 = vector.broadcast %16 : vector<32x1xf32> to vector<32x32xf32>
    %18 = arith.mulf %13, %17 : vector<32x32xf32>
    %c0_5 = arith.constant 0 : index
    %c0_6 = arith.constant 0 : index
    %19 = vector.load %arg2[%c0_5, %c0_6] : memref<1x32xf32, #tpu.memory_space<vmem>>, vector<1x32xf32>
    %20 = vector.broadcast %19 : vector<1x32xf32> to vector<32x32xf32>
    %21 = arith.mulf %18, %20 : vector<32x32xf32>
    %c0_7 = arith.constant 0 : index
    %c0_8 = arith.constant 0 : index
    %22 = vector.load %arg3[%c0_7, %c0_8] : memref<1x32xf32, #tpu.memory_space<vmem>>, vector<1x32xf32>
    %23 = vector.broadcast %22 : vector<1x32xf32> to vector<32x32xf32>
    %24 = arith.addf %21, %23 : vector<32x32xf32>
    %25 = arith.truncf %24 : vector<32x32xf32> to vector<32x32xbf16>
    %c0_9 = arith.constant 0 : index
    %c0_10 = arith.constant 0 : index
    %26 = vector.load %arg4[%c0_9, %c0_10] : memref<32x32xbf16, #tpu.memory_space<vmem>>, vector<32x32xbf16>
    tpu.vector_store %arg4[%c0_9, %c0_10], %25 {strides = array<i32>} : memref<32x32xbf16, #tpu.memory_space<vmem>>, vector<32x32xbf16>,
    return
  }
  func.func @transform_0(%arg0: i32) -> (i32, i32) {
    %c0_i32 = arith.constant 0 : i32
    %c0_i32_0 = arith.constant 0 : i32
    return %arg0, %c0_i32 : i32, i32
  }
  func.func @transform_1(%arg0: i32) -> (i32, i32) {
    %c0_i32 = arith.constant 0 : i32
    %c0_i32_0 = arith.constant 0 : i32
    %c0_i32_1 = arith.constant 0 : i32
    return %c0_i32, %c0_i32_0 : i32, i32
  }
  func.func @transform_2(%arg0: i32) -> (i32, i32) {
    %c0_i32 = arith.constant 0 : i32
    %c0_i32_0 = arith.constant 0 : i32
    %c0_i32_1 = arith.constant 0 : i32
    return %c0_i32, %c0_i32_0 : i32, i32
  }
  func.func @transform_3(%arg0: i32) -> (i32, i32) {
    %c0_i32 = arith.constant 0 : i32
    %c0_i32_0 = arith.constant 0 : i32
    return %arg0, %c0_i32 : i32, i32
  }
}

module attributes {stable_mosaic.version = 11 : i64} {
  func.func @_matmul_kernel(%arg0: i32, %arg1: i32, %arg2: i32, %arg3: memref<32x32xbf16, #tpu.memory_space<vmem>>, %arg4: memref<32x96xbf16, #tpu.memory_space<vmem>>, %arg5: memref<1x96xf32, #tpu.memory_space<vmem>>, %arg6: memref<32x96xbf16, #tpu.memory_space<vmem>>, %arg7: memref<32x96xf32, #tpu.memory_space<vmem>>) attributes {dimension_semantics = [#tpu.dimension_semantics<parallel>, #tpu.dimension_semantics<parallel>, #tpu.dimension_semantics<arbitrary>], iteration_bounds = array<i64: 1, 1, 1>, scalar_prefetch = 0 : i64, scratch_operands = 1 : i64, tpu.core_type = #tpu.core_type<tc>, window_params = [{transform_indices = @transform_0, window_bounds = array<i64: 32, 32>}, {transform_indices = @transform_1, window_bounds = array<i64: 32, 96>}, {transform_indices = @transform_2, window_bounds = array<i64: 1, 96>}, {transform_indices = @transform_3, window_bounds = array<i64: 32, 96>}]} {
    %c0_i32 = arith.constant 0 : i32
    %0 = arith.cmpi eq, %arg2, %c0_i32 : i32
    %1 = arith.extui %0 : i1 to i32
    %c0_i32_0 = arith.constant 0 : i32
    %2 = arith.cmpi ne, %1, %c0_i32_0 : i32
    scf.if %2 {
      %cst_10 = arith.constant 0.000000e+00 : f32
      %12 = vector.broadcast %cst_10 : f32 to vector<32x96xf32>
      %c0_11 = arith.constant 0 : index
      %c0_12 = arith.constant 0 : index
      %13 = vector.load %arg7[%c0_11, %c0_12] : memref<32x96xf32, #tpu.memory_space<vmem>>, vector<32x96xf32>
      tpu.vector_store %arg7[%c0_11, %c0_12], %12 {strides = array<i32>} : memref<32x96xf32, #tpu.memory_space<vmem>>, vector<32x96xf32>,
    } else {
    }
    %c0 = arith.constant 0 : index
    %c0_1 = arith.constant 0 : index
    %3 = vector.load %arg7[%c0, %c0_1] : memref<32x96xf32, #tpu.memory_space<vmem>>, vector<32x96xf32>
    %c0_2 = arith.constant 0 : index
    %c0_3 = arith.constant 0 : index
    %4 = vector.load %arg3[%c0_2, %c0_3] : memref<32x32xbf16, #tpu.memory_space<vmem>>, vector<32x32xbf16>
    %c0_4 = arith.constant 0 : index
    %c0_5 = arith.constant 0 : index
    %5 = vector.load %arg4[%c0_4, %c0_5] : memref<32x96xbf16, #tpu.memory_space<vmem>>, vector<32x96xbf16>
    %cst = arith.constant dense<0.000000e+00> : vector<32x96xf32>
    %6 = tpu.matmul %4, %5, %cst {dimension_numbers = #tpu.dot_dimension_numbers<[1], [0], [0], [1], [0, 0, 1, 1], [], []>} : vector<32x32xbf16>, vector<32x96xbf16>, vector<32x96xf32> -> vector<32x96xf32>
    %7 = arith.addf %3, %6 : vector<32x96xf32>
    %c0_6 = arith.constant 0 : index
    %c0_7 = arith.constant 0 : index
    %8 = vector.load %arg7[%c0_6, %c0_7] : memref<32x96xf32, #tpu.memory_space<vmem>>, vector<32x96xf32>
    tpu.vector_store %arg7[%c0_6, %c0_7], %7 {strides = array<i32>} : memref<32x96xf32, #tpu.memory_space<vmem>>, vector<32x96xf32>,
    %c0_i32_8 = arith.constant 0 : i32
    %9 = arith.cmpi eq, %arg2, %c0_i32_8 : i32
    %10 = arith.extui %9 : i1 to i32
    %c0_i32_9 = arith.constant 0 : i32
    %11 = arith.cmpi ne, %10, %c0_i32_9 : i32
    scf.if %11 {
      %c0_10 = arith.constant 0 : index
      %c0_11 = arith.constant 0 : index
      %12 = vector.load %arg7[%c0_10, %c0_11] : memref<32x96xf32, #tpu.memory_space<vmem>>, vector<32x96xf32>
      %c0_12 = arith.constant 0 : index
      %c0_13 = arith.constant 0 : index
      %13 = vector.load %arg5[%c0_12, %c0_13] : memref<1x96xf32, #tpu.memory_space<vmem>>, vector<1x96xf32>
      %14 = vector.broadcast %13 : vector<1x96xf32> to vector<32x96xf32>
      %15 = arith.addf %12, %14 : vector<32x96xf32>
      %16 = arith.truncf %15 : vector<32x96xf32> to vector<32x96xbf16>
      %c0_14 = arith.constant 0 : index
      %c0_15 = arith.constant 0 : index
      %17 = vector.load %arg6[%c0_14, %c0_15] : memref<32x96xbf16, #tpu.memory_space<vmem>>, vector<32x96xbf16>
      tpu.vector_store %arg6[%c0_14, %c0_15], %16 {strides = array<i32>} : memref<32x96xbf16, #tpu.memory_space<vmem>>, vector<32x96xbf16>,
    } else {
    }
    return
  }
  func.func @transform_0(%arg0: i32, %arg1: i32, %arg2: i32) -> (i32, i32) {
    %c0_i32 = arith.constant 0 : i32
    return %arg0, %arg2 : i32, i32
  }
  func.func @transform_1(%arg0: i32, %arg1: i32, %arg2: i32) -> (i32, i32) {
    %c0_i32 = arith.constant 0 : i32
    return %arg2, %arg1 : i32, i32
  }
  func.func @transform_2(%arg0: i32, %arg1: i32, %arg2: i32) -> (i32, i32) {
    %c0_i32 = arith.constant 0 : i32
    %c0_i32_0 = arith.constant 0 : i32
    return %c0_i32, %arg1 : i32, i32
  }
  func.func @transform_3(%arg0: i32, %arg1: i32, %arg2: i32) -> (i32, i32) {
    %c0_i32 = arith.constant 0 : i32
    return %arg0, %arg1 : i32, i32
  }
}

module attributes {stable_mosaic.version = 11 : i64} {
  func.func @_mha_kernel(%arg0: i32, %arg1: i32, %arg2: memref<1x1x16x8xbf16, #tpu.memory_space<vmem>>, %arg3: memref<1x1x16x8xbf16, #tpu.memory_space<vmem>>, %arg4: memref<1x1x16x8xbf16, #tpu.memory_space<vmem>>, %arg5: memref<1x1x16x8xbf16, #tpu.memory_space<vmem>>) attributes {dimension_semantics = [#tpu.dimension_semantics<parallel>, #tpu.dimension_semantics<parallel>], iteration_bounds = array<i64: 2, 4>, scalar_prefetch = 0 : i64, scratch_operands = 0 : i64, tpu.core_type = #tpu.core_type<tc>, window_params = [{transform_indices = @transform_0, window_bounds = array<i64: 1, 1, 16, 8>}, {transform_indices = @transform_1, window_bounds = array<i64: 1, 1, 16, 8>}, {transform_indices = @transform_2, window_bounds = array<i64: 1, 1, 16, 8>}, {transform_indices = @transform_3, window_bounds = array<i64: 1, 1, 16, 8>}]} {
    %c0 = arith.constant 0 : index
    %c0_0 = arith.constant 0 : index
    %c0_1 = arith.constant 0 : index
    %c0_2 = arith.constant 0 : index
    %0 = vector.load %arg2[%c0, %c0_0, %c0_1, %c0_2] : memref<1x1x16x8xbf16, #tpu.memory_space<vmem>>, vector<1x1x16x8xbf16>
    %1 = vector.shape_cast %0 : vector<1x1x16x8xbf16> to vector<16x8xbf16>
    %c0_3 = arith.constant 0 : index
    %c0_4 = arith.constant 0 : index
    %c0_5 = arith.constant 0 : index
    %c0_6 = arith.constant 0 : index
    %2 = vector.load %arg3[%c0_3, %c0_4, %c0_5, %c0_6] : memref<1x1x16x8xbf16, #tpu.memory_space<vmem>>, vector<1x1x16x8xbf16>
    %3 = vector.shape_cast %2 : vector<1x1x16x8xbf16> to vector<16x8xbf16>
    %c0_7 = arith.constant 0 : index
    %c0_8 = arith.constant 0 : index
    %c0_9 = arith.constant 0 : index
    %c0_10 = arith.constant 0 : index
    %4 = vector.load %arg4[%c0_7, %c0_8, %c0_9, %c0_10] : memref<1x1x16x8xbf16, #tpu.memory_space<vmem>>, vector<1x1x16x8xbf16>
    %5 = vector.shape_cast %4 : vector<1x1x16x8xbf16> to vector<16x8xbf16>
    %cst = arith.constant dense<0.000000e+00> : vector<16x16xf32>
    %6 = tpu.matmul %1, %3, %cst {dimension_numbers = #tpu.dot_dimension_numbers<[1], [1], [0], [0], [0, 0, 1, 0], [], []>} : vector<16x8xbf16>, vector<16x8xbf16>, vector<16x16xf32> -> vector<16x16xf32>
    %cst_11 = arith.constant 0.353553385 : f32
    %7 = vector.broadcast %cst_11 : f32 to vector<16x16xf32>
    %8 = arith.mulf %6, %7 : vector<16x16xf32>
    %9 = tpu.iota {dimensions = array<i32: 0>} : vector<16x16xi32>
    %10 = tpu.iota {dimensions = array<i32: 1>} : vector<16x16xi32>
    %11 = arith.cmpi sgt, %10, %9 : vector<16x16xi32>
    %cst_12 = arith.constant -1.000000e+30 : f32
    %12 = vector.broadcast %cst_12 : f32 to vector<16x16xf32>
    %13 = arith.select %11, %12, %8 : vector<16x16xi1>, vector<16x16xf32>
    %cst_13 = arith.constant dense<0xFF800000> : vector<16xf32>
    %14 = vector.multi_reduction <maximumf>, %13, %cst_13 [1] : vector<16x16xf32> to vector<16xf32>
    %15 = vector.shape_cast %14 : vector<16xf32> to vector<16x1xf32>
    %16 = vector.broadcast %15 : vector<16x1xf32> to vector<16x16xf32>
    %17 = arith.subf %13, %16 : vector<16x16xf32>
    %18 = math.exp %17 : vector<16x16xf32>
    %cst_14 = arith.constant dense<0.000000e+00> : vector<16xf32>
    %19 = vector.multi_reduction <add>, %18, %cst_14 [1] : vector<16x16xf32> to vector<16xf32>
    %20 = vector.shape_cast %19 : vector<16xf32> to vector<16x1xf32>
    %21 = vector.broadcast %20 : vector<16x1xf32> to vector<16x16xf32>
    %22 = arith.divf %18, %21 : vector<16x16xf32>
    %23 = arith.truncf %22 : vector<16x16xf32> to vector<16x16xbf16>
    %cst_15 = arith.constant dense<0.000000e+00> : vector<16x8xf32>
    %24 = tpu.matmul %23, %5, %cst_15 {dimension_numbers = #tpu.dot_dimension_numbers<[1], [0], [0], [1], [0, 0, 1, 1], [], []>} : vector<16x16xbf16>, vector<16x8xbf16>, vector<16x8xf32> -> vector<16x8xf32>
    %25 = arith.truncf %24 : vector<16x8xf32> to vector<16x8xbf16>
    %c0_16 = arith.constant 0 : index
    %c0_17 = arith.constant 0 : index
    %c0_18 = arith.constant 0 : index
    %c0_19 = arith.constant 0 : index
    %26 = vector.load %arg5[%c0_16, %c0_17, %c0_18, %c0_19] : memref<1x1x16x8xbf16, #tpu.memory_space<vmem>>, vector<1x1x16x8xbf16>
    %27 = vector.shape_cast %26 : vector<1x1x16x8xbf16> to vector<16x8xbf16>
    %28 = vector.shape_cast %25 : vector<16x8xbf16> to vector<1x1x16x8xbf16>
    tpu.vector_store %arg5[%c0_16, %c0_17, %c0_18, %c0_19], %28 {strides = array<i32>} : memref<1x1x16x8xbf16, #tpu.memory_space<vmem>>, vector<1x1x16x8xbf16>,
    return
  }
  func.func @transform_0(%arg0: i32, %arg1: i32) -> (i32, i32, i32, i32) {
    %c0_i32 = arith.constant 0 : i32
    %c0_i32_0 = arith.constant 0 : i32
    %c0_i32_1 = arith.constant 0 : i32
    return %arg0, %arg1, %c0_i32, %c0_i32_0 : i32, i32, i32, i32
  }
  func.func @transform_1(%arg0: i32, %arg1: i32) -> (i32, i32, i32, i32) {
    %c0_i32 = arith.constant 0 : i32
    %c0_i32_0 = arith.constant 0 : i32
    %c0_i32_1 = arith.constant 0 : i32
    return %arg0, %arg1, %c0_i32, %c0_i32_0 : i32, i32, i32, i32
  }
  func.func @transform_2(%arg0: i32, %arg1: i32) -> (i32, i32, i32, i32) {
    %c0_i32 = arith.constant 0 : i32
    %c0_i32_0 = arith.constant 0 : i32
    %c0_i32_1 = arith.constant 0 : i32
    return %arg0, %arg1, %c0_i32, %c0_i32_0 : i32, i32, i32, i32
  }
  func.func @transform_3(%arg0: i32, %arg1: i32) -> (i32, i32, i32, i32) {
    %c0_i32 = arith.constant 0 : i32
    %c0_i32_0 = arith.constant 0 : i32
    %c0_i32_1 = arith.constant 0 : i32
    return %arg0, %arg1, %c0_i32, %c0_i32_0 : i32, i32, i32, i32
  }
}

module attributes {stable_mosaic.version = 11 : i64} {
  func.func @_matmul_kernel(%arg0: i32, %arg1: i32, %arg2: i32, %arg3: memref<32x32xbf16, #tpu.memory_space<vmem>>, %arg4: memref<32x32xbf16, #tpu.memory_space<vmem>>, %arg5: memref<1x32xf32, #tpu.memory_space<vmem>>, %arg6: memref<32x32xbf16, #tpu.memory_space<vmem>>, %arg7: memref<32x32xf32, #tpu.memory_space<vmem>>) attributes {dimension_semantics = [#tpu.dimension_semantics<parallel>, #tpu.dimension_semantics<parallel>, #tpu.dimension_semantics<arbitrary>], iteration_bounds = array<i64: 1, 1, 1>, scalar_prefetch = 0 : i64, scratch_operands = 1 : i64, tpu.core_type = #tpu.core_type<tc>, window_params = [{transform_indices = @transform_0, window_bounds = array<i64: 32, 32>}, {transform_indices = @transform_1, window_bounds = array<i64: 32, 32>}, {transform_indices = @transform_2, window_bounds = array<i64: 1, 32>}, {transform_indices = @transform_3, window_bounds = array<i64: 32, 32>}]} {
    %c0_i32 = arith.constant 0 : i32
    %0 = arith.cmpi eq, %arg2, %c0_i32 : i32
    %1 = arith.extui %0 : i1 to i32
    %c0_i32_0 = arith.constant 0 : i32
    %2 = arith.cmpi ne, %1, %c0_i32_0 : i32
    scf.if %2 {
      %cst_10 = arith.constant 0.000000e+00 : f32
      %12 = vector.broadcast %cst_10 : f32 to vector<32x32xf32>
      %c0_11 = arith.constant 0 : index
      %c0_12 = arith.constant 0 : index
      %13 = vector.load %arg7[%c0_11, %c0_12] : memref<32x32xf32, #tpu.memory_space<vmem>>, vector<32x32xf32>
      tpu.vector_store %arg7[%c0_11, %c0_12], %12 {strides = array<i32>} : memref<32x32xf32, #tpu.memory_space<vmem>>, vector<32x32xf32>,
    } else {
    }
    %c0 = arith.constant 0 : index
    %c0_1 = arith.constant 0 : index
    %3 = vector.load %arg7[%c0, %c0_1] : memref<32x32xf32, #tpu.memory_space<vmem>>, vector<32x32xf32>
    %c0_2 = arith.constant 0 : index
    %c0_3 = arith.constant 0 : index
    %4 = vector.load %arg3[%c0_2, %c0_3] : memref<32x32xbf16, #tpu.memory_space<vmem>>, vector<32x32xbf16>
    %c0_4 = arith.constant 0 : index
    %c0_5 = arith.constant 0 : index
    %5 = vector.load %arg4[%c0_4, %c0_5] : memref<32x32xbf16, #tpu.memory_space<vmem>>, vector<32x32xbf16>
    %cst = arith.constant dense<0.000000e+00> : vector<32x32xf32>
    %6 = tpu.matmul %4, %5, %cst {dimension_numbers = #tpu.dot_dimension_numbers<[1], [0], [0], [1], [0, 0, 1, 1], [], []>} : vector<32x32xbf16>, vector<32x32xbf16>, vector<32x32xf32> -> vector<32x32xf32>
    %7 = arith.addf %3, %6 : vector<32x32xf32>
    %c0_6 = arith.constant 0 : index
    %c0_7 = arith.constant 0 : index
    %8 = vector.load %arg7[%c0_6, %c0_7] : memref<32x32xf32, #tpu.memory_space<vmem>>, vector<32x32xf32>
    tpu.vector_store %arg7[%c0_6, %c0_7], %7 {strides = array<i32>} : memref<32x32xf32, #tpu.memory_space<vmem>>, vector<32x32xf32>,
    %c0_i32_8 = arith.constant 0 : i32
    %9 = arith.cmpi eq, %arg2, %c0_i32_8 : i32
    %10 = arith.extui %9 : i1 to i32
    %c0_i32_9 = arith.constant 0 : i32
    %11 = arith.cmpi ne, %10, %c0_i32_9 : i32
    scf.if %11 {
      %c0_10 = arith.constant 0 : index
      %c0_11 = arith.constant 0 : index
      %12 = vector.load %arg7[%c0_10, %c0_11] : memref<32x32xf32, #tpu.memory_space<vmem>>, vector<32x32xf32>
      %c0_12 = arith.constant 0 : index
      %c0_13 = arith.constant 0 : index
      %13 = vector.load %arg5[%c0_12, %c0_13] : memref<1x32xf32, #tpu.memory_space<vmem>>, vector<1x32xf32>
      %14 = vector.broadcast %13 : vector<1x32xf32> to vector<32x32xf32>
      %15 = arith.addf %12, %14 : vector<32x32xf32>
      %16 = arith.truncf %15 : vector<32x32xf32> to vector<32x32xbf16>
      %c0_14 = arith.constant 0 : index
      %c0_15 = arith.constant 0 : index
      %17 = vector.load %arg6[%c0_14, %c0_15] : memref<32x32xbf16, #tpu.memory_space<vmem>>, vector<32x32xbf16>
      tpu.vector_store %arg6[%c0_14, %c0_15], %16 {strides = array<i32>} : memref<32x32xbf16, #tpu.memory_space<vmem>>, vector<32x32xbf16>,
    } else {
    }
    return
  }
  func.func @transform_0(%arg0: i32, %arg1: i32, %arg2: i32) -> (i32, i32) {
    %c0_i32 = arith.constant 0 : i32
    return %arg0, %arg2 : i32, i32
  }
  func.func @transform_1(%arg0: i32, %arg1: i32, %arg2: i32) -> (i32, i32) {
    %c0_i32 = arith.constant 0 : i32
    return %arg2, %arg1 : i32, i32
  }
  func.func @transform_2(%arg0: i32, %arg1: i32, %arg2: i32) -> (i32, i32) {
    %c0_i32 = arith.constant 0 : i32
    %c0_i32_0 = arith.constant 0 : i32
    return %c0_i32, %arg1 : i32, i32
  }
  func.func @transform_3(%arg0: i32, %arg1: i32, %arg2: i32) -> (i32, i32) {
    %c0_i32 = arith.constant 0 : i32
    return %arg0, %arg1 : i32, i32
  }
}

module attributes {stable_mosaic.version = 11 : i64} {
  func.func @_layernorm_kernel(%arg0: i32, %arg1: memref<32x32xbf16, #tpu.memory_space<vmem>>, %arg2: memref<1x32xf32, #tpu.memory_space<vmem>>, %arg3: memref<1x32xf32, #tpu.memory_space<vmem>>, %arg4: memref<32x32xbf16, #tpu.memory_space<vmem>>) attributes {dimension_semantics = [#tpu.dimension_semantics<parallel>], iteration_bounds = array<i64: 1>, scalar_prefetch = 0 : i64, scratch_operands = 0 : i64, tpu.core_type = #tpu.core_type<tc>, window_params = [{transform_indices = @transform_0, window_bounds = array<i64: 32, 32>}, {pipeline_mode = #tpu.pipeline_mode<synchronous>, transform_indices = @transform_1, window_bounds = array<i64: 1, 32>}, {pipeline_mode = #tpu.pipeline_mode<synchronous>, transform_indices = @transform_2, window_bounds = array<i64: 1, 32>}, {transform_indices = @transform_3, window_bounds = array<i64: 32, 32>}]} {
    %c0 = arith.constant 0 : index
    %c0_0 = arith.constant 0 : index
    %0 = vector.load %arg1[%c0, %c0_0] : memref<32x32xbf16, #tpu.memory_space<vmem>>, vector<32x32xbf16>
    %1 = arith.extf %0 : vector<32x32xbf16> to vector<32x32xf32>
    %cst = arith.constant dense<0.000000e+00> : vector<32xf32>
    %2 = vector.multi_reduction <add>, %1, %cst [1] : vector<32x32xf32> to vector<32xf32>
    %3 = vector.shape_cast %2 : vector<32xf32> to vector<32x1xf32>
    %cst_1 = arith.constant 3.200000e+01 : f32
    %4 = vector.broadcast %cst_1 : f32 to vector<32x1xf32>
    %5 = arith.divf %3, %4 : vector<32x1xf32>
    %6 = vector.broadcast %5 : vector<32x1xf32> to vector<32x32xf32>
    %7 = arith.subf %1, %6 : vector<32x32xf32>
    %8 = arith.mulf %7, %7 : vector<32x32xf32>
    %cst_2 = arith.constant dense<0.000000e+00> : vector<32xf32>
    %9 = vector.multi_reduction <add>, %8, %cst_2 [1] : vector<32x32xf32> to vector<32xf32>
    %10 = vector.shape_cast %9 : vector<32xf32> to vector<32x1xf32>
    %cst_3 = arith.constant 3.200000e+01 : f32
    %11 = vector.broadcast %cst_3 : f32 to vector<32x1xf32>
    %12 = arith.divf %10, %11 : vector<32x1xf32>
    %13 = vector.broadcast %5 : vector<32x1xf32> to vector<32x32xf32>
    %14 = arith.subf %1, %13 : vector<32x32xf32>
    %cst_4 = arith.constant 9.99999974E-6 : f32
    %15 = vector.broadcast %cst_4 : f32 to vector<32x1xf32>
    %16 = arith.addf %12, %15 : vector<32x1xf32>
    %17 = math.rsqrt %16 : vector<32x1xf32>
    %18 = vector.broadcast %17 : vector<32x1xf32> to vector<32x32xf32>
    %19 = arith.mulf %14, %18 : vector<32x32xf32>
    %c0_5 = arith.constant 0 : index
    %c0_6 = arith.constant 0 : index
    %20 = vector.load %arg2[%c0_5, %c0_6] : memref<1x32xf32, #tpu.memory_space<vmem>>, vector<1x32xf32>
    %21 = vector.broadcast %20 : vector<1x32xf32> to vector<32x32xf32>
    %22 = arith.mulf %19, %21 : vector<32x32xf32>
    %c0_7 = arith.constant 0 : index
    %c0_8 = arith.constant 0 : index
    %23 = vector.load %arg3[%c0_7, %c0_8] : memref<1x32xf32, #tpu.memory_space<vmem>>, vector<1x32xf32>
    %24 = vector.broadcast %23 : vector<1x32xf32> to vector<32x32xf32>
    %25 = arith.addf %22, %24 : vector<32x32xf32>
    %26 = arith.truncf %25 : vector<32x32xf32> to vector<32x32xbf16>
    %c0_9 = arith.constant 0 : index
    %c0_10 = arith.constant 0 : index
    %27 = vector.load %arg4[%c0_9, %c0_10] : memref<32x32xbf16, #tpu.memory_space<vmem>>, vector<32x32xbf16>
    tpu.vector_store %arg4[%c0_9, %c0_10], %26 {strides = array<i32>} : memref<32x32xbf16, #tpu.memory_space<vmem>>, vector<32x32xbf16>,
    return
  }
  func.func @transform_0(%arg0: i32) -> (i32, i32) {
    %c0_i32 = arith.constant 0 : i32
    %c0_i32_0 = arith.constant 0 : i32
    return %arg0, %c0_i32 : i32, i32
  }
  func.func @transform_1(%arg0: i32) -> (i32, i32) {
    %c0_i32 = arith.constant 0 : i32
    %c0_i32_0 = arith.constant 0 : i32
    %c0_i32_1 = arith.constant 0 : i32
    return %c0_i32, %c0_i32_0 : i32, i32
  }
  func.func @transform_2(%arg0: i32) -> (i32, i32) {
    %c0_i32 = arith.constant 0 : i32
    %c0_i32_0 = arith.constant 0 : i32
    %c0_i32_1 = arith.constant 0 : i32
    return %c0_i32, %c0_i32_0 : i32, i32
  }
  func.func @transform_3(%arg0: i32) -> (i32, i32) {
    %c0_i32 = arith.constant 0 : i32
    %c0_i32_0 = arith.constant 0 : i32
    return %arg0, %c0_i32 : i32, i32
  }
}

module attributes {stable_mosaic.version = 11 : i64} {
  func.func @_matmul_kernel(%arg0: i32, %arg1: i32, %arg2: i32, %arg3: memref<32x32xbf16, #tpu.memory_space<vmem>>, %arg4: memref<32x32xbf16, #tpu.memory_space<vmem>>, %arg5: memref<1x32xf32, #tpu.memory_space<vmem>>, %arg6: memref<32x32xbf16, #tpu.memory_space<vmem>>, %arg7: memref<32x32xf32, #tpu.memory_space<vmem>>) attributes {dimension_semantics = [#tpu.dimension_semantics<parallel>, #tpu.dimension_semantics<parallel>, #tpu.dimension_semantics<arbitrary>], iteration_bounds = array<i64: 1, 1, 1>, scalar_prefetch = 0 : i64, scratch_operands = 1 : i64, tpu.core_type = #tpu.core_type<tc>, window_params = [{transform_indices = @transform_0, window_bounds = array<i64: 32, 32>}, {transform_indices = @transform_1, window_bounds = array<i64: 32, 32>}, {transform_indices = @transform_2, window_bounds = array<i64: 1, 32>}, {transform_indices = @transform_3, window_bounds = array<i64: 32, 32>}]} {
    %c0_i32 = arith.constant 0 : i32
    %0 = arith.cmpi eq, %arg2, %c0_i32 : i32
    %1 = arith.extui %0 : i1 to i32
    %c0_i32_0 = arith.constant 0 : i32
    %2 = arith.cmpi ne, %1, %c0_i32_0 : i32
    scf.if %2 {
      %cst_10 = arith.constant 0.000000e+00 : f32
      %12 = vector.broadcast %cst_10 : f32 to vector<32x32xf32>
      %c0_11 = arith.constant 0 : index
      %c0_12 = arith.constant 0 : index
      %13 = vector.load %arg7[%c0_11, %c0_12] : memref<32x32xf32, #tpu.memory_space<vmem>>, vector<32x32xf32>
      tpu.vector_store %arg7[%c0_11, %c0_12], %12 {strides = array<i32>} : memref<32x32xf32, #tpu.memory_space<vmem>>, vector<32x32xf32>,
    } else {
    }
    %c0 = arith.constant 0 : index
    %c0_1 = arith.constant 0 : index
    %3 = vector.load %arg7[%c0, %c0_1] : memref<32x32xf32, #tpu.memory_space<vmem>>, vector<32x32xf32>
    %c0_2 = arith.constant 0 : index
    %c0_3 = arith.constant 0 : index
    %4 = vector.load %arg3[%c0_2, %c0_3] : memref<32x32xbf16, #tpu.memory_space<vmem>>, vector<32x32xbf16>
    %c0_4 = arith.constant 0 : index
    %c0_5 = arith.constant 0 : index
    %5 = vector.load %arg4[%c0_4, %c0_5] : memref<32x32xbf16, #tpu.memory_space<vmem>>, vector<32x32xbf16>
    %cst = arith.constant dense<0.000000e+00> : vector<32x32xf32>
    %6 = tpu.matmul %4, %5, %cst {dimension_numbers = #tpu.dot_dimension_numbers<[1], [0], [0], [1], [0, 0, 1, 1], [], []>} : vector<32x32xbf16>, vector<32x32xbf16>, vector<32x32xf32> -> vector<32x32xf32>
    %7 = arith.addf %3, %6 : vector<32x32xf32>
    %c0_6 = arith.constant 0 : index
    %c0_7 = arith.constant 0 : index
    %8 = vector.load %arg7[%c0_6, %c0_7] : memref<32x32xf32, #tpu.memory_space<vmem>>, vector<32x32xf32>
    tpu.vector_store %arg7[%c0_6, %c0_7], %7 {strides = array<i32>} : memref<32x32xf32, #tpu.memory_space<vmem>>, vector<32x32xf32>,
    %c0_i32_8 = arith.constant 0 : i32
    %9 = arith.cmpi eq, %arg2, %c0_i32_8 : i32
    %10 = arith.extui %9 : i1 to i32
    %c0_i32_9 = arith.constant 0 : i32
    %11 = arith.cmpi ne, %10, %c0_i32_9 : i32
    scf.if %11 {
      %c0_10 = arith.constant 0 : index
      %c0_11 = arith.constant 0 : index
      %12 = vector.load %arg7[%c0_10, %c0_11] : memref<32x32xf32, #tpu.memory_space<vmem>>, vector<32x32xf32>
      %c0_12 = arith.constant 0 : index
      %c0_13 = arith.constant 0 : index
      %13 = vector.load %arg5[%c0_12, %c0_13] : memref<1x32xf32, #tpu.memory_space<vmem>>, vector<1x32xf32>
      %14 = vector.broadcast %13 : vector<1x32xf32> to vector<32x32xf32>
      %15 = arith.addf %12, %14 : vector<32x32xf32>
      %cst_14 = arith.constant 0.000000e+00 : f32
      %16 = vector.broadcast %cst_14 : f32 to vector<32x32xf32>
      %17 = arith.maximumf %15, %16 : vector<32x32xf32>
      %18 = arith.truncf %17 : vector<32x32xf32> to vector<32x32xbf16>
      %c0_15 = arith.constant 0 : index
      %c0_16 = arith.constant 0 : index
      %19 = vector.load %arg6[%c0_15, %c0_16] : memref<32x32xbf16, #tpu.memory_space<vmem>>, vector<32x32xbf16>
      tpu.vector_store %arg6[%c0_15, %c0_16], %18 {strides = array<i32>} : memref<32x32xbf16, #tpu.memory_space<vmem>>, vector<32x32xbf16>,
    } else {
    }
    return
  }
  func.func @transform_0(%arg0: i32, %arg1: i32, %arg2: i32) -> (i32, i32) {
    %c0_i32 = arith.constant 0 : i32
    return %arg0, %arg2 : i32, i32
  }
  func.func @transform_1(%arg0: i32, %arg1: i32, %arg2: i32) -> (i32, i32) {
    %c0_i32 = arith.constant 0 : i32
    return %arg2, %arg1 : i32, i32
  }
  func.func @transform_2(%arg0: i32, %arg1: i32, %arg2: i32) -> (i32, i32) {
    %c0_i32 = arith.constant 0 : i32
    %c0_i32_0 = arith.constant 0 : i32
    return %c0_i32, %arg1 : i32, i32
  }
  func.func @transform_3(%arg0: i32, %arg1: i32, %arg2: i32) -> (i32, i32) {
    %c0_i32 = arith.constant 0 : i32
    return %arg0, %arg1 : i32, i32
  }
}

module attributes {stable_mosaic.version = 11 : i64} {
  func.func @_matmul_kernel(%arg0: i32, %arg1: i32, %arg2: i32, %arg3: memref<32x32xbf16, #tpu.memory_space<vmem>>, %arg4: memref<32x64xbf16, #tpu.memory_space<vmem>>, %arg5: memref<1x64xf32, #tpu.memory_space<vmem>>, %arg6: memref<32x64xbf16, #tpu.memory_space<vmem>>, %arg7: memref<32x64xf32, #tpu.memory_space<vmem>>) attributes {dimension_semantics = [#tpu.dimension_semantics<parallel>, #tpu.dimension_semantics<parallel>, #tpu.dimension_semantics<arbitrary>], iteration_bounds = array<i64: 1, 1, 1>, scalar_prefetch = 0 : i64, scratch_operands = 1 : i64, tpu.core_type = #tpu.core_type<tc>, window_params = [{transform_indices = @transform_0, window_bounds = array<i64: 32, 32>}, {transform_indices = @transform_1, window_bounds = array<i64: 32, 64>}, {transform_indices = @transform_2, window_bounds = array<i64: 1, 64>}, {transform_indices = @transform_3, window_bounds = array<i64: 32, 64>}]} {
    %c0_i32 = arith.constant 0 : i32
    %0 = arith.cmpi eq, %arg2, %c0_i32 : i32
    %1 = arith.extui %0 : i1 to i32
    %c0_i32_0 = arith.constant 0 : i32
    %2 = arith.cmpi ne, %1, %c0_i32_0 : i32
    scf.if %2 {
      %cst_10 = arith.constant 0.000000e+00 : f32
      %12 = vector.broadcast %cst_10 : f32 to vector<32x64xf32>
      %c0_11 = arith.constant 0 : index
      %c0_12 = arith.constant 0 : index
      %13 = vector.load %arg7[%c0_11, %c0_12] : memref<32x64xf32, #tpu.memory_space<vmem>>, vector<32x64xf32>
      tpu.vector_store %arg7[%c0_11, %c0_12], %12 {strides = array<i32>} : memref<32x64xf32, #tpu.memory_space<vmem>>, vector<32x64xf32>,
    } else {
    }
    %c0 = arith.constant 0 : index
    %c0_1 = arith.constant 0 : index
    %3 = vector.load %arg7[%c0, %c0_1] : memref<32x64xf32, #tpu.memory_space<vmem>>, vector<32x64xf32>
    %c0_2 = arith.constant 0 : index
    %c0_3 = arith.constant 0 : index
    %4 = vector.load %arg3[%c0_2, %c0_3] : memref<32x32xbf16, #tpu.memory_space<vmem>>, vector<32x32xbf16>
    %c0_4 = arith.constant 0 : index
    %c0_5 = arith.constant 0 : index
    %5 = vector.load %arg4[%c0_4, %c0_5] : memref<32x64xbf16, #tpu.memory_space<vmem>>, vector<32x64xbf16>
    %cst = arith.constant dense<0.000000e+00> : vector<32x64xf32>
    %6 = tpu.matmul %4, %5, %cst {dimension_numbers = #tpu.dot_dimension_numbers<[1], [0], [0], [1], [0, 0, 1, 1], [], []>} : vector<32x32xbf16>, vector<32x64xbf16>, vector<32x64xf32> -> vector<32x64xf32>
    %7 = arith.addf %3, %6 : vector<32x64xf32>
    %c0_6 = arith.constant 0 : index
    %c0_7 = arith.constant 0 : index
    %8 = vector.load %arg7[%c0_6, %c0_7] : memref<32x64xf32, #tpu.memory_space<vmem>>, vector<32x64xf32>
    tpu.vector_store %arg7[%c0_6, %c0_7], %7 {strides = array<i32>} : memref<32x64xf32, #tpu.memory_space<vmem>>, vector<32x64xf32>,
    %c0_i32_8 = arith.constant 0 : i32
    %9 = arith.cmpi eq, %arg2, %c0_i32_8 : i32
    %10 = arith.extui %9 : i1 to i32
    %c0_i32_9 = arith.constant 0 : i32
    %11 = arith.cmpi ne, %10, %c0_i32_9 : i32
    scf.if %11 {
      %c0_10 = arith.constant 0 : index
      %c0_11 = arith.constant 0 : index
      %12 = vector.load %arg7[%c0_10, %c0_11] : memref<32x64xf32, #tpu.memory_space<vmem>>, vector<32x64xf32>
      %c0_12 = arith.constant 0 : index
      %c0_13 = arith.constant 0 : index
      %13 = vector.load %arg5[%c0_12, %c0_13] : memref<1x64xf32, #tpu.memory_space<vmem>>, vector<1x64xf32>
      %14 = vector.broadcast %13 : vector<1x64xf32> to vector<32x64xf32>
      %15 = arith.addf %12, %14 : vector<32x64xf32>
      %16 = arith.truncf %15 : vector<32x64xf32> to vector<32x64xbf16>
      %c0_14 = arith.constant 0 : index
      %c0_15 = arith.constant 0 : index
      %17 = vector.load %arg6[%c0_14, %c0_15] : memref<32x64xbf16, #tpu.memory_space<vmem>>, vector<32x64xbf16>
      tpu.vector_store %arg6[%c0_14, %c0_15], %16 {strides = array<i32>} : memref<32x64xbf16, #tpu.memory_space<vmem>>, vector<32x64xbf16>,
    } else {
    }
    return
  }
  func.func @transform_0(%arg0: i32, %arg1: i32, %arg2: i32) -> (i32, i32) {
    %c0_i32 = arith.constant 0 : i32
    return %arg0, %arg2 : i32, i32
  }
  func.func @transform_1(%arg0: i32, %arg1: i32, %arg2: i32) -> (i32, i32) {
    %c0_i32 = arith.constant 0 : i32
    return %arg2, %arg1 : i32, i32
  }
  func.func @transform_2(%arg0: i32, %arg1: i32, %arg2: i32) -> (i32, i32) {
    %c0_i32 = arith.constant 0 : i32
    %c0_i32_0 = arith.constant 0 : i32
    return %c0_i32, %arg1 : i32, i32
  }
  func.func @transform_3(%arg0: i32, %arg1: i32, %arg2: i32) -> (i32, i32) {
    %c0_i32 = arith.constant 0 : i32
    return %arg0, %arg1 : i32, i32
  }
}

module attributes {stable_mosaic.version = 11 : i64} {
  func.func @_slot_attn_kernel(%arg0: i32, %arg1: memref<1x16x32xbf16, #tpu.memory_space<vmem>>, %arg2: memref<1x16x32xbf16, #tpu.memory_space<vmem>>, %arg3: memref<1x3x32xbf16, #tpu.memory_space<vmem>>, %arg4: memref<1x3x32xf32, #tpu.memory_space<vmem>>, %arg5: memref<1x16x3xf32, #tpu.memory_space<vmem>>) attributes {dimension_semantics = [#tpu.dimension_semantics<parallel>], iteration_bounds = array<i64: 2>, scalar_prefetch = 0 : i64, scratch_operands = 0 : i64, tpu.core_type = #tpu.core_type<tc>, window_params = [{transform_indices = @transform_0, window_bounds = array<i64: 1, 16, 32>}, {transform_indices = @transform_1, window_bounds = array<i64: 1, 16, 32>}, {transform_indices = @transform_2, window_bounds = array<i64: 1, 3, 32>}, {transform_indices = @transform_3, window_bounds = array<i64: 1, 3, 32>}, {transform_indices = @transform_4, window_bounds = array<i64: 1, 16, 3>}]} {
    %c0 = arith.constant 0 : index
    %c0_0 = arith.constant 0 : index
    %c0_1 = arith.constant 0 : index
    %0 = vector.load %arg1[%c0, %c0_0, %c0_1] : memref<1x16x32xbf16, #tpu.memory_space<vmem>>, vector<1x16x32xbf16>
    %1 = vector.shape_cast %0 : vector<1x16x32xbf16> to vector<16x32xbf16>
    %c0_2 = arith.constant 0 : index
    %c0_3 = arith.constant 0 : index
    %c0_4 = arith.constant 0 : index
    %2 = vector.load %arg3[%c0_2, %c0_3, %c0_4] : memref<1x3x32xbf16, #tpu.memory_space<vmem>>, vector<1x3x32xbf16>
    %3 = vector.shape_cast %2 : vector<1x3x32xbf16> to vector<3x32xbf16>
    %cst = arith.constant dense<0.000000e+00> : vector<16x3xf32>
    %4 = tpu.matmul %1, %3, %cst {dimension_numbers = #tpu.dot_dimension_numbers<[1], [1], [0], [0], [0, 0, 1, 0], [], []>} : vector<16x32xbf16>, vector<3x32xbf16>, vector<16x3xf32> -> vector<16x3xf32>
    %cst_5 = arith.constant dense<0xFF800000> : vector<16xf32>
    %5 = vector.multi_reduction <maximumf>, %4, %cst_5 [1] : vector<16x3xf32> to vector<16xf32>
    %6 = vector.shape_cast %5 : vector<16xf32> to vector<16x1xf32>
    %7 = vector.broadcast %6 : vector<16x1xf32> to vector<16x3xf32>
    %8 = arith.subf %4, %7 : vector<16x3xf32>
    %9 = math.exp %8 : vector<16x3xf32>
    %cst_6 = arith.constant dense<0.000000e+00> : vector<16xf32>
    %10 = vector.multi_reduction <add>, %9, %cst_6 [1] : vector<16x3xf32> to vector<16xf32>
    %11 = vector.shape_cast %10 : vector<16xf32> to vector<16x1xf32>
    %12 = vector.broadcast %11 : vector<16x1xf32> to vector<16x3xf32>
    %13 = arith.divf %9, %12 : vector<16x3xf32>
    %cst_7 = arith.constant 9.99999993E-9 : f32
    %14 = vector.broadcast %cst_7 : f32 to vector<16x3xf32>
    %15 = arith.addf %13, %14 : vector<16x3xf32>
    %cst_8 = arith.constant dense<0.000000e+00> : vector<3xf32>
    %16 = vector.multi_reduction <add>, %15, %cst_8 [0] : vector<16x3xf32> to vector<3xf32>
    %17 = vector.shape_cast %16 : vector<3xf32> to vector<1x3xf32>
    %18 = vector.broadcast %17 : vector<1x3xf32> to vector<16x3xf32>
    %19 = arith.divf %15, %18 : vector<16x3xf32>
    %c0_9 = arith.constant 0 : index
    %c0_10 = arith.constant 0 : index
    %c0_11 = arith.constant 0 : index
    %20 = vector.load %arg2[%c0_9, %c0_10, %c0_11] : memref<1x16x32xbf16, #tpu.memory_space<vmem>>, vector<1x16x32xbf16>
    %21 = vector.shape_cast %20 : vector<1x16x32xbf16> to vector<16x32xbf16>
    %22 = arith.extf %21 : vector<16x32xbf16> to vector<16x32xf32>
    %cst_12 = arith.constant dense<0.000000e+00> : vector<3x32xf32>
    %23 = tpu.matmul %19, %22, %cst_12 {dimension_numbers = #tpu.dot_dimension_numbers<[0], [0], [1], [1], [0, 1, 1, 1], [], []>} : vector<16x3xf32>, vector<16x32xf32>, vector<3x32xf32> -> vector<3x32xf32>
    %c0_13 = arith.constant 0 : index
    %c0_14 = arith.constant 0 : index
    %c0_15 = arith.constant 0 : index
    %24 = vector.load %arg4[%c0_13, %c0_14, %c0_15] : memref<1x3x32xf32, #tpu.memory_space<vmem>>, vector<1x3x32xf32>
    %25 = vector.shape_cast %24 : vector<1x3x32xf32> to vector<3x32xf32>
    %26 = vector.shape_cast %23 : vector<3x32xf32> to vector<1x3x32xf32>
    tpu.vector_store %arg4[%c0_13, %c0_14, %c0_15], %26 {strides = array<i32>} : memref<1x3x32xf32, #tpu.memory_space<vmem>>, vector<1x3x32xf32>,
    %c0_16 = arith.constant 0 : index
    %c0_17 = arith.constant 0 : index
    %c0_18 = arith.constant 0 : index
    %27 = vector.load %arg5[%c0_16, %c0_17, %c0_18] : memref<1x16x3xf32, #tpu.memory_space<vmem>>, vector<1x16x3xf32>
    %28 = vector.shape_cast %27 : vector<1x16x3xf32> to vector<16x3xf32>
    %29 = vector.shape_cast %13 : vector<16x3xf32> to vector<1x16x3xf32>
    tpu.vector_store %arg5[%c0_16, %c0_17, %c0_18], %29 {strides = array<i32>} : memref<1x16x3xf32, #tpu.memory_space<vmem>>, vector<1x16x3xf32>,
    return
  }
  func.func @transform_0(%arg0: i32) -> (i32, i32, i32) {
    %c0_i32 = arith.constant 0 : i32
    %c0_i32_0 = arith.constant 0 : i32
    %c0_i32_1 = arith.constant 0 : i32
    return %arg0, %c0_i32, %c0_i32_0 : i32, i32, i32
  }
  func.func @transform_1(%arg0: i32) -> (i32, i32, i32) {
    %c0_i32 = arith.constant 0 : i32
    %c0_i32_0 = arith.constant 0 : i32
    %c0_i32_1 = arith.constant 0 : i32
    return %arg0, %c0_i32, %c0_i32_0 : i32, i32, i32
  }
  func.func @transform_2(%arg0: i32) -> (i32, i32, i32) {
    %c0_i32 = arith.constant 0 : i32
    %c0_i32_0 = arith.constant 0 : i32
    %c0_i32_1 = arith.constant 0 : i32
    return %arg0, %c0_i32, %c0_i32_0 : i32, i32, i32
  }
  func.func @transform_3(%arg0: i32) -> (i32, i32, i32) {
    %c0_i32 = arith.constant 0 : i32
    %c0_i32_0 = arith.constant 0 : i32
    %c0_i32_1 = arith.constant 0 : i32
    return %arg0, %c0_i32, %c0_i32_0 : i32, i32, i32
  }
  func.func @transform_4(%arg0: i32) -> (i32, i32, i32) {
    %c0_i32 = arith.constant 0 : i32
    %c0_i32_0 = arith.constant 0 : i32
    %c0_i32_1 = arith.constant 0 : i32
    return %arg0, %c0_i32, %c0_i32_0 : i32, i32, i32
  }
}

module attributes {stable_mosaic.version = 11 : i64} {
  func.func @_slot_attn_kernel(%arg0: i32, %arg1: memref<1x16x32xbf16, #tpu.memory_space<vmem>>, %arg2: memref<1x16x32xbf16, #tpu.memory_space<vmem>>, %arg3: memref<1x3x32xbf16, #tpu.memory_space<vmem>>, %arg4: memref<1x3x32xf32, #tpu.memory_space<vmem>>, %arg5: memref<1x16x3xf32, #tpu.memory_space<vmem>>) attributes {dimension_semantics = [#tpu.dimension_semantics<parallel>], iteration_bounds = array<i64: 2>, scalar_prefetch = 0 : i64, scratch_operands = 0 : i64, tpu.core_type = #tpu.core_type<tc>, window_params = [{transform_indices = @transform_0, window_bounds = array<i64: 1, 16, 32>}, {transform_indices = @transform_1, window_bounds = array<i64: 1, 16, 32>}, {transform_indices = @transform_2, window_bounds = array<i64: 1, 3, 32>}, {transform_indices = @transform_3, window_bounds = array<i64: 1, 3, 32>}, {transform_indices = @transform_4, window_bounds = array<i64: 1, 16, 3>}]} {
    %c0 = arith.constant 0 : index
    %c0_0 = arith.constant 0 : index
    %c0_1 = arith.constant 0 : index
    %0 = vector.load %arg1[%c0, %c0_0, %c0_1] : memref<1x16x32xbf16, #tpu.memory_space<vmem>>, vector<1x16x32xbf16>
    %1 = vector.shape_cast %0 : vector<1x16x32xbf16> to vector<16x32xbf16>
    %c0_2 = arith.constant 0 : index
    %c0_3 = arith.constant 0 : index
    %c0_4 = arith.constant 0 : index
    %2 = vector.load %arg3[%c0_2, %c0_3, %c0_4] : memref<1x3x32xbf16, #tpu.memory_space<vmem>>, vector<1x3x32xbf16>
    %3 = vector.shape_cast %2 : vector<1x3x32xbf16> to vector<3x32xbf16>
    %cst = arith.constant dense<0.000000e+00> : vector<16x3xf32>
    %4 = tpu.matmul %1, %3, %cst {dimension_numbers = #tpu.dot_dimension_numbers<[1], [1], [0], [0], [0, 0, 1, 0], [], []>} : vector<16x32xbf16>, vector<3x32xbf16>, vector<16x3xf32> -> vector<16x3xf32>
    %cst_5 = arith.constant dense<0xFF800000> : vector<16xf32>
    %5 = vector.multi_reduction <maximumf>, %4, %cst_5 [1] : vector<16x3xf32> to vector<16xf32>
    %6 = vector.shape_cast %5 : vector<16xf32> to vector<16x1xf32>
    %7 = vector.broadcast %6 : vector<16x1xf32> to vector<16x3xf32>
    %8 = arith.subf %4, %7 : vector<16x3xf32>
    %9 = math.exp %8 : vector<16x3xf32>
    %cst_6 = arith.constant dense<0.000000e+00> : vector<16xf32>
    %10 = vector.multi_reduction <add>, %9, %cst_6 [1] : vector<16x3xf32> to vector<16xf32>
    %11 = vector.shape_cast %10 : vector<16xf32> to vector<16x1xf32>
    %12 = vector.broadcast %11 : vector<16x1xf32> to vector<16x3xf32>
    %13 = arith.divf %9, %12 : vector<16x3xf32>
    %cst_7 = arith.constant 9.99999993E-9 : f32
    %14 = vector.broadcast %cst_7 : f32 to vector<16x3xf32>
    %15 = arith.addf %13, %14 : vector<16x3xf32>
    %cst_8 = arith.constant dense<0.000000e+00> : vector<3xf32>
    %16 = vector.multi_reduction <add>, %15, %cst_8 [0] : vector<16x3xf32> to vector<3xf32>
    %17 = vector.shape_cast %16 : vector<3xf32> to vector<1x3xf32>
    %18 = vector.broadcast %17 : vector<1x3xf32> to vector<16x3xf32>
    %19 = arith.divf %15, %18 : vector<16x3xf32>
    %c0_9 = arith.constant 0 : index
    %c0_10 = arith.constant 0 : index
    %c0_11 = arith.constant 0 : index
    %20 = vector.load %arg2[%c0_9, %c0_10, %c0_11] : memref<1x16x32xbf16, #tpu.memory_space<vmem>>, vector<1x16x32xbf16>
    %21 = vector.shape_cast %20 : vector<1x16x32xbf16> to vector<16x32xbf16>
    %22 = arith.extf %21 : vector<16x32xbf16> to vector<16x32xf32>
    %cst_12 = arith.constant dense<0.000000e+00> : vector<3x32xf32>
    %23 = tpu.matmul %19, %22, %cst_12 {dimension_numbers = #tpu.dot_dimension_numbers<[0], [0], [1], [1], [0, 1, 1, 1], [], []>} : vector<16x3xf32>, vector<16x32xf32>, vector<3x32xf32> -> vector<3x32xf32>
    %c0_13 = arith.constant 0 : index
    %c0_14 = arith.constant 0 : index
    %c0_15 = arith.constant 0 : index
    %24 = vector.load %arg4[%c0_13, %c0_14, %c0_15] : memref<1x3x32xf32, #tpu.memory_space<vmem>>, vector<1x3x32xf32>
    %25 = vector.shape_cast %24 : vector<1x3x32xf32> to vector<3x32xf32>
    %26 = vector.shape_cast %23 : vector<3x32xf32> to vector<1x3x32xf32>
    tpu.vector_store %arg4[%c0_13, %c0_14, %c0_15], %26 {strides = array<i32>} : memref<1x3x32xf32, #tpu.memory_space<vmem>>, vector<1x3x32xf32>,
    %c0_16 = arith.constant 0 : index
    %c0_17 = arith.constant 0 : index
    %c0_18 = arith.constant 0 : index
    %27 = vector.load %arg5[%c0_16, %c0_17, %c0_18] : memref<1x16x3xf32, #tpu.memory_space<vmem>>, vector<1x16x3xf32>
    %28 = vector.shape_cast %27 : vector<1x16x3xf32> to vector<16x3xf32>
    %29 = vector.shape_cast %13 : vector<16x3xf32> to vector<1x16x3xf32>
    tpu.vector_store %arg5[%c0_16, %c0_17, %c0_18], %29 {strides = array<i32>} : memref<1x16x3xf32, #tpu.memory_space<vmem>>, vector<1x16x3xf32>,
    return
  }
  func.func @transform_0(%arg0: i32) -> (i32, i32, i32) {
    %c0_i32 = arith.constant 0 : i32
    %c0_i32_0 = arith.constant 0 : i32
    %c0_i32_1 = arith.constant 0 : i32
    return %arg0, %c0_i32, %c0_i32_0 : i32, i32, i32
  }
  func.func @transform_1(%arg0: i32) -> (i32, i32, i32) {
    %c0_i32 = arith.constant 0 : i32
    %c0_i32_0 = arith.constant 0 : i32
    %c0_i32_1 = arith.constant 0 : i32
    return %arg0, %c0_i32, %c0_i32_0 : i32, i32, i32
  }
  func.func @transform_2(%arg0: i32) -> (i32, i32, i32) {
    %c0_i32 = arith.constant 0 : i32
    %c0_i32_0 = arith.constant 0 : i32
    %c0_i32_1 = arith.constant 0 : i32
    return %arg0, %c0_i32, %c0_i32_0 : i32, i32, i32
  }
  func.func @transform_3(%arg0: i32) -> (i32, i32, i32) {
    %c0_i32 = arith.constant 0 : i32
    %c0_i32_0 = arith.constant 0 : i32
    %c0_i32_1 = arith.constant 0 : i32
    return %arg0, %c0_i32, %c0_i32_0 : i32, i32, i32
  }
  func.func @transform_4(%arg0: i32) -> (i32, i32, i32) {
    %c0_i32 = arith.constant 0 : i32
    %c0_i32_0 = arith.constant 0 : i32
    %c0_i32_1 = arith.constant 0 : i32
    return %arg0, %c0_i32, %c0_i32_0 : i32, i32, i32
  }
}

module attributes {stable_mosaic.version = 11 : i64} {
  func.func @_mha_kernel(%arg0: i32, %arg1: i32, %arg2: memref<1x1x16x8xbf16, #tpu.memory_space<vmem>>, %arg3: memref<1x1x3x8xbf16, #tpu.memory_space<vmem>>, %arg4: memref<1x1x3x8xbf16, #tpu.memory_space<vmem>>, %arg5: memref<1x1x16x8xbf16, #tpu.memory_space<vmem>>) attributes {dimension_semantics = [#tpu.dimension_semantics<parallel>, #tpu.dimension_semantics<parallel>], iteration_bounds = array<i64: 2, 4>, scalar_prefetch = 0 : i64, scratch_operands = 0 : i64, tpu.core_type = #tpu.core_type<tc>, window_params = [{transform_indices = @transform_0, window_bounds = array<i64: 1, 1, 16, 8>}, {transform_indices = @transform_1, window_bounds = array<i64: 1, 1, 3, 8>}, {transform_indices = @transform_2, window_bounds = array<i64: 1, 1, 3, 8>}, {transform_indices = @transform_3, window_bounds = array<i64: 1, 1, 16, 8>}]} {
    %c0 = arith.constant 0 : index
    %c0_0 = arith.constant 0 : index
    %c0_1 = arith.constant 0 : index
    %c0_2 = arith.constant 0 : index
    %0 = vector.load %arg2[%c0, %c0_0, %c0_1, %c0_2] : memref<1x1x16x8xbf16, #tpu.memory_space<vmem>>, vector<1x1x16x8xbf16>
    %1 = vector.shape_cast %0 : vector<1x1x16x8xbf16> to vector<16x8xbf16>
    %c0_3 = arith.constant 0 : index
    %c0_4 = arith.constant 0 : index
    %c0_5 = arith.constant 0 : index
    %c0_6 = arith.constant 0 : index
    %2 = vector.load %arg3[%c0_3, %c0_4, %c0_5, %c0_6] : memref<1x1x3x8xbf16, #tpu.memory_space<vmem>>, vector<1x1x3x8xbf16>
    %3 = vector.shape_cast %2 : vector<1x1x3x8xbf16> to vector<3x8xbf16>
    %c0_7 = arith.constant 0 : index
    %c0_8 = arith.constant 0 : index
    %c0_9 = arith.constant 0 : index
    %c0_10 = arith.constant 0 : index
    %4 = vector.load %arg4[%c0_7, %c0_8, %c0_9, %c0_10] : memref<1x1x3x8xbf16, #tpu.memory_space<vmem>>, vector<1x1x3x8xbf16>
    %5 = vector.shape_cast %4 : vector<1x1x3x8xbf16> to vector<3x8xbf16>
    %cst = arith.constant dense<0.000000e+00> : vector<16x3xf32>
    %6 = tpu.matmul %1, %3, %cst {dimension_numbers = #tpu.dot_dimension_numbers<[1], [1], [0], [0], [0, 0, 1, 0], [], []>} : vector<16x8xbf16>, vector<3x8xbf16>, vector<16x3xf32> -> vector<16x3xf32>
    %cst_11 = arith.constant 0.353553385 : f32
    %7 = vector.broadcast %cst_11 : f32 to vector<16x3xf32>
    %8 = arith.mulf %6, %7 : vector<16x3xf32>
    %cst_12 = arith.constant dense<0xFF800000> : vector<16xf32>
    %9 = vector.multi_reduction <maximumf>, %8, %cst_12 [1] : vector<16x3xf32> to vector<16xf32>
    %10 = vector.shape_cast %9 : vector<16xf32> to vector<16x1xf32>
    %11 = vector.broadcast %10 : vector<16x1xf32> to vector<16x3xf32>
    %12 = arith.subf %8, %11 : vector<16x3xf32>
    %13 = math.exp %12 : vector<16x3xf32>
    %cst_13 = arith.constant dense<0.000000e+00> : vector<16xf32>
    %14 = vector.multi_reduction <add>, %13, %cst_13 [1] : vector<16x3xf32> to vector<16xf32>
    %15 = vector.shape_cast %14 : vector<16xf32> to vector<16x1xf32>
    %16 = vector.broadcast %15 : vector<16x1xf32> to vector<16x3xf32>
    %17 = arith.divf %13, %16 : vector<16x3xf32>
    %18 = arith.truncf %17 : vector<16x3xf32> to vector<16x3xbf16>
    %cst_14 = arith.constant dense<0.000000e+00> : vector<16x8xf32>
    %19 = tpu.matmul %18, %5, %cst_14 {dimension_numbers = #tpu.dot_dimension_numbers<[1], [0], [0], [1], [0, 0, 1, 1], [], []>} : vector<16x3xbf16>, vector<3x8xbf16>, vector<16x8xf32> -> vector<16x8xf32>
    %20 = arith.truncf %19 : vector<16x8xf32> to vector<16x8xbf16>
    %c0_15 = arith.constant 0 : index
    %c0_16 = arith.constant 0 : index
    %c0_17 = arith.constant 0 : index
    %c0_18 = arith.constant 0 : index
    %21 = vector.load %arg5[%c0_15, %c0_16, %c0_17, %c0_18] : memref<1x1x16x8xbf16, #tpu.memory_space<vmem>>, vector<1x1x16x8xbf16>
    %22 = vector.shape_cast %21 : vector<1x1x16x8xbf16> to vector<16x8xbf16>
    %23 = vector.shape_cast %20 : vector<16x8xbf16> to vector<1x1x16x8xbf16>
    tpu.vector_store %arg5[%c0_15, %c0_16, %c0_17, %c0_18], %23 {strides = array<i32>} : memref<1x1x16x8xbf16, #tpu.memory_space<vmem>>, vector<1x1x16x8xbf16>,
    return
  }
  func.func @transform_0(%arg0: i32, %arg1: i32) -> (i32, i32, i32, i32) {
    %c0_i32 = arith.constant 0 : i32
    %c0_i32_0 = arith.constant 0 : i32
    %c0_i32_1 = arith.constant 0 : i32
    return %arg0, %arg1, %c0_i32, %c0_i32_0 : i32, i32, i32, i32
  }
  func.func @transform_1(%arg0: i32, %arg1: i32) -> (i32, i32, i32, i32) {
    %c0_i32 = arith.constant 0 : i32
    %c0_i32_0 = arith.constant 0 : i32
    %c0_i32_1 = arith.constant 0 : i32
    return %arg0, %arg1, %c0_i32, %c0_i32_0 : i32, i32, i32, i32
  }
  func.func @transform_2(%arg0: i32, %arg1: i32) -> (i32, i32, i32, i32) {
    %c0_i32 = arith.constant 0 : i32
    %c0_i32_0 = arith.constant 0 : i32
    %c0_i32_1 = arith.constant 0 : i32
    return %arg0, %arg1, %c0_i32, %c0_i32_0 : i32, i32, i32, i32
  }
  func.func @transform_3(%arg0: i32, %arg1: i32) -> (i32, i32, i32, i32) {
    %c0_i32 = arith.constant 0 : i32
    %c0_i32_0 = arith.constant 0 : i32
    %c0_i32_1 = arith.constant 0 : i32
    return %arg0, %arg1, %c0_i32, %c0_i32_0 : i32, i32, i32, i32
  }
}

module attributes {stable_mosaic.version = 11 : i64} {
  func.func @_matmul_kernel(%arg0: i32, %arg1: i32, %arg2: i32, %arg3: memref<32x32xbf16, #tpu.memory_space<vmem>>, %arg4: memref<32x128xbf16, #tpu.memory_space<vmem>>, %arg5: memref<1x128xf32, #tpu.memory_space<vmem>>, %arg6: memref<32x128xbf16, #tpu.memory_space<vmem>>, %arg7: memref<32x128xf32, #tpu.memory_space<vmem>>) attributes {dimension_semantics = [#tpu.dimension_semantics<parallel>, #tpu.dimension_semantics<parallel>, #tpu.dimension_semantics<arbitrary>], iteration_bounds = array<i64: 1, 1, 1>, scalar_prefetch = 0 : i64, scratch_operands = 1 : i64, tpu.core_type = #tpu.core_type<tc>, window_params = [{transform_indices = @transform_0, window_bounds = array<i64: 32, 32>}, {transform_indices = @transform_1, window_bounds = array<i64: 32, 128>}, {transform_indices = @transform_2, window_bounds = array<i64: 1, 128>}, {transform_indices = @transform_3, window_bounds = array<i64: 32, 128>}]} {
    %c0_i32 = arith.constant 0 : i32
    %0 = arith.cmpi eq, %arg2, %c0_i32 : i32
    %1 = arith.extui %0 : i1 to i32
    %c0_i32_0 = arith.constant 0 : i32
    %2 = arith.cmpi ne, %1, %c0_i32_0 : i32
    scf.if %2 {
      %cst_10 = arith.constant 0.000000e+00 : f32
      %12 = vector.broadcast %cst_10 : f32 to vector<32x128xf32>
      %c0_11 = arith.constant 0 : index
      %c0_12 = arith.constant 0 : index
      %13 = vector.load %arg7[%c0_11, %c0_12] : memref<32x128xf32, #tpu.memory_space<vmem>>, vector<32x128xf32>
      tpu.vector_store %arg7[%c0_11, %c0_12], %12 {strides = array<i32>} : memref<32x128xf32, #tpu.memory_space<vmem>>, vector<32x128xf32>,
    } else {
    }
    %c0 = arith.constant 0 : index
    %c0_1 = arith.constant 0 : index
    %3 = vector.load %arg7[%c0, %c0_1] : memref<32x128xf32, #tpu.memory_space<vmem>>, vector<32x128xf32>
    %c0_2 = arith.constant 0 : index
    %c0_3 = arith.constant 0 : index
    %4 = vector.load %arg3[%c0_2, %c0_3] : memref<32x32xbf16, #tpu.memory_space<vmem>>, vector<32x32xbf16>
    %c0_4 = arith.constant 0 : index
    %c0_5 = arith.constant 0 : index
    %5 = vector.load %arg4[%c0_4, %c0_5] : memref<32x128xbf16, #tpu.memory_space<vmem>>, vector<32x128xbf16>
    %cst = arith.constant dense<0.000000e+00> : vector<32x128xf32>
    %6 = tpu.matmul %4, %5, %cst {dimension_numbers = #tpu.dot_dimension_numbers<[1], [0], [0], [1], [0, 0, 1, 1], [], []>} : vector<32x32xbf16>, vector<32x128xbf16>, vector<32x128xf32> -> vector<32x128xf32>
    %7 = arith.addf %3, %6 : vector<32x128xf32>
    %c0_6 = arith.constant 0 : index
    %c0_7 = arith.constant 0 : index
    %8 = vector.load %arg7[%c0_6, %c0_7] : memref<32x128xf32, #tpu.memory_space<vmem>>, vector<32x128xf32>
    tpu.vector_store %arg7[%c0_6, %c0_7], %7 {strides = array<i32>} : memref<32x128xf32, #tpu.memory_space<vmem>>, vector<32x128xf32>,
    %c0_i32_8 = arith.constant 0 : i32
    %9 = arith.cmpi eq, %arg2, %c0_i32_8 : i32
    %10 = arith.extui %9 : i1 to i32
    %c0_i32_9 = arith.constant 0 : i32
    %11 = arith.cmpi ne, %10, %c0_i32_9 : i32
    scf.if %11 {
      %c0_10 = arith.constant 0 : index
      %c0_11 = arith.constant 0 : index
      %12 = vector.load %arg7[%c0_10, %c0_11] : memref<32x128xf32, #tpu.memory_space<vmem>>, vector<32x128xf32>
      %c0_12 = arith.constant 0 : index
      %c0_13 = arith.constant 0 : index
      %13 = vector.load %arg5[%c0_12, %c0_13] : memref<1x128xf32, #tpu.memory_space<vmem>>, vector<1x128xf32>
      %14 = vector.broadcast %13 : vector<1x128xf32> to vector<32x128xf32>
      %15 = arith.addf %12, %14 : vector<32x128xf32>
      %cst_14 = arith.constant 0.000000e+00 : f32
      %16 = vector.broadcast %cst_14 : f32 to vector<32x128xf32>
      %17 = arith.maximumf %15, %16 : vector<32x128xf32>
      %18 = arith.truncf %17 : vector<32x128xf32> to vector<32x128xbf16>
      %c0_15 = arith.constant 0 : index
      %c0_16 = arith.constant 0 : index
      %19 = vector.load %arg6[%c0_15, %c0_16] : memref<32x128xbf16, #tpu.memory_space<vmem>>, vector<32x128xbf16>
      tpu.vector_store %arg6[%c0_15, %c0_16], %18 {strides = array<i32>} : memref<32x128xbf16, #tpu.memory_space<vmem>>, vector<32x128xbf16>,
    } else {
    }
    return
  }
  func.func @transform_0(%arg0: i32, %arg1: i32, %arg2: i32) -> (i32, i32) {
    %c0_i32 = arith.constant 0 : i32
    return %arg0, %arg2 : i32, i32
  }
  func.func @transform_1(%arg0: i32, %arg1: i32, %arg2: i32) -> (i32, i32) {
    %c0_i32 = arith.constant 0 : i32
    return %arg2, %arg1 : i32, i32
  }
  func.func @transform_2(%arg0: i32, %arg1: i32, %arg2: i32) -> (i32, i32) {
    %c0_i32 = arith.constant 0 : i32
    %c0_i32_0 = arith.constant 0 : i32
    return %c0_i32, %arg1 : i32, i32
  }
  func.func @transform_3(%arg0: i32, %arg1: i32, %arg2: i32) -> (i32, i32) {
    %c0_i32 = arith.constant 0 : i32
    return %arg0, %arg1 : i32, i32
  }
}

module attributes {stable_mosaic.version = 11 : i64} {
  func.func @_matmul_kernel(%arg0: i32, %arg1: i32, %arg2: i32, %arg3: memref<32x128xbf16, #tpu.memory_space<vmem>>, %arg4: memref<128x32xbf16, #tpu.memory_space<vmem>>, %arg5: memref<1x32xf32, #tpu.memory_space<vmem>>, %arg6: memref<32x32xbf16, #tpu.memory_space<vmem>>, %arg7: memref<32x32xf32, #tpu.memory_space<vmem>>) attributes {dimension_semantics = [#tpu.dimension_semantics<parallel>, #tpu.dimension_semantics<parallel>, #tpu.dimension_semantics<arbitrary>], iteration_bounds = array<i64: 1, 1, 1>, scalar_prefetch = 0 : i64, scratch_operands = 1 : i64, tpu.core_type = #tpu.core_type<tc>, window_params = [{transform_indices = @transform_0, window_bounds = array<i64: 32, 128>}, {transform_indices = @transform_1, window_bounds = array<i64: 128, 32>}, {transform_indices = @transform_2, window_bounds = array<i64: 1, 32>}, {transform_indices = @transform_3, window_bounds = array<i64: 32, 32>}]} {
    %c0_i32 = arith.constant 0 : i32
    %0 = arith.cmpi eq, %arg2, %c0_i32 : i32
    %1 = arith.extui %0 : i1 to i32
    %c0_i32_0 = arith.constant 0 : i32
    %2 = arith.cmpi ne, %1, %c0_i32_0 : i32
    scf.if %2 {
      %cst_10 = arith.constant 0.000000e+00 : f32
      %12 = vector.broadcast %cst_10 : f32 to vector<32x32xf32>
      %c0_11 = arith.constant 0 : index
      %c0_12 = arith.constant 0 : index
      %13 = vector.load %arg7[%c0_11, %c0_12] : memref<32x32xf32, #tpu.memory_space<vmem>>, vector<32x32xf32>
      tpu.vector_store %arg7[%c0_11, %c0_12], %12 {strides = array<i32>} : memref<32x32xf32, #tpu.memory_space<vmem>>, vector<32x32xf32>,
    } else {
    }
    %c0 = arith.constant 0 : index
    %c0_1 = arith.constant 0 : index
    %3 = vector.load %arg7[%c0, %c0_1] : memref<32x32xf32, #tpu.memory_space<vmem>>, vector<32x32xf32>
    %c0_2 = arith.constant 0 : index
    %c0_3 = arith.constant 0 : index
    %4 = vector.load %arg3[%c0_2, %c0_3] : memref<32x128xbf16, #tpu.memory_space<vmem>>, vector<32x128xbf16>
    %c0_4 = arith.constant 0 : index
    %c0_5 = arith.constant 0 : index
    %5 = vector.load %arg4[%c0_4, %c0_5] : memref<128x32xbf16, #tpu.memory_space<vmem>>, vector<128x32xbf16>
    %cst = arith.constant dense<0.000000e+00> : vector<32x32xf32>
    %6 = tpu.matmul %4, %5, %cst {dimension_numbers = #tpu.dot_dimension_numbers<[1], [0], [0], [1], [0, 0, 1, 1], [], []>} : vector<32x128xbf16>, vector<128x32xbf16>, vector<32x32xf32> -> vector<32x32xf32>
    %7 = arith.addf %3, %6 : vector<32x32xf32>
    %c0_6 = arith.constant 0 : index
    %c0_7 = arith.constant 0 : index
    %8 = vector.load %arg7[%c0_6, %c0_7] : memref<32x32xf32, #tpu.memory_space<vmem>>, vector<32x32xf32>
    tpu.vector_store %arg7[%c0_6, %c0_7], %7 {strides = array<i32>} : memref<32x32xf32, #tpu.memory_space<vmem>>, vector<32x32xf32>,
    %c0_i32_8 = arith.constant 0 : i32
    %9 = arith.cmpi eq, %arg2, %c0_i32_8 : i32
    %10 = arith.extui %9 : i1 to i32
    %c0_i32_9 = arith.constant 0 : i32
    %11 = arith.cmpi ne, %10, %c0_i32_9 : i32
    scf.if %11 {
      %c0_10 = arith.constant 0 : index
      %c0_11 = arith.constant 0 : index
      %12 = vector.load %arg7[%c0_10, %c0_11] : memref<32x32xf32, #tpu.memory_space<vmem>>, vector<32x32xf32>
      %c0_12 = arith.constant 0 : index
      %c0_13 = arith.constant 0 : index
      %13 = vector.load %arg5[%c0_12, %c0_13] : memref<1x32xf32, #tpu.memory_space<vmem>>, vector<1x32xf32>
      %14 = vector.broadcast %13 : vector<1x32xf32> to vector<32x32xf32>
      %15 = arith.addf %12, %14 : vector<32x32xf32>
      %16 = arith.truncf %15 : vector<32x32xf32> to vector<32x32xbf16>
      %c0_14 = arith.constant 0 : index
      %c0_15 = arith.constant 0 : index
      %17 = vector.load %arg6[%c0_14, %c0_15] : memref<32x32xbf16, #tpu.memory_space<vmem>>, vector<32x32xbf16>
      tpu.vector_store %arg6[%c0_14, %c0_15], %16 {strides = array<i32>} : memref<32x32xbf16, #tpu.memory_space<vmem>>, vector<32x32xbf16>,
    } else {
    }
    return
  }
  func.func @transform_0(%arg0: i32, %arg1: i32, %arg2: i32) -> (i32, i32) {
    %c0_i32 = arith.constant 0 : i32
    return %arg0, %arg2 : i32, i32
  }
  func.func @transform_1(%arg0: i32, %arg1: i32, %arg2: i32) -> (i32, i32) {
    %c0_i32 = arith.constant 0 : i32
    return %arg2, %arg1 : i32, i32
  }
  func.func @transform_2(%arg0: i32, %arg1: i32, %arg2: i32) -> (i32, i32) {
    %c0_i32 = arith.constant 0 : i32
    %c0_i32_0 = arith.constant 0 : i32
    return %c0_i32, %arg1 : i32, i32
  }
  func.func @transform_3(%arg0: i32, %arg1: i32, %arg2: i32) -> (i32, i32) {
    %c0_i32 = arith.constant 0 : i32
    return %arg0, %arg1 : i32, i32
  }
}

module attributes {stable_mosaic.version = 11 : i64} {
  func.func @_matmul_kernel(%arg0: i32, %arg1: i32, %arg2: i32, %arg3: memref<32x32xbf16, #tpu.memory_space<vmem>>, %arg4: memref<32x32xbf16, #tpu.memory_space<vmem>>, %arg5: memref<1x32xf32, #tpu.memory_space<vmem>>, %arg6: memref<32x32xf32, #tpu.memory_space<vmem>>, %arg7: memref<32x32xf32, #tpu.memory_space<vmem>>) attributes {dimension_semantics = [#tpu.dimension_semantics<parallel>, #tpu.dimension_semantics<parallel>, #tpu.dimension_semantics<arbitrary>], iteration_bounds = array<i64: 1, 1, 1>, scalar_prefetch = 0 : i64, scratch_operands = 1 : i64, tpu.core_type = #tpu.core_type<tc>, window_params = [{transform_indices = @transform_0, window_bounds = array<i64: 32, 32>}, {transform_indices = @transform_1, window_bounds = array<i64: 32, 32>}, {transform_indices = @transform_2, window_bounds = array<i64: 1, 32>}, {transform_indices = @transform_3, window_bounds = array<i64: 32, 32>}]} {
    %c0_i32 = arith.constant 0 : i32
    %0 = arith.cmpi eq, %arg2, %c0_i32 : i32
    %1 = arith.extui %0 : i1 to i32
    %c0_i32_0 = arith.constant 0 : i32
    %2 = arith.cmpi ne, %1, %c0_i32_0 : i32
    scf.if %2 {
      %cst_10 = arith.constant 0.000000e+00 : f32
      %12 = vector.broadcast %cst_10 : f32 to vector<32x32xf32>
      %c0_11 = arith.constant 0 : index
      %c0_12 = arith.constant 0 : index
      %13 = vector.load %arg7[%c0_11, %c0_12] : memref<32x32xf32, #tpu.memory_space<vmem>>, vector<32x32xf32>
      tpu.vector_store %arg7[%c0_11, %c0_12], %12 {strides = array<i32>} : memref<32x32xf32, #tpu.memory_space<vmem>>, vector<32x32xf32>,
    } else {
    }
    %c0 = arith.constant 0 : index
    %c0_1 = arith.constant 0 : index
    %3 = vector.load %arg7[%c0, %c0_1] : memref<32x32xf32, #tpu.memory_space<vmem>>, vector<32x32xf32>
    %c0_2 = arith.constant 0 : index
    %c0_3 = arith.constant 0 : index
    %4 = vector.load %arg3[%c0_2, %c0_3] : memref<32x32xbf16, #tpu.memory_space<vmem>>, vector<32x32xbf16>
    %c0_4 = arith.constant 0 : index
    %c0_5 = arith.constant 0 : index
    %5 = vector.load %arg4[%c0_4, %c0_5] : memref<32x32xbf16, #tpu.memory_space<vmem>>, vector<32x32xbf16>
    %cst = arith.constant dense<0.000000e+00> : vector<32x32xf32>
    %6 = tpu.matmul %4, %5, %cst {dimension_numbers = #tpu.dot_dimension_numbers<[1], [0], [0], [1], [0, 0, 1, 1], [], []>} : vector<32x32xbf16>, vector<32x32xbf16>, vector<32x32xf32> -> vector<32x32xf32>
    %7 = arith.addf %3, %6 : vector<32x32xf32>
    %c0_6 = arith.constant 0 : index
    %c0_7 = arith.constant 0 : index
    %8 = vector.load %arg7[%c0_6, %c0_7] : memref<32x32xf32, #tpu.memory_space<vmem>>, vector<32x32xf32>
    tpu.vector_store %arg7[%c0_6, %c0_7], %7 {strides = array<i32>} : memref<32x32xf32, #tpu.memory_space<vmem>>, vector<32x32xf32>,
    %c0_i32_8 = arith.constant 0 : i32
    %9 = arith.cmpi eq, %arg2, %c0_i32_8 : i32
    %10 = arith.extui %9 : i1 to i32
    %c0_i32_9 = arith.constant 0 : i32
    %11 = arith.cmpi ne, %10, %c0_i32_9 : i32
    scf.if %11 {
      %c0_10 = arith.constant 0 : index
      %c0_11 = arith.constant 0 : index
      %12 = vector.load %arg7[%c0_10, %c0_11] : memref<32x32xf32, #tpu.memory_space<vmem>>, vector<32x32xf32>
      %c0_12 = arith.constant 0 : index
      %c0_13 = arith.constant 0 : index
      %13 = vector.load %arg5[%c0_12, %c0_13] : memref<1x32xf32, #tpu.memory_space<vmem>>, vector<1x32xf32>
      %14 = vector.broadcast %13 : vector<1x32xf32> to vector<32x32xf32>
      %15 = arith.addf %12, %14 : vector<32x32xf32>
      %c0_14 = arith.constant 0 : index
      %c0_15 = arith.constant 0 : index
      %16 = vector.load %arg6[%c0_14, %c0_15] : memref<32x32xf32, #tpu.memory_space<vmem>>, vector<32x32xf32>
      tpu.vector_store %arg6[%c0_14, %c0_15], %15 {strides = array<i32>} : memref<32x32xf32, #tpu.memory_space<vmem>>, vector<32x32xf32>,
    } else {
    }
    return
  }
  func.func @transform_0(%arg0: i32, %arg1: i32, %arg2: i32) -> (i32, i32) {
    %c0_i32 = arith.constant 0 : i32
    return %arg0, %arg2 : i32, i32
  }
  func.func @transform_1(%arg0: i32, %arg1: i32, %arg2: i32) -> (i32, i32) {
    %c0_i32 = arith.constant 0 : i32
    return %arg2, %arg1 : i32, i32
  }
  func.func @transform_2(%arg0: i32, %arg1: i32, %arg2: i32) -> (i32, i32) {
    %c0_i32 = arith.constant 0 : i32
    %c0_i32_0 = arith.constant 0 : i32
    return %c0_i32, %arg1 : i32, i32
  }
  func.func @transform_3(%arg0: i32, %arg1: i32, %arg2: i32) -> (i32, i32) {
    %c0_i32 = arith.constant 0 : i32
    return %arg0, %arg1 : i32, i32
  }
}

</mosaic_0001>

<bundles_post_ra>
// kernel: _lambda_.39
= control target key start
LH: loop header
LB: loop body
LE: loop exit
PB: predicated region body
PF: predicated region fallthrough
CT: control target
= control target key end

     0   :  { %vm19_vm0 = vcmask 523264   ;;  %v215_v1 = vmov 0.0   ;;  %vm66_vm1 = vcmask 392192   ;;  %vm169_vm2 = vcmask 519168   ;;  %s274_s1 = inlined_call_operand.vmem [shape: bf16[48,64], index: 1, kind: input, shape index: {}]   ;;  %s275_s0 = inlined_call_operand.vmem [shape: bf16[32,48], index: 0, kind: input, shape index: {}]   ;;  %s276_s2 = inlined_call_operand.vmem [shape: f32[1,64], index: 2, kind: input, shape index: {}]   ;;  %s277_s3 = inlined_call_operand.vmem [shape: bf16[32,64], index: 3, kind: output, shape index: {}]  }
   0x1   :  { %v210_v0 = vld [vmem:[%s274_s1 + $0x10] sm:$0xff]   ;;  %22 = vst.msk [vmem:[#allocation2 + $0x10] sm:$0xff] %vm19_vm0, %v215_v1  ;;  %20 = vst.msk [vmem:[#allocation2] sm:$0xff] %vm19_vm0, %v215_v1  ;;  %v211_v2 = vld [vmem:[%s274_s1 + $0x8] sm:$0xff]  }
   0x2   :  { %21 = vst.msk [vmem:[#allocation2 + $0x8] sm:$0xff] %vm19_vm0, %v215_v1  ;;  %23 = vst.msk [vmem:[#allocation2 + $0x18] sm:$0xff] %vm19_vm0, %v215_v1  ;;  %199 = vmatprep.subr.bf16.mxu0 %v210_v0  ;;  %v213_v3 = vld [vmem:[%s275_s0] sm:$0xff]   ;;  %v214_v5 = vld [vmem:[%s275_s0 + $0x8] sm:$0xff]  }
   0x3   :  { %200 = vmatpush3.bf16.msra.mxu0 %v210_v0  ;;  %v212_v4 = vld [vmem:[%s274_s1] sm:$0xff]   ;;  %205 = vmatprep.mubr.msk.bf16.mxu0 %vm66_vm1, %v213_v3 }
   0x4   :  { %201 = vmatprep.subr.bf16.mxu0 %v211_v2  ;;  %v185_v18 = vld [vmem:[%s276_s2] ss:$0 sm:$0xff] }
   0x7   :  { %202 = vmatpush3.bf16.msra.mxu0 %v211_v2 }
   0x8   :  { %203 = vmatprep.subr.bf16.mxu0 %v212_v4  ;;  %v26_v6 = vld [vmem:[#allocation2 + $0x10] sm:$0xff]  ;;  %v24_v8 = vld [vmem:[#allocation2] sm:$0xff] }
   0x9   :  { %v27_v11 = vld [vmem:[#allocation2 + $0x18] sm:$0xff]  ;;  %v25_v14 = vld [vmem:[#allocation2 + $0x8] sm:$0xff] }
   0xb   :  { %204 = vmatpush3.bf16.msra.mxu0 %v212_v4 }
   0xe   :  { %206 = vmatmul.mubr.msk.bf16.vlgmr.msra.gmra.mxu0 %vm66_vm1, %v214_v5 }
  0xce   :  { %v207_v7 = vpop.f32.mrf.mxu0 }
  0xcf   :  { %v124_v9 = vadd.f32 %v207_v7, %v26_v6 }
  0xd0   :  { %v107_v10 = vpop.f32.mrf.mxu0 }
  0xd1   :  { %129 = vst.msk [vmem:[#allocation2 + $0x10] sm:$0xff] %vm19_vm0, %v124_v9  ;;  %v122_v12 = vadd.f32 %v107_v10, %v24_v8 }
  0xd2   :  { %v208_v13 = vpop.f32.mrf.mxu0 }
  0xd3   :  { %127 = vst.msk [vmem:[#allocation2] sm:$0xff] %vm19_vm0, %v122_v12  ;;  %v125_v15 = vadd.f32 %v208_v13, %v27_v11 }
  0xd4   :  { %v110_v16 = vpop.f32.mrf.mxu0 }
  0xd5   :  { %130 = vst.msk [vmem:[#allocation2 + $0x18] sm:$0xff] %vm19_vm0, %v125_v15  ;;  %v123_v17 = vadd.f32 %v110_v16, %v25_v14 }
  0xd7   :  { %128 = vst.msk [vmem:[#allocation2 + $0x8] sm:$0xff] %vm19_vm0, %v123_v17 }
  0xd8   :  { %v136_v19 = vld [vmem:[#allocation2 + $0x10] sm:$0xff] }
  0xd9   :  { %v147_v20 = vadd.f32 %v185_v18, %v136_v19 }
  0xda   :  { %v134_v21 = vld [vmem:[#allocation2] sm:$0xff] }
  0xdb   :  { %v151_v22 = vmax.f32 %v147_v20, 0.0  ;;  %v145_v23 = vadd.f32 %v185_v18, %v134_v21 }
  0xdc   :  { %v137_v24 = vld [vmem:[#allocation2 + $0x18] sm:$0xff] }
  0xdd   :  { %v192_v25 = vpack.c.bf16 %v151_v22, %v151_v22  ;;  %v149_v26 = vmax.f32 %v145_v23, 0.0  ;;  %v148_v27 = vadd.f32 %v185_v18, %v137_v24 }
  0xde   :  { %v135_v28 = vld [vmem:[#allocation2 + $0x8] sm:$0xff] }
  0xdf   :  { %172 = vst.msk [vmem:[%s277_s3 + $0x8] sm:$0xf] %vm169_vm2, %v192_v25  ;;  %v190_v29 = vpack.c.bf16 %v149_v26, %v149_v26  ;;  %v152_v30 = vmax.f32 %v148_v27, 0.0  ;;  %v146_v31 = vadd.f32 %v185_v18, %v135_v28 }
  0xe1   :  { %170 = vst.msk [vmem:[%s277_s3] sm:$0xf] %vm169_vm2, %v190_v29  ;;  %v193_v32 = vpack.c.bf16 %v152_v30, %v152_v30  ;;  %v150_v33 = vmax.f32 %v146_v31, 0.0 }
  0xe3   :  { %173 = vst.msk [vmem:[%s277_s3 + $0xc] sm:$0xf] %vm169_vm2, %v193_v32  ;;  %v191_v34 = vpack.c.bf16 %v150_v33, %v150_v33 }
  0xe5   :  { %171 = vst.msk [vmem:[%s277_s3 + $0x4] sm:$0xf] %vm169_vm2, %v191_v34 }

// kernel: _lambda_.40
= control target key start
LH: loop header
LB: loop body
LE: loop exit
PB: predicated region body
PF: predicated region fallthrough
CT: control target
= control target key end

     0   :  { %vm19_vm0 = vcmask 523264   ;;  %v227_v1 = vmov 0.0   ;;  %vm176_vm1 = vcmask 519168   ;;  %s291_s1 = inlined_call_operand.vmem [shape: bf16[64,64], index: 1, kind: input, shape index: {}]   ;;  %s292_s0 = inlined_call_operand.vmem [shape: bf16[32,64], index: 0, kind: input, shape index: {}]   ;;  %s293_s2 = inlined_call_operand.vmem [shape: f32[1,64], index: 2, kind: input, shape index: {}]   ;;  %s294_s3 = inlined_call_operand.vmem [shape: bf16[32,64], index: 3, kind: output, shape index: {}]  }
   0x1   :  { %v221_v0 = vld [vmem:[%s291_s1 + $0x18] sm:$0xff]   ;;  %22 = vst.msk [vmem:[#allocation2 + $0x10] sm:$0xff] %vm19_vm0, %v227_v1  ;;  %20 = vst.msk [vmem:[#allocation2] sm:$0xff] %vm19_vm0, %v227_v1  ;;  %v222_v2 = vld [vmem:[%s291_s1 + $0x10] sm:$0xff]  }
   0x2   :  { %21 = vst.msk [vmem:[#allocation2 + $0x8] sm:$0xff] %vm19_vm0, %v227_v1  ;;  %23 = vst.msk [vmem:[#allocation2 + $0x18] sm:$0xff] %vm19_vm0, %v227_v1  ;;  %208 = vmatprep.subr.bf16.mxu0 %v221_v0  ;;  %v223_v3 = vld [vmem:[%s291_s1 + $0x8] sm:$0xff]   ;;  %v225_v4 = vld [vmem:[%s292_s0] sm:$0xff]  }
   0x3   :  { %209 = vmatpush3.bf16.msra.mxu0 %v221_v0  ;;  %216 = vmatprep.mubr.msk.bf16.mxu0 %vm19_vm0, %v225_v4  ;;  %v224_v5 = vld [vmem:[%s291_s1] sm:$0xff]   ;;  %v226_v6 = vld [vmem:[%s292_s0 + $0x8] sm:$0xff]  }
   0x4   :  { %210 = vmatprep.subr.bf16.mxu0 %v222_v2  ;;  %v193_v19 = vld [vmem:[%s293_s2] ss:$0 sm:$0xff] }
   0x7   :  { %211 = vmatpush3.bf16.msra.mxu0 %v222_v2 }
   0x8   :  { %212 = vmatprep.subr.bf16.mxu0 %v223_v3  ;;  %v26_v7 = vld [vmem:[#allocation2 + $0x10] sm:$0xff]  ;;  %v24_v9 = vld [vmem:[#allocation2] sm:$0xff] }
   0x9   :  { %v27_v12 = vld [vmem:[#allocation2 + $0x18] sm:$0xff]  ;;  %v25_v15 = vld [vmem:[#allocation2 + $0x8] sm:$0xff] }
   0xb   :  { %213 = vmatpush3.bf16.msra.mxu0 %v223_v3 }
   0xc   :  { %214 = vmatprep.subr.bf16.mxu0 %v224_v5 }
   0xf   :  { %215 = vmatpush3.bf16.msra.mxu0 %v224_v5 }
  0x12   :  { %217 = vmatmul.mubr.msk.bf16.vlgmr.msra.gmra.mxu0 %vm19_vm0, %v226_v6 }
  0xd2   :  { %v218_v8 = vpop.f32.mrf.mxu0 }
  0xd3   :  { %v132_v10 = vadd.f32 %v218_v8, %v26_v7 }
  0xd4   :  { %v115_v11 = vpop.f32.mrf.mxu0 }
  0xd5   :  { %136 = vst.msk [vmem:[#allocation2 + $0x10] sm:$0xff] %vm19_vm0, %v132_v10  ;;  %v130_v13 = vadd.f32 %v115_v11, %v24_v9 }
  0xd6   :  { %v219_v14 = vpop.f32.mrf.mxu0 }
  0xd7   :  { %134 = vst.msk [vmem:[#allocation2] sm:$0xff] %vm19_vm0, %v130_v13  ;;  %v133_v16 = vadd.f32 %v219_v14, %v27_v12 }
  0xd8   :  { %v118_v17 = vpop.f32.mrf.mxu0 }
  0xd9   :  { %137 = vst.msk [vmem:[#allocation2 + $0x18] sm:$0xff] %vm19_vm0, %v133_v16  ;;  %v131_v18 = vadd.f32 %v118_v17, %v25_v15 }
  0xdb   :  { %135 = vst.msk [vmem:[#allocation2 + $0x8] sm:$0xff] %vm19_vm0, %v131_v18 }
  0xdc   :  { %v143_v20 = vld [vmem:[#allocation2 + $0x10] sm:$0xff] }
  0xdd   :  { %v154_v21 = vadd.f32 %v193_v19, %v143_v20 }
  0xde   :  { %v141_v22 = vld [vmem:[#allocation2] sm:$0xff] }
  0xdf   :  { %v158_v23 = vmax.f32 %v154_v21, 0.0  ;;  %v152_v24 = vadd.f32 %v193_v19, %v141_v22 }
  0xe0   :  { %v144_v25 = vld [vmem:[#allocation2 + $0x18] sm:$0xff] }
  0xe1   :  { %v200_v26 = vpack.c.bf16 %v158_v23, %v158_v23  ;;  %v156_v27 = vmax.f32 %v152_v24, 0.0  ;;  %v155_v28 = vadd.f32 %v193_v19, %v144_v25 }
  0xe2   :  { %v142_v29 = vld [vmem:[#allocation2 + $0x8] sm:$0xff] }
  0xe3   :  { %179 = vst.msk [vmem:[%s294_s3 + $0x8] sm:$0xf] %vm176_vm1, %v200_v26  ;;  %v198_v30 = vpack.c.bf16 %v156_v27, %v156_v27  ;;  %v159_v31 = vmax.f32 %v155_v28, 0.0  ;;  %v153_v32 = vadd.f32 %v193_v19, %v142_v29 }
  0xe5   :  { %177 = vst.msk [vmem:[%s294_s3] sm:$0xf] %vm176_vm1, %v198_v30  ;;  %v201_v33 = vpack.c.bf16 %v159_v31, %v159_v31  ;;  %v157_v34 = vmax.f32 %v153_v32, 0.0 }
  0xe7   :  { %180 = vst.msk [vmem:[%s294_s3 + $0xc] sm:$0xf] %vm176_vm1, %v201_v33  ;;  %v199_v35 = vpack.c.bf16 %v157_v34, %v157_v34 }
  0xe9   :  { %178 = vst.msk [vmem:[%s294_s3 + $0x4] sm:$0xf] %vm176_vm1, %v199_v35 }

// kernel: _lambda_.42
= control target key start
LH: loop header
LB: loop body
LE: loop exit
PB: predicated region body
PF: predicated region fallthrough
CT: control target
= control target key end

     0   :  { %vm19_vm0 = vcmask 261120   ;;  %v199_v1 = vmov 0.0   ;;  %vm74_vm1 = vcmask 523264   ;;  %s265_s1 = inlined_call_operand.vmem [shape: bf16[64,32], index: 1, kind: input, shape index: {}]   ;;  %s266_s0 = inlined_call_operand.vmem [shape: bf16[32,64], index: 0, kind: input, shape index: {}]   ;;  %s267_s2 = inlined_call_operand.vmem [shape: f32[1,32], index: 2, kind: input, shape index: {}]   ;;  %s268_s3 = inlined_call_operand.vmem [shape: f32[32,32], index: 3, kind: output, shape index: {}]  }
   0x1   :  { %v193_v0 = vld [vmem:[%s265_s1 + $0x18] sm:$0xff]   ;;  %22 = vst.msk [vmem:[#allocation2 + $0x10] sm:$0xff] %vm19_vm0, %v199_v1  ;;  %20 = vst.msk [vmem:[#allocation2] sm:$0xff] %vm19_vm0, %v199_v1  ;;  %v194_v2 = vld [vmem:[%s265_s1 + $0x10] sm:$0xff]  }
   0x2   :  { %21 = vst.msk [vmem:[#allocation2 + $0x8] sm:$0xff] %vm19_vm0, %v199_v1  ;;  %23 = vst.msk [vmem:[#allocation2 + $0x18] sm:$0xff] %vm19_vm0, %v199_v1  ;;  %180 = vmatprep.subr.bf16.mxu0 %v193_v0  ;;  %v195_v3 = vld [vmem:[%s265_s1 + $0x8] sm:$0xff]   ;;  %v197_v4 = vld [vmem:[%s266_s0] sm:$0xff]  }
   0x3   :  { %181 = vmatpush3.bf16.msra.mxu0 %v193_v0  ;;  %188 = vmatprep.mubr.msk.bf16.mxu0 %vm74_vm1, %v197_v4  ;;  %v196_v5 = vld [vmem:[%s265_s1] sm:$0xff]   ;;  %v198_v6 = vld [vmem:[%s266_s0 + $0x8] sm:$0xff]  }
   0x4   :  { %182 = vmatprep.subr.bf16.mxu0 %v194_v2  ;;  %v173_v19 = vld [vmem:[%s267_s2] ss:$0 sm:$0xff] }
   0x7   :  { %183 = vmatpush3.bf16.msra.mxu0 %v194_v2 }
   0x8   :  { %184 = vmatprep.subr.bf16.mxu0 %v195_v3  ;;  %v26_v7 = vld [vmem:[#allocation2 + $0x10] sm:$0xff]  ;;  %v24_v9 = vld [vmem:[#allocation2] sm:$0xff] }
   0x9   :  { %v27_v12 = vld [vmem:[#allocation2 + $0x18] sm:$0xff]  ;;  %v25_v15 = vld [vmem:[#allocation2 + $0x8] sm:$0xff] }
   0xb   :  { %185 = vmatpush3.bf16.msra.mxu0 %v195_v3 }
   0xc   :  { %186 = vmatprep.subr.bf16.mxu0 %v196_v5 }
   0xf   :  { %187 = vmatpush3.bf16.msra.mxu0 %v196_v5 }
  0x12   :  { %189 = vmatmul.mubr.msk.bf16.vlgmr.msra.gmra.mxu0 %vm74_vm1, %v198_v6 }
  0xd2   :  { %v190_v8 = vpop.f32.mrf.mxu0 }
  0xd3   :  { %v132_v10 = vadd.f32 %v190_v8, %v26_v7 }
  0xd4   :  { %v115_v11 = vpop.f32.mrf.mxu0 }
  0xd5   :  { %137 = vst.msk [vmem:[#allocation2 + $0x10] sm:$0xff] %vm19_vm0, %v132_v10  ;;  %v130_v13 = vadd.f32 %v115_v11, %v24_v9 }
  0xd6   :  { %v191_v14 = vpop.f32.mrf.mxu0 }
  0xd7   :  { %135 = vst.msk [vmem:[#allocation2] sm:$0xff] %vm19_vm0, %v130_v13  ;;  %v133_v16 = vadd.f32 %v191_v14, %v27_v12 }
  0xd8   :  { %v118_v17 = vpop.f32.mrf.mxu0 }
  0xd9   :  { %138 = vst.msk [vmem:[#allocation2 + $0x18] sm:$0xff] %vm19_vm0, %v133_v16  ;;  %v131_v18 = vadd.f32 %v118_v17, %v25_v15 }
  0xdb   :  { %136 = vst.msk [vmem:[#allocation2 + $0x8] sm:$0xff] %vm19_vm0, %v131_v18 }
  0xdc   :  { %v144_v20 = vld [vmem:[#allocation2 + $0x10] sm:$0xff] }
  0xdd   :  { %v155_v21 = vadd.f32 %v173_v19, %v144_v20 }
  0xde   :  { %v142_v22 = vld [vmem:[#allocation2] sm:$0xff] }
  0xdf   :  { %159 = vst.msk [vmem:[%s268_s3 + $0x10] sm:$0xff] %vm19_vm0, %v155_v21  ;;  %v153_v23 = vadd.f32 %v173_v19, %v142_v22 }
  0xe0   :  { %v145_v24 = vld [vmem:[#allocation2 + $0x18] sm:$0xff] }
  0xe1   :  { %157 = vst.msk [vmem:[%s268_s3] sm:$0xff] %vm19_vm0, %v153_v23  ;;  %v156_v25 = vadd.f32 %v173_v19, %v145_v24 }
  0xe2   :  { %v143_v26 = vld [vmem:[#allocation2 + $0x8] sm:$0xff] }
  0xe3   :  { %160 = vst.msk [vmem:[%s268_s3 + $0x18] sm:$0xff] %vm19_vm0, %v156_v25  ;;  %v154_v27 = vadd.f32 %v173_v19, %v143_v26 }
  0xe5   :  { %158 = vst.msk [vmem:[%s268_s3 + $0x8] sm:$0xff] %vm19_vm0, %v154_v27 }

// kernel: _lambda_.43
= control target key start
LH: loop header
LB: loop body
LE: loop exit
PB: predicated region body
PF: predicated region fallthrough
CT: control target
= control target key end

     0   :  { %vm19_vm0 = vcmask 523264   ;;  %v202_v1 = vmov 0.0   ;;  %vm58_vm1 = vcmask 261120   ;;  %vm161_vm2 = vcmask 519168   ;;  %s258_s1 = inlined_call_operand.vmem [shape: bf16[32,64], index: 1, kind: input, shape index: {}]   ;;  %s259_s0 = inlined_call_operand.vmem [shape: bf16[32,32], index: 0, kind: input, shape index: {}]   ;;  %s260_s2 = inlined_call_operand.vmem [shape: f32[1,64], index: 2, kind: input, shape index: {}]   ;;  %s261_s3 = inlined_call_operand.vmem [shape: bf16[32,64], index: 3, kind: output, shape index: {}]  }
   0x1   :  { %v198_v0 = vld [vmem:[%s258_s1 + $0x8] sm:$0xff]   ;;  %22 = vst.msk [vmem:[#allocation2 + $0x10] sm:$0xff] %vm19_vm0, %v202_v1  ;;  %20 = vst.msk [vmem:[#allocation2] sm:$0xff] %vm19_vm0, %v202_v1  ;;  %v199_v2 = vld [vmem:[%s258_s1] sm:$0xff]  }
   0x2   :  { %21 = vst.msk [vmem:[#allocation2 + $0x8] sm:$0xff] %vm19_vm0, %v202_v1  ;;  %23 = vst.msk [vmem:[#allocation2 + $0x18] sm:$0xff] %vm19_vm0, %v202_v1  ;;  %189 = vmatprep.subr.bf16.mxu0 %v198_v0  ;;  %v200_v3 = vld [vmem:[%s259_s0] sm:$0xff]   ;;  %v201_v4 = vld [vmem:[%s259_s0 + $0x8] sm:$0xff]  }
   0x3   :  { %190 = vmatpush3.bf16.msra.mxu0 %v198_v0  ;;  %193 = vmatprep.mubr.msk.bf16.mxu0 %vm58_vm1, %v200_v3  ;;  %v176_v17 = vld [vmem:[%s260_s2] ss:$0 sm:$0xff] }
   0x4   :  { %191 = vmatprep.subr.bf16.mxu0 %v199_v2 }
   0x7   :  { %192 = vmatpush3.bf16.msra.mxu0 %v199_v2 }
   0x8   :  { %v26_v5 = vld [vmem:[#allocation2 + $0x10] sm:$0xff]  ;;  %v24_v7 = vld [vmem:[#allocation2] sm:$0xff] }
   0x9   :  { %v27_v10 = vld [vmem:[#allocation2 + $0x18] sm:$0xff]  ;;  %v25_v13 = vld [vmem:[#allocation2 + $0x8] sm:$0xff] }
   0xa   :  { %194 = vmatmul.mubr.msk.bf16.vlgmr.msra.gmra.mxu0 %vm58_vm1, %v201_v4 }
  0xca   :  { %v195_v6 = vpop.f32.mrf.mxu0 }
  0xcb   :  { %v116_v8 = vadd.f32 %v195_v6, %v26_v5 }
  0xcc   :  { %v99_v9 = vpop.f32.mrf.mxu0 }
  0xcd   :  { %121 = vst.msk [vmem:[#allocation2 + $0x10] sm:$0xff] %vm19_vm0, %v116_v8  ;;  %v114_v11 = vadd.f32 %v99_v9, %v24_v7 }
  0xce   :  { %v196_v12 = vpop.f32.mrf.mxu0 }
  0xcf   :  { %119 = vst.msk [vmem:[#allocation2] sm:$0xff] %vm19_vm0, %v114_v11  ;;  %v117_v14 = vadd.f32 %v196_v12, %v27_v10 }
  0xd0   :  { %v102_v15 = vpop.f32.mrf.mxu0 }
  0xd1   :  { %122 = vst.msk [vmem:[#allocation2 + $0x18] sm:$0xff] %vm19_vm0, %v117_v14  ;;  %v115_v16 = vadd.f32 %v102_v15, %v25_v13 }
  0xd3   :  { %120 = vst.msk [vmem:[#allocation2 + $0x8] sm:$0xff] %vm19_vm0, %v115_v16 }
  0xd4   :  { %v128_v18 = vld [vmem:[#allocation2 + $0x10] sm:$0xff] }
  0xd5   :  { %v139_v19 = vadd.f32 %v176_v17, %v128_v18 }
  0xd6   :  { %v126_v20 = vld [vmem:[#allocation2] sm:$0xff] }
  0xd7   :  { %v143_v21 = vmax.f32 %v139_v19, 0.0  ;;  %v137_v22 = vadd.f32 %v176_v17, %v126_v20 }
  0xd8   :  { %v129_v23 = vld [vmem:[#allocation2 + $0x18] sm:$0xff] }
  0xd9   :  { %v183_v24 = vpack.c.bf16 %v143_v21, %v143_v21  ;;  %v141_v25 = vmax.f32 %v137_v22, 0.0  ;;  %v140_v26 = vadd.f32 %v176_v17, %v129_v23 }
  0xda   :  { %v127_v27 = vld [vmem:[#allocation2 + $0x8] sm:$0xff] }
  0xdb   :  { %164 = vst.msk [vmem:[%s261_s3 + $0x8] sm:$0xf] %vm161_vm2, %v183_v24  ;;  %v181_v28 = vpack.c.bf16 %v141_v25, %v141_v25  ;;  %v144_v29 = vmax.f32 %v140_v26, 0.0  ;;  %v138_v30 = vadd.f32 %v176_v17, %v127_v27 }
  0xdd   :  { %162 = vst.msk [vmem:[%s261_s3] sm:$0xf] %vm161_vm2, %v181_v28  ;;  %v184_v31 = vpack.c.bf16 %v144_v29, %v144_v29  ;;  %v142_v32 = vmax.f32 %v138_v30, 0.0 }
  0xdf   :  { %165 = vst.msk [vmem:[%s261_s3 + $0xc] sm:$0xf] %vm161_vm2, %v184_v31  ;;  %v182_v33 = vpack.c.bf16 %v142_v32, %v142_v32 }
  0xe1   :  { %163 = vst.msk [vmem:[%s261_s3 + $0x4] sm:$0xf] %vm161_vm2, %v182_v33 }

// kernel: _lambda_.44
= control target key start
LH: loop header
LB: loop body
LE: loop exit
PB: predicated region body
PF: predicated region fallthrough
CT: control target
= control target key end

     0   :  { %v287_v1 = vmov 0   ;;  %vm97_vm0 = vcmask 523264   ;;  %v186_v11 = vlaneseq  ;;  %s353_s1 = inlined_call_operand.vmem [shape: bf16[64,256], index: 1, kind: input, shape index: {}]   ;;  %s354_s0 = inlined_call_operand.vmem [shape: bf16[32,64], index: 0, kind: input, shape index: {}]   ;;  %s355_s2 = inlined_call_operand.vmem [shape: f32[1,256], index: 2, kind: input, shape index: {}]   ;;  %s356_s3 = inlined_call_operand.vmem [shape: bf16[32,256], index: 3, kind: output, shape index: {}]  }
   0x1   :  { %v273_v0 = vld [vmem:[%s353_s1 + $0x34] ss:$8 sps:$4 sm:$0xff]   ;;  %136 = vmatprep.mubr.bf16.mxu0 %v287_v1  ;;  %146 = vmatprep.mubr.bf16.mxu1 %v287_v1  ;;  %v275_v2 = vld [vmem:[%s353_s1 + $0x30] ss:$8 sps:$4 sm:$0xff]   ;;  %v276_v3 = vld [vmem:[%s353_s1 + $0x24] ss:$8 sps:$4 sm:$0xff]  }
   0x2   :  { %112 = vmatprep.subr.bf16.mxu0 %v273_v0  ;;  %264 = vmatprep.subr.bf16.mxu1 %v273_v0  ;;  %v278_v4 = vld [vmem:[%s353_s1 + $0x20] ss:$8 sps:$4 sm:$0xff]   ;;  %v279_v5 = vld [vmem:[%s353_s1 + $0x14] ss:$8 sps:$4 sm:$0xff]   ;;  %v281_v6 = vld [vmem:[%s353_s1 + $0x10] ss:$8 sps:$4 sm:$0xff]  }
   0x3   :  { %113 = vmatpush1.bf16.msra.mxu0 %v275_v2  ;;  %268 = vmatpush1.bf16.msra.mxu1 %v275_v2  ;;  %v282_v7 = vld [vmem:[%s353_s1 + $0x4] ss:$8 sps:$4 sm:$0xff]   ;;  %v284_v8 = vld [vmem:[%s353_s1] ss:$8 sps:$4 sm:$0xff]   ;;  %v187_v12 = vshrl.u32 %v186_v11, 7 }
   0x4   :  { %114 = vmatprep.subr.bf16.mxu0 %v276_v3  ;;  %265 = vmatprep.subr.bf16.mxu1 %v276_v3  ;;  %v285_v9 = vld [vmem:[%s354_s0] sm:$0xff]   ;;  %v286_v10 = vld [vmem:[%s354_s0 + $0x8] sm:$0xff]  }
   0x5   :  { %v188_v13 = vsub.s32 0, %v187_v12  ;;  %v184_v14 = vld [vmem:[%s355_s2] sm:$0x3]  ;;  %v192_v15 = vsub.s32 1, %v187_v12 }
   0x7   :  { %115 = vmatpush1.bf16.msra.mxu0 %v278_v4  ;;  %269 = vmatpush1.bf16.msra.mxu1 %v278_v4  ;;  %v189_v16 = vrot.slane %v184_v14, %v188_v13  ;;  %v193_v17 = vrot.slane %v184_v14, %v192_v15 }
   0x8   :  { %116 = vmatprep.subr.bf16.mxu0 %v279_v5  ;;  %266 = vmatprep.subr.bf16.mxu1 %v279_v5 }
   0xb   :  { %117 = vmatpush1.bf16.msra.mxu0 %v281_v6  ;;  %270 = vmatpush1.bf16.msra.mxu1 %v281_v6 }
   0xc   :  { %118 = vmatprep.subr.bf16.mxu0 %v282_v7  ;;  %267 = vmatprep.subr.bf16.mxu1 %v282_v7 }
   0xf   :  { %119 = vmatpush1.bf16.msra.mxu0 %v284_v8  ;;  %271 = vmatpush1.bf16.msra.mxu1 %v284_v8 }
  0x12   :  { %254 = vmatmul.mubr.msk.bf16.vlgmr.msra.gmra.mxu0 %vm97_vm0, %v285_v9  ;;  %255 = vmatmul.mubr.msk.bf16.vlgmr.msra.gmra.mxu1 %vm97_vm0, %v286_v10 }
  0xd2   :  { %v138_v18 = vpop.f32.mrf.mxu0  ;;  %v148_v19 = vpop.f32.mrf.mxu1 }
  0xd3   :  { %v196_v20 = vadd.f32 %v189_v16, %v138_v18  ;;  %v200_v21 = vadd.f32 %v189_v16, %v148_v19 }
  0xd4   :  { %v140_v22 = vpop.f32.mrf.mxu0  ;;  %v150_v23 = vpop.f32.mrf.mxu1 }
  0xd5   :  { %v197_v24 = vadd.f32 %v193_v17, %v140_v22  ;;  %v201_v25 = vadd.f32 %v193_v17, %v150_v23  ;;  %v204_v28 = vmax.f32 %v196_v20, 0.0  ;;  %v208_v29 = vmax.f32 %v200_v21, 0.0 }
  0xd6   :  { %v142_v26 = vpop.f32.mrf.mxu0  ;;  %v152_v27 = vpop.f32.mrf.mxu1 }
  0xd7   :  { %v205_v30 = vmax.f32 %v197_v24, 0.0  ;;  %v209_v31 = vmax.f32 %v201_v25, 0.0  ;;  %v198_v32 = vadd.f32 %v189_v16, %v142_v26  ;;  %v202_v33 = vadd.f32 %v189_v16, %v152_v27 }
  0xd8   :  { %v144_v34 = vpop.f32.mrf.mxu0  ;;  %v154_v35 = vpop.f32.mrf.mxu1 }
  0xd9   :  { %v260_v36 = vpack.c.bf16 %v205_v30, %v204_v28  ;;  %v262_v37 = vpack.c.bf16 %v209_v31, %v208_v29  ;;  %v199_v38 = vadd.f32 %v193_v17, %v144_v34  ;;  %v203_v39 = vadd.f32 %v193_v17, %v154_v35 }
  0xda   :  { %v206_v40 = vmax.f32 %v198_v32, 0.0  ;;  %v210_v41 = vmax.f32 %v202_v33, 0.0 }
  0xdb   :  { %236 = vst [vmem:[%s356_s3] sm:$0xff] %v260_v36  ;;  %238 = vst [vmem:[%s356_s3 + $0x10] sm:$0xff] %v262_v37  ;;  %v207_v42 = vmax.f32 %v199_v38, 0.0  ;;  %v211_v43 = vmax.f32 %v203_v39, 0.0 }
  0xdd   :  { %v261_v44 = vpack.c.bf16 %v207_v42, %v206_v40  ;;  %v263_v45 = vpack.c.bf16 %v211_v43, %v210_v41 }
  0xdf   :  { %237 = vst [vmem:[%s356_s3 + $0x8] sm:$0xff] %v261_v44  ;;  %239 = vst [vmem:[%s356_s3 + $0x18] sm:$0xff] %v263_v45 }

// kernel: _lambda_.45
= control target key start
LH: loop header
LB: loop body
LE: loop exit
PB: predicated region body
PF: predicated region fallthrough
CT: control target
= control target key end

     0   :  { %v701_v1 = vmov 0   ;;  %vm187_vm0 = vcmask 523264   ;;  %v426_v17 = vlaneseq  ;;  %s865_s1 = inlined_call_operand.vmem [shape: bf16[64,256], index: 1, kind: input, shape index: {}]   ;;  %s866_s0 = inlined_call_operand.vmem [shape: bf16[128,64], index: 0, kind: input, shape index: {}]   ;;  %s867_s2 = inlined_call_operand.vmem [shape: f32[1,256], index: 2, kind: input, shape index: {}]   ;;  %s868_s3 = inlined_call_operand.vmem [shape: bf16[128,256], index: 3, kind: output, shape index: {}]  }
   0x1   :  { %v681_v0 = vld [vmem:[%s865_s1 + $0x34] ss:$8 sps:$4 sm:$0xff]   ;;  %244 = vmatprep.mubr.bf16.mxu0 %v701_v1  ;;  %284 = vmatprep.mubr.bf16.mxu1 %v701_v1  ;;  %v683_v2 = vld [vmem:[%s865_s1 + $0x30] ss:$8 sps:$4 sm:$0xff]   ;;  %v684_v3 = vld [vmem:[%s865_s1 + $0x24] ss:$8 sps:$4 sm:$0xff]  }
   0x2   :  { %220 = vmatprep.subr.bf16.mxu0 %v681_v0  ;;  %672 = vmatprep.subr.bf16.mxu1 %v681_v0  ;;  %v686_v4 = vld [vmem:[%s865_s1 + $0x20] ss:$8 sps:$4 sm:$0xff]   ;;  %v687_v5 = vld [vmem:[%s865_s1 + $0x14] ss:$8 sps:$4 sm:$0xff]   ;;  %v689_v6 = vld [vmem:[%s865_s1 + $0x10] ss:$8 sps:$4 sm:$0xff]  }
   0x3   :  { %221 = vmatpush1.bf16.msra.mxu0 %v683_v2  ;;  %676 = vmatpush1.bf16.msra.mxu1 %v683_v2  ;;  %v690_v7 = vld [vmem:[%s865_s1 + $0x4] ss:$8 sps:$4 sm:$0xff]   ;;  %v692_v8 = vld [vmem:[%s865_s1] ss:$8 sps:$4 sm:$0xff]   ;;  %v697_v13 = vld [vmem:[%s866_s0 + $0x10] sm:$0xff]   ;;  %v427_v18 = vshrl.u32 %v426_v17, 7 }
   0x4   :  { %222 = vmatprep.subr.bf16.mxu0 %v684_v3  ;;  %673 = vmatprep.subr.bf16.mxu1 %v684_v3  ;;  %v693_v9 = vld [vmem:[%s866_s0] sm:$0xff]   ;;  %v695_v11 = vld [vmem:[%s866_s0 + $0x8] sm:$0xff]   ;;  %v698_v14 = vld [vmem:[%s866_s0 + $0x30] sm:$0xff]  }
   0x5   :  { %v694_v10 = vld [vmem:[%s866_s0 + $0x20] sm:$0xff]   ;;  %v696_v12 = vld [vmem:[%s866_s0 + $0x28] sm:$0xff]   ;;  %v699_v15 = vld [vmem:[%s866_s0 + $0x18] sm:$0xff]   ;;  %v428_v19 = vsub.s32 0, %v427_v18  ;;  %v432_v21 = vsub.s32 1, %v427_v18 }
   0x6   :  { %v700_v16 = vld [vmem:[%s866_s0 + $0x38] sm:$0xff]   ;;  %v424_v20 = vld [vmem:[%s867_s2] sm:$0x3] }
   0x7   :  { %223 = vmatpush1.bf16.msra.mxu0 %v686_v4  ;;  %677 = vmatpush1.bf16.msra.mxu1 %v686_v4  ;;  %v781_v22 = vrot.slane %v424_v20, %v428_v19  ;;  %v783_v23 = vrot.slane %v424_v20, %v432_v21 }
   0x8   :  { %224 = vmatprep.subr.bf16.mxu0 %v687_v5  ;;  %674 = vmatprep.subr.bf16.mxu1 %v687_v5 }
   0xb   :  { %225 = vmatpush1.bf16.msra.mxu0 %v689_v6  ;;  %678 = vmatpush1.bf16.msra.mxu1 %v689_v6 }
   0xc   :  { %226 = vmatprep.subr.bf16.mxu0 %v690_v7  ;;  %675 = vmatprep.subr.bf16.mxu1 %v690_v7 }
   0xf   :  { %227 = vmatpush1.bf16.msra.mxu0 %v692_v8  ;;  %679 = vmatpush1.bf16.msra.mxu1 %v692_v8 }
  0x12   :  { %632 = vmatmul.mubr.msk.bf16.vlgmr.msra.gmra.mxu0 %vm187_vm0, %v693_v9  ;;  %636 = vmatmul.mubr.msk.bf16.vlgmr.msra.gmra.mxu1 %vm187_vm0, %v694_v10 }
  0x13   :  { %254 = vmatprep.mubr.bf16.mxu0 %v701_v1  ;;  %294 = vmatprep.mubr.bf16.mxu1 %v701_v1 }
  0x1a   :  { %633 = vmatmul.mubr.msk.bf16.gmra.mxu0 %vm187_vm0, %v695_v11  ;;  %637 = vmatmul.mubr.msk.bf16.gmra.mxu1 %vm187_vm0, %v696_v12 }
  0x1b   :  { %264 = vmatprep.mubr.bf16.mxu0 %v701_v1  ;;  %304 = vmatprep.mubr.bf16.mxu1 %v701_v1 }
  0x22   :  { %634 = vmatmul.mubr.msk.bf16.gmra.mxu0 %vm187_vm0, %v697_v13  ;;  %638 = vmatmul.mubr.msk.bf16.gmra.mxu1 %vm187_vm0, %v698_v14 }
  0x23   :  { %274 = vmatprep.mubr.bf16.mxu0 %v701_v1  ;;  %314 = vmatprep.mubr.bf16.mxu1 %v701_v1 }
  0x2a   :  { %635 = vmatmul.mubr.msk.bf16.gmra.mxu0 %vm187_vm0, %v699_v15  ;;  %639 = vmatmul.mubr.msk.bf16.gmra.mxu1 %vm187_vm0, %v700_v16 }
  0xd2   :  { %v246_v24 = vpop.f32.mrf.mxu0  ;;  %v286_v25 = vpop.f32.mrf.mxu1 }
  0xd3   :  { %v436_v26 = vadd.f32 %v781_v22, %v246_v24  ;;  %v452_v27 = vadd.f32 %v781_v22, %v286_v25 }
  0xd4   :  { %v248_v28 = vpop.f32.mrf.mxu0  ;;  %v288_v29 = vpop.f32.mrf.mxu1 }
  0xd5   :  { %v437_v30 = vadd.f32 %v783_v23, %v248_v28  ;;  %v453_v31 = vadd.f32 %v783_v23, %v288_v29  ;;  %v468_v34 = vmax.f32 %v436_v26, 0.0  ;;  %v484_v35 = vmax.f32 %v452_v27, 0.0 }
  0xd6   :  { %v250_v32 = vpop.f32.mrf.mxu0  ;;  %v290_v33 = vpop.f32.mrf.mxu1 }
  0xd7   :  { %v469_v36 = vmax.f32 %v437_v30, 0.0  ;;  %v485_v37 = vmax.f32 %v453_v31, 0.0  ;;  %v438_v38 = vadd.f32 %v781_v22, %v250_v32  ;;  %v454_v39 = vadd.f32 %v781_v22, %v290_v33 }
  0xd8   :  { %v252_v40 = vpop.f32.mrf.mxu0  ;;  %v292_v41 = vpop.f32.mrf.mxu1 }
  0xd9   :  { %v656_v42 = vpack.c.bf16 %v469_v36, %v468_v34  ;;  %v664_v43 = vpack.c.bf16 %v485_v37, %v484_v35  ;;  %v439_v44 = vadd.f32 %v783_v23, %v252_v40  ;;  %v455_v45 = vadd.f32 %v783_v23, %v292_v41 }
  0xda   :  { %v256_v46 = vpop.f32.mrf.mxu0  ;;  %v296_v47 = vpop.f32.mrf.mxu1  ;;  %v470_v50 = vmax.f32 %v438_v38, 0.0  ;;  %v486_v51 = vmax.f32 %v454_v39, 0.0 }
  0xdb   :  { %596 = vst [vmem:[%s868_s3] sm:$0xff] %v656_v42  ;;  %604 = vst [vmem:[%s868_s3 + $0x40] sm:$0xff] %v664_v43  ;;  %v440_v48 = vadd.f32 %v781_v22, %v256_v46  ;;  %v456_v49 = vadd.f32 %v781_v22, %v296_v47  ;;  %v471_v52 = vmax.f32 %v439_v44, 0.0  ;;  %v487_v53 = vmax.f32 %v455_v45, 0.0 }
  0xdc   :  { %v258_v54 = vpop.f32.mrf.mxu0  ;;  %v298_v55 = vpop.f32.mrf.mxu1 }
  0xdd   :  { %v441_v56 = vadd.f32 %v783_v23, %v258_v54  ;;  %v457_v57 = vadd.f32 %v783_v23, %v298_v55  ;;  %v657_v58 = vpack.c.bf16 %v471_v52, %v470_v50  ;;  %v665_v59 = vpack.c.bf16 %v487_v53, %v486_v51 }
  0xde   :  { %v260_v60 = vpop.f32.mrf.mxu0  ;;  %v300_v61 = vpop.f32.mrf.mxu1  ;;  %v472_v62 = vmax.f32 %v440_v48, 0.0  ;;  %v488_v63 = vmax.f32 %v456_v49, 0.0 }
  0xdf   :  { %v473_v0 = vmax.f32 %v441_v56, 0.0  ;;  %v489_v1 = vmax.f32 %v457_v57, 0.0  ;;  %597 = vst [vmem:[%s868_s3 + $0x8] sm:$0xff] %v657_v58  ;;  %605 = vst [vmem:[%s868_s3 + $0x48] sm:$0xff] %v665_v59  ;;  %v442_v2 = vadd.f32 %v781_v22, %v260_v60  ;;  %v458_v3 = vadd.f32 %v781_v22, %v300_v61 }
  0xe0   :  { %v262_v4 = vpop.f32.mrf.mxu0  ;;  %v302_v5 = vpop.f32.mrf.mxu1 }
  0xe1   :  { %v658_v6 = vpack.c.bf16 %v473_v0, %v472_v62  ;;  %v666_v7 = vpack.c.bf16 %v489_v1, %v488_v63  ;;  %v443_v8 = vadd.f32 %v783_v23, %v262_v4  ;;  %v459_v9 = vadd.f32 %v783_v23, %v302_v5 }
  0xe2   :  { %v266_v10 = vpop.f32.mrf.mxu0  ;;  %v306_v11 = vpop.f32.mrf.mxu1  ;;  %v474_v14 = vmax.f32 %v442_v2, 0.0  ;;  %v490_v15 = vmax.f32 %v458_v3, 0.0 }
  0xe3   :  { %598 = vst [vmem:[%s868_s3 + $0x10] sm:$0xff] %v658_v6  ;;  %606 = vst [vmem:[%s868_s3 + $0x50] sm:$0xff] %v666_v7  ;;  %v444_v12 = vadd.f32 %v781_v22, %v266_v10  ;;  %v460_v13 = vadd.f32 %v781_v22, %v306_v11  ;;  %v475_v16 = vmax.f32 %v443_v8, 0.0  ;;  %v491_v17 = vmax.f32 %v459_v9, 0.0 }
  0xe4   :  { %v268_v18 = vpop.f32.mrf.mxu0  ;;  %v308_v19 = vpop.f32.mrf.mxu1 }
  0xe5   :  { %v445_v20 = vadd.f32 %v783_v23, %v268_v18  ;;  %v461_v21 = vadd.f32 %v783_v23, %v308_v19  ;;  %v659_v24 = vpack.c.bf16 %v475_v16, %v474_v14  ;;  %v667_v25 = vpack.c.bf16 %v491_v17, %v490_v15 }
  0xe6   :  { %v270_v26 = vpop.f32.mrf.mxu0  ;;  %v310_v27 = vpop.f32.mrf.mxu1  ;;  %v476_v28 = vmax.f32 %v444_v12, 0.0  ;;  %v492_v29 = vmax.f32 %v460_v13, 0.0 }
  0xe7   :  { %v477_v30 = vmax.f32 %v445_v20, 0.0  ;;  %v493_v31 = vmax.f32 %v461_v21, 0.0  ;;  %599 = vst [vmem:[%s868_s3 + $0x18] sm:$0xff] %v659_v24  ;;  %607 = vst [vmem:[%s868_s3 + $0x58] sm:$0xff] %v667_v25  ;;  %v446_v32 = vadd.f32 %v781_v22, %v270_v26  ;;  %v462_v33 = vadd.f32 %v781_v22, %v310_v27 }
  0xe8   :  { %v272_v34 = vpop.f32.mrf.mxu0  ;;  %v312_v35 = vpop.f32.mrf.mxu1 }
  0xe9   :  { %v660_v36 = vpack.c.bf16 %v477_v30, %v476_v28  ;;  %v668_v37 = vpack.c.bf16 %v493_v31, %v492_v29  ;;  %v447_v38 = vadd.f32 %v783_v23, %v272_v34  ;;  %v463_v39 = vadd.f32 %v783_v23, %v312_v35 }
  0xea   :  { %v276_v40 = vpop.f32.mrf.mxu0  ;;  %v316_v41 = vpop.f32.mrf.mxu1  ;;  %v478_v44 = vmax.f32 %v446_v32, 0.0  ;;  %v494_v45 = vmax.f32 %v462_v33, 0.0 }
  0xeb   :  { %600 = vst [vmem:[%s868_s3 + $0x20] sm:$0xff] %v660_v36  ;;  %608 = vst [vmem:[%s868_s3 + $0x60] sm:$0xff] %v668_v37  ;;  %v448_v42 = vadd.f32 %v781_v22, %v276_v40  ;;  %v464_v43 = vadd.f32 %v781_v22, %v316_v41  ;;  %v479_v46 = vmax.f32 %v447_v38, 0.0  ;;  %v495_v47 = vmax.f32 %v463_v39, 0.0 }
  0xec   :  { %v278_v48 = vpop.f32.mrf.mxu0  ;;  %v318_v49 = vpop.f32.mrf.mxu1 }
  0xed   :  { %v449_v50 = vadd.f32 %v783_v23, %v278_v48  ;;  %v465_v51 = vadd.f32 %v783_v23, %v318_v49  ;;  %v661_v52 = vpack.c.bf16 %v479_v46, %v478_v44  ;;  %v669_v53 = vpack.c.bf16 %v495_v47, %v494_v45 }
  0xee   :  { %v280_v54 = vpop.f32.mrf.mxu0  ;;  %v320_v55 = vpop.f32.mrf.mxu1  ;;  %v480_v56 = vmax.f32 %v448_v42, 0.0  ;;  %v496_v57 = vmax.f32 %v464_v43, 0.0 }
  0xef   :  { %v481_v58 = vmax.f32 %v449_v50, 0.0  ;;  %v497_v59 = vmax.f32 %v465_v51, 0.0  ;;  %601 = vst [vmem:[%s868_s3 + $0x28] sm:$0xff] %v661_v52  ;;  %609 = vst [vmem:[%s868_s3 + $0x68] sm:$0xff] %v669_v53  ;;  %v450_v60 = vadd.f32 %v781_v22, %v280_v54  ;;  %v466_v61 = vadd.f32 %v781_v22, %v320_v55 }
  0xf0   :  { %v282_v62 = vpop.f32.mrf.mxu0  ;;  %v322_v63 = vpop.f32.mrf.mxu1 }
  0xf1   :  { %v662_v0 = vpack.c.bf16 %v481_v58, %v480_v56  ;;  %v670_v1 = vpack.c.bf16 %v497_v59, %v496_v57  ;;  %v451_v2 = vadd.f32 %v783_v23, %v282_v62  ;;  %v467_v3 = vadd.f32 %v783_v23, %v322_v63 }
  0xf2   :  { %v482_v4 = vmax.f32 %v450_v60, 0.0  ;;  %v498_v5 = vmax.f32 %v466_v61, 0.0 }
  0xf3   :  { %602 = vst [vmem:[%s868_s3 + $0x30] sm:$0xff] %v662_v0  ;;  %610 = vst [vmem:[%s868_s3 + $0x70] sm:$0xff] %v670_v1  ;;  %v483_v6 = vmax.f32 %v451_v2, 0.0  ;;  %v499_v22 = vmax.f32 %v467_v3, 0.0 }
  0xf5   :  { %v663_v7 = vpack.c.bf16 %v483_v6, %v482_v4  ;;  %v671_v8 = vpack.c.bf16 %v499_v22, %v498_v5 }
  0xf7   :  { %603 = vst [vmem:[%s868_s3 + $0x38] sm:$0xff] %v663_v7  ;;  %611 = vst [vmem:[%s868_s3 + $0x78] sm:$0xff] %v671_v8 }

// kernel: _lambda_.46
= control target key start
LH: loop header
LB: loop body
LE: loop exit
PB: predicated region body
PF: predicated region fallthrough
CT: control target
= control target key end

     0   :  { %s1173_s12 = smov 0   ;;  %s1175_s13 = smov 0   ;;  %s1425_s0 = inlined_call_operand.vmem [shape: bf16[512,64], index: 0, kind: input, shape index: {}]   ;;  %s1426_s1 = inlined_call_operand.vmem [shape: bf16[64,3], index: 1, kind: input, shape index: {}]   ;;  %s1427_s2 = inlined_call_operand.vmem [shape: f32[1,3], index: 2, kind: input, shape index: {}]   ;;  %s1428_s3 = inlined_call_operand.vmem [shape: f32[512,3], index: 3, kind: output, shape index: {}]  }
   0x1   :  { %s1177_s14 = smov 0  }
   0x2 LB: > { %s32_s15 = sadd.s32 1, %s1146_s13  ;;  %p971_p0 = scmp.ge.s32.totalorder %s1150_s14, 1  ;;  %s1150_s14 = sphi %s1177_s14, %s13_s14   ;;  %s1146_s13 = sphi %s1175_s13, %s1430_s13   ;;  %s1142_s12 = sphi %s1173_s12, %s1429_s12  }
   0x3   : > { %p34_p1 = scmp.ge.s32.totalorder %s32_s15, 2  ;;  %p188_p2 = scmp.lt.s32.totalorder %s1150_s14, 3 }
   0x5   : > { %s1432_s15 = smov (%p34_p1, %s32_s15), 0  ;;  %p189_p3 = pnand %p971_p0, %p188_p2 }
   0x6   : > { %s972_s18 = sshll.u32 (!%p189_p3), %s1142_s12, 5 }
   0x7   : > { %192 = sbr.rel (%p189_p3) target bundleno = 266 (0x10a), region = 32  ;;  %p230_p4 = scmp.lt.s32.totalorder (!%p189_p3), %s972_s18, 63 }
   0xc   : > { %v1108_v0 = vld [vmem:[%s1426_s1 + $0x18] sm:$0xff]   ;;  %v1109_v1 = vld [vmem:[%s1426_s1 + $0x10] sm:$0xff]   ;;  %s1434_s18 = smov (!%p230_p4, %s972_s18), 63  ;;  %v1110_v2 = vld [vmem:[%s1426_s1 + $0x8] sm:$0xff]   ;;  %vm264_vm0 = vcmask 23552   ;;  %v1152_v3 = vmov 0.0  }
   0xd   : > { %1035 = vmatprep.subr.bf16.mxu0 %v1108_v0  ;;  %1075 = vmatprep.subr.bf16.mxu1 %v1108_v0  ;;  %s973_s23 = sshll.u32 %s1434_s18, 2  ;;  %267 = vst.msk [vmem:[#allocation2 + $0x10] sm:$0xff] %vm264_vm0, %v1152_v3  ;;  %265 = vst.msk [vmem:[#allocation2] sm:$0xff] %vm264_vm0, %v1152_v3  ;;  %v1111_v4 = vld [vmem:[%s1426_s1] sm:$0xff]   ;;  %vm473_vm1 = vcmask 523264   ;;  %s975_s29 = sshll.u32 %s1434_s18, 3 }
   0xe   : > { %1036 = vmatpush3.bf16.msra.mxu0 %v1108_v0  ;;  %1079 = vmatpush3.bf16.msra.mxu1 %v1108_v0  ;;  %266 = vst.msk [vmem:[#allocation2 + $0x8] sm:$0xff] %vm264_vm0, %v1152_v3  ;;  %268 = vst.msk [vmem:[#allocation2 + $0x18] sm:$0xff] %vm264_vm0, %v1152_v3  ;;  %s1243_s28 = scalar_lea.vmem %s1425_s0, %s973_s23  ;;  %v1287_v47 = vld [vmem:[%s1427_s2] ss:$0 sm:$0xff]  ;;  %s1294_s7 = scalar_lea.vmem %s1428_s3, %s975_s29 }
   0xf   : > { %1037 = vmatprep.subr.bf16.mxu0 %v1109_v1  ;;  %1076 = vmatprep.subr.bf16.mxu1 %v1109_v1  ;;  %269 = vst.msk [vmem:[#allocation2 + $0x20] sm:$0xff] %vm264_vm0, %v1152_v3  ;;  %270 = vst.msk [vmem:[#allocation2 + $0x28] sm:$0xff] %vm264_vm0, %v1152_v3  ;;  %v1112_v5 = vld [vmem:[%s1243_s28] sm:$0xff]   ;;  %v1114_v7 = vld [vmem:[%s1243_s28 + $0x8] sm:$0xff]  }
  0x10   : > { %271 = vst.msk [vmem:[#allocation2 + $0x30] sm:$0xff] %vm264_vm0, %v1152_v3  ;;  %272 = vst.msk [vmem:[#allocation2 + $0x38] sm:$0xff] %vm264_vm0, %v1152_v3  ;;  %v1113_v6 = vld [vmem:[%s1243_s28 + $0x40] sm:$0xff]   ;;  %1043 = vmatprep.mubr.msk.bf16.mxu0 %vm473_vm1, %v1112_v5  ;;  %v1115_v8 = vld [vmem:[%s1243_s28 + $0x48] sm:$0xff]  }
  0x11   : > { %273 = vst.msk [vmem:[#allocation2 + $0x40] sm:$0xff] %vm264_vm0, %v1152_v3  ;;  %274 = vst.msk [vmem:[#allocation2 + $0x48] sm:$0xff] %vm264_vm0, %v1152_v3  ;;  %1059 = vmatprep.mubr.msk.bf16.mxu1 %vm473_vm1, %v1113_v6  ;;  %v1116_v9 = vld [vmem:[%s1243_s28 + $0x10] sm:$0xff]   ;;  %v1118_v11 = vld [vmem:[%s1243_s28 + $0x18] sm:$0xff]  }
  0x12   : > { %275 = vst.msk [vmem:[#allocation2 + $0x50] sm:$0xff] %vm264_vm0, %v1152_v3  ;;  %276 = vst.msk [vmem:[#allocation2 + $0x58] sm:$0xff] %vm264_vm0, %v1152_v3  ;;  %1038 = vmatpush3.bf16.msra.mxu0 %v1109_v1  ;;  %1080 = vmatpush3.bf16.msra.mxu1 %v1109_v1  ;;  %v1117_v10 = vld [vmem:[%s1243_s28 + $0x50] sm:$0xff]   ;;  %v1119_v12 = vld [vmem:[%s1243_s28 + $0x58] sm:$0xff]  }
  0x13   : > { %277 = vst.msk [vmem:[#allocation2 + $0x60] sm:$0xff] %vm264_vm0, %v1152_v3  ;;  %278 = vst.msk [vmem:[#allocation2 + $0x68] sm:$0xff] %vm264_vm0, %v1152_v3  ;;  %1039 = vmatprep.subr.bf16.mxu0 %v1110_v2  ;;  %1077 = vmatprep.subr.bf16.mxu1 %v1110_v2  ;;  %v1120_v13 = vld [vmem:[%s1243_s28 + $0x20] sm:$0xff]   ;;  %v1122_v15 = vld [vmem:[%s1243_s28 + $0x28] sm:$0xff]  }
  0x14   : > { %279 = vst.msk [vmem:[#allocation2 + $0x70] sm:$0xff] %vm264_vm0, %v1152_v3  ;;  %280 = vst.msk [vmem:[#allocation2 + $0x78] sm:$0xff] %vm264_vm0, %v1152_v3  ;;  %v1121_v14 = vld [vmem:[%s1243_s28 + $0x60] sm:$0xff]   ;;  %v1123_v16 = vld [vmem:[%s1243_s28 + $0x68] sm:$0xff]  }
  0x15   : > { %281 = vst.msk [vmem:[#allocation2 + $0x80] sm:$0xff] %vm264_vm0, %v1152_v3  ;;  %282 = vst.msk [vmem:[#allocation2 + $0x88] sm:$0xff] %vm264_vm0, %v1152_v3  ;;  %v1124_v17 = vld [vmem:[%s1243_s28 + $0x30] sm:$0xff]   ;;  %v1126_v19 = vld [vmem:[%s1243_s28 + $0x38] sm:$0xff]  }
  0x16   : > { %283 = vst.msk [vmem:[#allocation2 + $0x90] sm:$0xff] %vm264_vm0, %v1152_v3  ;;  %284 = vst.msk [vmem:[#allocation2 + $0x98] sm:$0xff] %vm264_vm0, %v1152_v3  ;;  %1040 = vmatpush3.bf16.msra.mxu0 %v1110_v2  ;;  %1081 = vmatpush3.bf16.msra.mxu1 %v1110_v2  ;;  %v1125_v18 = vld [vmem:[%s1243_s28 + $0x70] sm:$0xff]   ;;  %v1127_v20 = vld [vmem:[%s1243_s28 + $0x78] sm:$0xff]  }
  0x17   : > { %285 = vst.msk [vmem:[#allocation2 + $0xa0] sm:$0xff] %vm264_vm0, %v1152_v3  ;;  %286 = vst.msk [vmem:[#allocation2 + $0xa8] sm:$0xff] %vm264_vm0, %v1152_v3  ;;  %1041 = vmatprep.subr.bf16.mxu0 %v1111_v4  ;;  %1078 = vmatprep.subr.bf16.mxu1 %v1111_v4  ;;  %v299_v21 = vld [vmem:[#allocation2 + $0x10] sm:$0xff]  ;;  %v297_v25 = vld [vmem:[#allocation2] sm:$0xff] }
  0x18   : > { %287 = vst.msk [vmem:[#allocation2 + $0xb0] sm:$0xff] %vm264_vm0, %v1152_v3  ;;  %288 = vst.msk [vmem:[#allocation2 + $0xb8] sm:$0xff] %vm264_vm0, %v1152_v3  ;;  %v300_v31 = vld [vmem:[#allocation2 + $0x18] sm:$0xff]  ;;  %v298_v37 = vld [vmem:[#allocation2 + $0x8] sm:$0xff] }
  0x19   : > { %289 = vst.msk [vmem:[#allocation2 + $0xc0] sm:$0xff] %vm264_vm0, %v1152_v3  ;;  %290 = vst.msk [vmem:[#allocation2 + $0xc8] sm:$0xff] %vm264_vm0, %v1152_v3  ;;  %v303_v43 = vld [vmem:[#allocation2 + $0x30] sm:$0xff]  ;;  %v301_v50 = vld [vmem:[#allocation2 + $0x20] sm:$0xff] }
  0x1a   : > { %291 = vst.msk [vmem:[#allocation2 + $0xd0] sm:$0xff] %vm264_vm0, %v1152_v3  ;;  %292 = vst.msk [vmem:[#allocation2 + $0xd8] sm:$0xff] %vm264_vm0, %v1152_v3  ;;  %1042 = vmatpush3.bf16.msra.mxu0 %v1111_v4  ;;  %1082 = vmatpush3.bf16.msra.mxu1 %v1111_v4  ;;  %v304_v54 = vld [vmem:[#allocation2 + $0x38] sm:$0xff]  ;;  %v302_v0 = vld [vmem:[#allocation2 + $0x28] sm:$0xff] }
  0x1b   : > { %293 = vst.msk [vmem:[#allocation2 + $0xe0] sm:$0xff] %vm264_vm0, %v1152_v3  ;;  %294 = vst.msk [vmem:[#allocation2 + $0xe8] sm:$0xff] %vm264_vm0, %v1152_v3 }
  0x1c   : > { %295 = vst.msk [vmem:[#allocation2 + $0xf0] sm:$0xff] %vm264_vm0, %v1152_v3  ;;  %296 = vst.msk [vmem:[#allocation2 + $0xf8] sm:$0xff] %vm264_vm0, %v1152_v3  ;;  %v313_v26 = vld [vmem:[#allocation2 + $0x80] sm:$0xff]  ;;  %v314_v38 = vld [vmem:[#allocation2 + $0x88] sm:$0xff] }
  0x1d   : > { %1044 = vmatmul.mubr.msk.bf16.vlgmr.msra.gmra.mxu0 %vm473_vm1, %v1114_v7  ;;  %1060 = vmatmul.mubr.msk.bf16.vlgmr.msra.gmra.mxu1 %vm473_vm1, %v1115_v8  ;;  %v315_v22 = vld [vmem:[#allocation2 + $0x90] sm:$0xff]  ;;  %v316_v32 = vld [vmem:[#allocation2 + $0x98] sm:$0xff] }
  0x1e   : > { %1047 = vmatprep.mubr.msk.bf16.mxu0 %vm473_vm1, %v1116_v9  ;;  %1063 = vmatprep.mubr.msk.bf16.mxu1 %vm473_vm1, %v1117_v10  ;;  %v317_v51 = vld [vmem:[#allocation2 + $0xa0] sm:$0xff]  ;;  %v318_v5 = vld [vmem:[#allocation2 + $0xa8] sm:$0xff]  ;;  %v307_v10 = vld [vmem:[#allocation2 + $0x50] sm:$0xff] }
  0x1f   : > { %v319_v44 = vld [vmem:[#allocation2 + $0xb0] sm:$0xff]  ;;  %v320_v59 = vld [vmem:[#allocation2 + $0xb8] sm:$0xff] }
  0x25   : > { %1048 = vmatmul.mubr.msk.bf16.gmra.mxu0 %vm473_vm1, %v1118_v11  ;;  %1064 = vmatmul.mubr.msk.bf16.gmra.mxu1 %vm473_vm1, %v1119_v12 }
  0x26   : > { %1051 = vmatprep.mubr.msk.bf16.mxu0 %vm473_vm1, %v1120_v13  ;;  %1067 = vmatprep.mubr.msk.bf16.mxu1 %vm473_vm1, %v1121_v14 }
  0x2d   : > { %1052 = vmatmul.mubr.msk.bf16.gmra.mxu0 %vm473_vm1, %v1122_v15  ;;  %1068 = vmatmul.mubr.msk.bf16.gmra.mxu1 %vm473_vm1, %v1123_v16  ;;  %v323_v15 = vld [vmem:[#allocation2 + $0xd0] sm:$0xff] }
  0x2e   : > { %1055 = vmatprep.mubr.msk.bf16.mxu0 %vm473_vm1, %v1124_v17  ;;  %1071 = vmatprep.mubr.msk.bf16.mxu1 %vm473_vm1, %v1125_v18 }
  0x35   : > { %1056 = vmatmul.mubr.msk.bf16.gmra.mxu0 %vm473_vm1, %v1126_v19  ;;  %1072 = vmatmul.mubr.msk.bf16.gmra.mxu1 %vm473_vm1, %v1127_v20  ;;  %v305_v20 = vld [vmem:[#allocation2 + $0x40] sm:$0xff] }
  0xdd   : > { %v1045_v23 = vpop.f32.mrf.mxu0  ;;  %v1061_v24 = vpop.f32.mrf.mxu1 }
  0xde   : > { %v685_v27 = vadd.f32 %v1045_v23, %v299_v21  ;;  %v701_v28 = vadd.f32 %v1061_v24, %v315_v22 }
  0xdf   : > { %v556_v29 = vpop.f32.mrf.mxu0  ;;  %v620_v30 = vpop.f32.mrf.mxu1 }
  0xe0   : > { %718 = vst.msk [vmem:[#allocation2 + $0x10] sm:$0xff] %vm264_vm0, %v685_v27  ;;  %734 = vst.msk [vmem:[#allocation2 + $0x90] sm:$0xff] %vm264_vm0, %v701_v28  ;;  %v683_v33 = vadd.f32 %v556_v29, %v297_v25  ;;  %v699_v34 = vadd.f32 %v620_v30, %v313_v26  ;;  %v321_v25 = vld [vmem:[#allocation2 + $0xc0] sm:$0xff]  ;;  %v308_v30 = vld [vmem:[#allocation2 + $0x58] sm:$0xff] }
  0xe1   : > { %v1046_v35 = vpop.f32.mrf.mxu0  ;;  %v1062_v36 = vpop.f32.mrf.mxu1 }
  0xe2   : > { %716 = vst.msk [vmem:[#allocation2] sm:$0xff] %vm264_vm0, %v683_v33  ;;  %732 = vst.msk [vmem:[#allocation2 + $0x80] sm:$0xff] %vm264_vm0, %v699_v34  ;;  %v686_v39 = vadd.f32 %v1046_v35, %v300_v31  ;;  %v702_v40 = vadd.f32 %v1062_v36, %v316_v32  ;;  %v324_v35 = vld [vmem:[#allocation2 + $0xd8] sm:$0xff] }
  0xe3   : > { %v559_v41 = vpop.f32.mrf.mxu0  ;;  %v623_v42 = vpop.f32.mrf.mxu1 }
  0xe4   : > { %719 = vst.msk [vmem:[#allocation2 + $0x18] sm:$0xff] %vm264_vm0, %v686_v39  ;;  %735 = vst.msk [vmem:[#allocation2 + $0x98] sm:$0xff] %vm264_vm0, %v702_v40  ;;  %v684_v45 = vadd.f32 %v559_v41, %v298_v37  ;;  %v700_v46 = vadd.f32 %v623_v42, %v314_v38  ;;  %v306_v40 = vld [vmem:[#allocation2 + $0x48] sm:$0xff] }
  0xe5   : > { %v1049_v48 = vpop.f32.mrf.mxu0  ;;  %v1065_v49 = vpop.f32.mrf.mxu1 }
  0xe6   : > { %717 = vst.msk [vmem:[#allocation2 + $0x8] sm:$0xff] %vm264_vm0, %v684_v45  ;;  %733 = vst.msk [vmem:[#allocation2 + $0x88] sm:$0xff] %vm264_vm0, %v700_v46  ;;  %v689_v52 = vadd.f32 %v1049_v48, %v303_v43  ;;  %v705_v53 = vadd.f32 %v1065_v49, %v319_v44  ;;  %v322_v45 = vld [vmem:[#allocation2 + $0xc8] sm:$0xff] }
  0xe7   : > { %v753_v55 = vld [vmem:[#allocation2 + $0x10] sm:$0xff]  ;;  %v572_v57 = vpop.f32.mrf.mxu0  ;;  %v636_v58 = vpop.f32.mrf.mxu1 }
  0xe8   : > { %v769_v56 = vld [vmem:[#allocation2 + $0x90] sm:$0xff]  ;;  %v792_v60 = vadd.f32 %v1287_v47, %v753_v55  ;;  %722 = vst.msk [vmem:[#allocation2 + $0x30] sm:$0xff] %vm264_vm0, %v689_v52  ;;  %738 = vst.msk [vmem:[#allocation2 + $0xb0] sm:$0xff] %vm264_vm0, %v705_v53  ;;  %v687_v62 = vadd.f32 %v572_v57, %v301_v50  ;;  %v703_v63 = vadd.f32 %v636_v58, %v317_v51 }
  0xe9   : > { %v808_v61 = vadd.f32 %v1287_v47, %v769_v56  ;;  %v751_v1 = vld [vmem:[#allocation2] sm:$0xff]  ;;  %v1050_v3 = vpop.f32.mrf.mxu0  ;;  %v1066_v4 = vpop.f32.mrf.mxu1  ;;  %v311_v51 = vld [vmem:[#allocation2 + $0x70] sm:$0xff] }
  0xea   : > { %v767_v2 = vld [vmem:[#allocation2 + $0x80] sm:$0xff]  ;;  %824 = vst.msk [vmem:[%s1294_s7 + $0x10] sm:$0xff] %vm264_vm0, %v792_v60  ;;  %v790_v6 = vadd.f32 %v1287_v47, %v751_v1  ;;  %720 = vst.msk [vmem:[#allocation2 + $0x20] sm:$0xff] %vm264_vm0, %v687_v62  ;;  %v690_v8 = vadd.f32 %v1050_v3, %v304_v54  ;;  %v706_v9 = vadd.f32 %v1066_v4, %v320_v59  ;;  %v327_v56 = vld [vmem:[#allocation2 + $0xf0] sm:$0xff] }
  0xeb   : > { %840 = vst.msk [vmem:[%s1294_s7 + $0x90] sm:$0xff] %vm264_vm0, %v808_v61  ;;  %v806_v7 = vadd.f32 %v1287_v47, %v767_v2  ;;  %736 = vst.msk [vmem:[#allocation2 + $0xa0] sm:$0xff] %vm264_vm0, %v703_v63  ;;  %v754_v11 = vld [vmem:[#allocation2 + $0x18] sm:$0xff]  ;;  %v575_v13 = vpop.f32.mrf.mxu0  ;;  %v639_v14 = vpop.f32.mrf.mxu1  ;;  %v309_v61 = vld [vmem:[#allocation2 + $0x60] sm:$0xff] }
  0xec   : > { %v770_v12 = vld [vmem:[#allocation2 + $0x98] sm:$0xff]  ;;  %822 = vst.msk [vmem:[%s1294_s7] sm:$0xff] %vm264_vm0, %v790_v6  ;;  %v793_v16 = vadd.f32 %v1287_v47, %v754_v11  ;;  %723 = vst.msk [vmem:[#allocation2 + $0x38] sm:$0xff] %vm264_vm0, %v690_v8  ;;  %v688_v18 = vadd.f32 %v575_v13, %v302_v0  ;;  %v704_v19 = vadd.f32 %v639_v14, %v318_v5  ;;  %v325_v2 = vld [vmem:[#allocation2 + $0xe0] sm:$0xff] }
  0xed   : > { %838 = vst.msk [vmem:[%s1294_s7 + $0x80] sm:$0xff] %vm264_vm0, %v806_v7  ;;  %v809_v17 = vadd.f32 %v1287_v47, %v770_v12  ;;  %739 = vst.msk [vmem:[#allocation2 + $0xb8] sm:$0xff] %vm264_vm0, %v706_v9  ;;  %v752_v21 = vld [vmem:[#allocation2 + $0x8] sm:$0xff]  ;;  %v1053_v23 = vpop.f32.mrf.mxu0  ;;  %v1069_v24 = vpop.f32.mrf.mxu1  ;;  %v312_v7 = vld [vmem:[#allocation2 + $0x78] sm:$0xff] }
  0xee   : > { %v768_v22 = vld [vmem:[#allocation2 + $0x88] sm:$0xff]  ;;  %825 = vst.msk [vmem:[%s1294_s7 + $0x18] sm:$0xff] %vm264_vm0, %v793_v16  ;;  %v791_v26 = vadd.f32 %v1287_v47, %v752_v21  ;;  %721 = vst.msk [vmem:[#allocation2 + $0x28] sm:$0xff] %vm264_vm0, %v688_v18  ;;  %v693_v28 = vadd.f32 %v1053_v23, %v307_v10  ;;  %v709_v29 = vadd.f32 %v1069_v24, %v323_v15  ;;  %v328_v12 = vld [vmem:[#allocation2 + $0xf8] sm:$0xff] }
  0xef   : > { %841 = vst.msk [vmem:[%s1294_s7 + $0x98] sm:$0xff] %vm264_vm0, %v809_v17  ;;  %v807_v27 = vadd.f32 %v1287_v47, %v768_v22  ;;  %737 = vst.msk [vmem:[#allocation2 + $0xa8] sm:$0xff] %vm264_vm0, %v704_v19  ;;  %v757_v31 = vld [vmem:[#allocation2 + $0x30] sm:$0xff]  ;;  %v588_v33 = vpop.f32.mrf.mxu0  ;;  %v652_v34 = vpop.f32.mrf.mxu1  ;;  %v310_v17 = vld [vmem:[#allocation2 + $0x68] sm:$0xff] }
  0xf0   : > { %v773_v32 = vld [vmem:[#allocation2 + $0xb0] sm:$0xff]  ;;  %823 = vst.msk [vmem:[%s1294_s7 + $0x8] sm:$0xff] %vm264_vm0, %v791_v26  ;;  %v796_v36 = vadd.f32 %v1287_v47, %v757_v31  ;;  %726 = vst.msk [vmem:[#allocation2 + $0x50] sm:$0xff] %vm264_vm0, %v693_v28  ;;  %v691_v38 = vadd.f32 %v588_v33, %v305_v20  ;;  %v707_v39 = vadd.f32 %v652_v34, %v321_v25  ;;  %v326_v22 = vld [vmem:[#allocation2 + $0xe8] sm:$0xff] }
  0xf1   : > { %839 = vst.msk [vmem:[%s1294_s7 + $0x88] sm:$0xff] %vm264_vm0, %v807_v27  ;;  %v812_v37 = vadd.f32 %v1287_v47, %v773_v32  ;;  %742 = vst.msk [vmem:[#allocation2 + $0xd0] sm:$0xff] %vm264_vm0, %v709_v29  ;;  %v755_v41 = vld [vmem:[#allocation2 + $0x20] sm:$0xff]  ;;  %v1054_v43 = vpop.f32.mrf.mxu0  ;;  %v1070_v44 = vpop.f32.mrf.mxu1 }
  0xf2   : > { %v771_v42 = vld [vmem:[#allocation2 + $0xa0] sm:$0xff]  ;;  %828 = vst.msk [vmem:[%s1294_s7 + $0x30] sm:$0xff] %vm264_vm0, %v796_v36  ;;  %v794_v46 = vadd.f32 %v1287_v47, %v755_v41  ;;  %724 = vst.msk [vmem:[#allocation2 + $0x40] sm:$0xff] %vm264_vm0, %v691_v38  ;;  %v694_v49 = vadd.f32 %v1054_v43, %v308_v30  ;;  %v710_v50 = vadd.f32 %v1070_v44, %v324_v35 }
  0xf3   : > { %844 = vst.msk [vmem:[%s1294_s7 + $0xb0] sm:$0xff] %vm264_vm0, %v812_v37  ;;  %v810_v48 = vadd.f32 %v1287_v47, %v771_v42  ;;  %740 = vst.msk [vmem:[#allocation2 + $0xc0] sm:$0xff] %vm264_vm0, %v707_v39  ;;  %v758_v52 = vld [vmem:[#allocation2 + $0x38] sm:$0xff]  ;;  %v591_v54 = vpop.f32.mrf.mxu0  ;;  %v655_v55 = vpop.f32.mrf.mxu1 }
  0xf4   : > { %v774_v53 = vld [vmem:[#allocation2 + $0xb8] sm:$0xff]  ;;  %826 = vst.msk [vmem:[%s1294_s7 + $0x20] sm:$0xff] %vm264_vm0, %v794_v46  ;;  %v797_v57 = vadd.f32 %v1287_v47, %v758_v52  ;;  %727 = vst.msk [vmem:[#allocation2 + $0x58] sm:$0xff] %vm264_vm0, %v694_v49  ;;  %v692_v59 = vadd.f32 %v591_v54, %v306_v40  ;;  %v708_v60 = vadd.f32 %v655_v55, %v322_v45 }
  0xf5   : > { %842 = vst.msk [vmem:[%s1294_s7 + $0xa0] sm:$0xff] %vm264_vm0, %v810_v48  ;;  %v813_v58 = vadd.f32 %v1287_v47, %v774_v53  ;;  %743 = vst.msk [vmem:[#allocation2 + $0xd8] sm:$0xff] %vm264_vm0, %v710_v50  ;;  %v756_v62 = vld [vmem:[#allocation2 + $0x28] sm:$0xff]  ;;  %v1057_v0 = vpop.f32.mrf.mxu0  ;;  %v1073_v1 = vpop.f32.mrf.mxu1 }
  0xf6   : > { %v772_v63 = vld [vmem:[#allocation2 + $0xa8] sm:$0xff]  ;;  %829 = vst.msk [vmem:[%s1294_s7 + $0x38] sm:$0xff] %vm264_vm0, %v797_v57  ;;  %v795_v3 = vadd.f32 %v1287_v47, %v756_v62  ;;  %725 = vst.msk [vmem:[#allocation2 + $0x48] sm:$0xff] %vm264_vm0, %v692_v59  ;;  %v697_v5 = vadd.f32 %v1057_v0, %v311_v51  ;;  %v713_v6 = vadd.f32 %v1073_v1, %v327_v56 }
  0xf7   : > { %845 = vst.msk [vmem:[%s1294_s7 + $0xb8] sm:$0xff] %vm264_vm0, %v813_v58  ;;  %v811_v4 = vadd.f32 %v1287_v47, %v772_v63  ;;  %741 = vst.msk [vmem:[#allocation2 + $0xc8] sm:$0xff] %vm264_vm0, %v708_v60  ;;  %v761_v8 = vld [vmem:[#allocation2 + $0x50] sm:$0xff]  ;;  %v604_v10 = vpop.f32.mrf.mxu0  ;;  %v668_v11 = vpop.f32.mrf.mxu1 }
  0xf8   : > { %v777_v9 = vld [vmem:[#allocation2 + $0xd0] sm:$0xff]  ;;  %827 = vst.msk [vmem:[%s1294_s7 + $0x28] sm:$0xff] %vm264_vm0, %v795_v3  ;;  %v800_v13 = vadd.f32 %v1287_v47, %v761_v8  ;;  %730 = vst.msk [vmem:[#allocation2 + $0x70] sm:$0xff] %vm264_vm0, %v697_v5  ;;  %v695_v15 = vadd.f32 %v604_v10, %v309_v61  ;;  %v711_v16 = vadd.f32 %v668_v11, %v325_v2 }
  0xf9   : > { %843 = vst.msk [vmem:[%s1294_s7 + $0xa8] sm:$0xff] %vm264_vm0, %v811_v4  ;;  %v816_v14 = vadd.f32 %v1287_v47, %v777_v9  ;;  %746 = vst.msk [vmem:[#allocation2 + $0xf0] sm:$0xff] %vm264_vm0, %v713_v6  ;;  %v759_v18 = vld [vmem:[#allocation2 + $0x40] sm:$0xff]  ;;  %v1058_v20 = vpop.f32.mrf.mxu0  ;;  %v1074_v21 = vpop.f32.mrf.mxu1 }
  0xfa   : > { %v775_v19 = vld [vmem:[#allocation2 + $0xc0] sm:$0xff]  ;;  %832 = vst.msk [vmem:[%s1294_s7 + $0x50] sm:$0xff] %vm264_vm0, %v800_v13  ;;  %v798_v23 = vadd.f32 %v1287_v47, %v759_v18  ;;  %728 = vst.msk [vmem:[#allocation2 + $0x60] sm:$0xff] %vm264_vm0, %v695_v15  ;;  %v698_v25 = vadd.f32 %v1058_v20, %v312_v7  ;;  %v714_v26 = vadd.f32 %v1074_v21, %v328_v12 }
  0xfb   : > { %848 = vst.msk [vmem:[%s1294_s7 + $0xd0] sm:$0xff] %vm264_vm0, %v816_v14  ;;  %v814_v24 = vadd.f32 %v1287_v47, %v775_v19  ;;  %744 = vst.msk [vmem:[#allocation2 + $0xe0] sm:$0xff] %vm264_vm0, %v711_v16  ;;  %v762_v27 = vld [vmem:[#allocation2 + $0x58] sm:$0xff]  ;;  %v607_v29 = vpop.f32.mrf.mxu0  ;;  %v671_v30 = vpop.f32.mrf.mxu1 }
  0xfc   : > { %v778_v28 = vld [vmem:[#allocation2 + $0xd8] sm:$0xff]  ;;  %830 = vst.msk [vmem:[%s1294_s7 + $0x40] sm:$0xff] %vm264_vm0, %v798_v23  ;;  %v801_v31 = vadd.f32 %v1287_v47, %v762_v27  ;;  %731 = vst.msk [vmem:[#allocation2 + $0x78] sm:$0xff] %vm264_vm0, %v698_v25  ;;  %v696_v33 = vadd.f32 %v607_v29, %v310_v17  ;;  %v712_v34 = vadd.f32 %v671_v30, %v326_v22 }
  0xfd   : > { %846 = vst.msk [vmem:[%s1294_s7 + $0xc0] sm:$0xff] %vm264_vm0, %v814_v24  ;;  %v817_v32 = vadd.f32 %v1287_v47, %v778_v28  ;;  %747 = vst.msk [vmem:[#allocation2 + $0xf8] sm:$0xff] %vm264_vm0, %v714_v26  ;;  %v760_v35 = vld [vmem:[#allocation2 + $0x48] sm:$0xff] }
  0xfe   : > { %v776_v36 = vld [vmem:[#allocation2 + $0xc8] sm:$0xff]  ;;  %833 = vst.msk [vmem:[%s1294_s7 + $0x58] sm:$0xff] %vm264_vm0, %v801_v31  ;;  %v799_v37 = vadd.f32 %v1287_v47, %v760_v35  ;;  %729 = vst.msk [vmem:[#allocation2 + $0x68] sm:$0xff] %vm264_vm0, %v696_v33 }
  0xff   : > { %849 = vst.msk [vmem:[%s1294_s7 + $0xd8] sm:$0xff] %vm264_vm0, %v817_v32  ;;  %v815_v38 = vadd.f32 %v1287_v47, %v776_v36  ;;  %745 = vst.msk [vmem:[#allocation2 + $0xe8] sm:$0xff] %vm264_vm0, %v712_v34  ;;  %v765_v39 = vld [vmem:[#allocation2 + $0x70] sm:$0xff] }
 0x100   : > { %v781_v40 = vld [vmem:[#allocation2 + $0xf0] sm:$0xff]  ;;  %831 = vst.msk [vmem:[%s1294_s7 + $0x48] sm:$0xff] %vm264_vm0, %v799_v37  ;;  %v804_v41 = vadd.f32 %v1287_v47, %v765_v39 }
 0x101   : > { %847 = vst.msk [vmem:[%s1294_s7 + $0xc8] sm:$0xff] %vm264_vm0, %v815_v38  ;;  %v820_v42 = vadd.f32 %v1287_v47, %v781_v40  ;;  %v763_v43 = vld [vmem:[#allocation2 + $0x60] sm:$0xff] }
 0x102   : > { %v779_v44 = vld [vmem:[#allocation2 + $0xe0] sm:$0xff]  ;;  %836 = vst.msk [vmem:[%s1294_s7 + $0x70] sm:$0xff] %vm264_vm0, %v804_v41  ;;  %v802_v45 = vadd.f32 %v1287_v47, %v763_v43 }
 0x103   : > { %852 = vst.msk [vmem:[%s1294_s7 + $0xf0] sm:$0xff] %vm264_vm0, %v820_v42  ;;  %v818_v46 = vadd.f32 %v1287_v47, %v779_v44  ;;  %v766_v48 = vld [vmem:[#allocation2 + $0x78] sm:$0xff] }
 0x104   : > { %v782_v49 = vld [vmem:[#allocation2 + $0xf8] sm:$0xff]  ;;  %834 = vst.msk [vmem:[%s1294_s7 + $0x60] sm:$0xff] %vm264_vm0, %v802_v45  ;;  %v805_v50 = vadd.f32 %v1287_v47, %v766_v48 }
 0x105   : > { %850 = vst.msk [vmem:[%s1294_s7 + $0xe0] sm:$0xff] %vm264_vm0, %v818_v46  ;;  %v821_v51 = vadd.f32 %v1287_v47, %v782_v49  ;;  %v764_v52 = vld [vmem:[#allocation2 + $0x68] sm:$0xff] }
 0x106   : > { %v780_v53 = vld [vmem:[#allocation2 + $0xe8] sm:$0xff]  ;;  %837 = vst.msk [vmem:[%s1294_s7 + $0x78] sm:$0xff] %vm264_vm0, %v805_v50  ;;  %v803_v54 = vadd.f32 %v1287_v47, %v764_v52 }
 0x107   : > { %853 = vst.msk [vmem:[%s1294_s7 + $0xf8] sm:$0xff] %vm264_vm0, %v821_v51  ;;  %v819_v55 = vadd.f32 %v1287_v47, %v780_v53 }
 0x108   : > { %835 = vst.msk [vmem:[%s1294_s7 + $0x68] sm:$0xff] %vm264_vm0, %v803_v54 }
 0x109   : > { %851 = vst.msk [vmem:[%s1294_s7 + $0xe8] sm:$0xff] %vm264_vm0, %v819_v55 }
 0x10a PF: > { %s13_s14 = sadd.s32 1, %s1150_s14   ;;  %s1429_s12 = smov %s1146_s13 }
 0x10b   : > { %p10_p5 = scmp.ge.s32.totalorder %s13_s14, 4   ;;  %s1430_s13 = smov %s1432_s15 }
 0x10d   :  { %12 = sbr.rel (!%p10_p5) target bundleno = 2 (0x2), region = 76 }

// kernel: _lambda_.48
= control target key start
LH: loop header
LB: loop body
LE: loop exit
PB: predicated region body
PF: predicated region fallthrough
CT: control target
= control target key end

     0   :  { %vm19_vm0 = vcmask 785408   ;;  %v198_v1 = vmov 0.0   ;;  %vm58_vm1 = vcmask 261120   ;;  %vm157_vm2 = vcmask 781312   ;;  %s254_s1 = inlined_call_operand.vmem [shape: bf16[32,96], index: 1, kind: input, shape index: {}]   ;;  %s255_s0 = inlined_call_operand.vmem [shape: bf16[32,32], index: 0, kind: input, shape index: {}]   ;;  %s256_s2 = inlined_call_operand.vmem [shape: f32[1,96], index: 2, kind: input, shape index: {}]   ;;  %s257_s3 = inlined_call_operand.vmem [shape: bf16[32,96], index: 3, kind: output, shape index: {}]  }
   0x1   :  { %v194_v0 = vld [vmem:[%s254_s1 + $0x8] sm:$0xff]   ;;  %22 = vst.msk [vmem:[#allocation2 + $0x10] sm:$0xff] %vm19_vm0, %v198_v1  ;;  %20 = vst.msk [vmem:[#allocation2] sm:$0xff] %vm19_vm0, %v198_v1  ;;  %v195_v2 = vld [vmem:[%s254_s1] sm:$0xff]  }
   0x2   :  { %21 = vst.msk [vmem:[#allocation2 + $0x8] sm:$0xff] %vm19_vm0, %v198_v1  ;;  %23 = vst.msk [vmem:[#allocation2 + $0x18] sm:$0xff] %vm19_vm0, %v198_v1  ;;  %185 = vmatprep.subr.bf16.mxu0 %v194_v0  ;;  %v196_v3 = vld [vmem:[%s255_s0] sm:$0xff]   ;;  %v197_v4 = vld [vmem:[%s255_s0 + $0x8] sm:$0xff]  }
   0x3   :  { %186 = vmatpush3.bf16.msra.mxu0 %v194_v0  ;;  %189 = vmatprep.mubr.msk.bf16.mxu0 %vm58_vm1, %v196_v3  ;;  %v172_v17 = vld [vmem:[%s256_s2] ss:$0 sm:$0xff] }
   0x4   :  { %187 = vmatprep.subr.bf16.mxu0 %v195_v2 }
   0x7   :  { %188 = vmatpush3.bf16.msra.mxu0 %v195_v2 }
   0x8   :  { %v26_v5 = vld [vmem:[#allocation2 + $0x10] sm:$0xff]  ;;  %v24_v7 = vld [vmem:[#allocation2] sm:$0xff] }
   0x9   :  { %v27_v10 = vld [vmem:[#allocation2 + $0x18] sm:$0xff]  ;;  %v25_v13 = vld [vmem:[#allocation2 + $0x8] sm:$0xff] }
   0xa   :  { %190 = vmatmul.mubr.msk.bf16.vlgmr.msra.gmra.mxu0 %vm58_vm1, %v197_v4 }
  0xca   :  { %v191_v6 = vpop.f32.mrf.mxu0 }
  0xcb   :  { %v116_v8 = vadd.f32 %v191_v6, %v26_v5 }
  0xcc   :  { %v99_v9 = vpop.f32.mrf.mxu0 }
  0xcd   :  { %121 = vst.msk [vmem:[#allocation2 + $0x10] sm:$0xff] %vm19_vm0, %v116_v8  ;;  %v114_v11 = vadd.f32 %v99_v9, %v24_v7 }
  0xce   :  { %v192_v12 = vpop.f32.mrf.mxu0 }
  0xcf   :  { %119 = vst.msk [vmem:[#allocation2] sm:$0xff] %vm19_vm0, %v114_v11  ;;  %v117_v14 = vadd.f32 %v192_v12, %v27_v10 }
  0xd0   :  { %v102_v15 = vpop.f32.mrf.mxu0 }
  0xd1   :  { %122 = vst.msk [vmem:[#allocation2 + $0x18] sm:$0xff] %vm19_vm0, %v117_v14  ;;  %v115_v16 = vadd.f32 %v102_v15, %v25_v13 }
  0xd3   :  { %120 = vst.msk [vmem:[#allocation2 + $0x8] sm:$0xff] %vm19_vm0, %v115_v16 }
  0xd4   :  { %v128_v18 = vld [vmem:[#allocation2 + $0x10] sm:$0xff] }
  0xd5   :  { %v139_v19 = vadd.f32 %v172_v17, %v128_v18 }
  0xd6   :  { %v126_v20 = vld [vmem:[#allocation2] sm:$0xff] }
  0xd7   :  { %v179_v21 = vpack.c.bf16 %v139_v19, %v139_v19  ;;  %v137_v22 = vadd.f32 %v172_v17, %v126_v20 }
  0xd8   :  { %v129_v23 = vld [vmem:[#allocation2 + $0x18] sm:$0xff] }
  0xd9   :  { %160 = vst.msk [vmem:[%s257_s3 + $0x8] sm:$0xf] %vm157_vm2, %v179_v21  ;;  %v177_v24 = vpack.c.bf16 %v137_v22, %v137_v22  ;;  %v140_v25 = vadd.f32 %v172_v17, %v129_v23 }
  0xda   :  { %v127_v26 = vld [vmem:[#allocation2 + $0x8] sm:$0xff] }
  0xdb   :  { %158 = vst.msk [vmem:[%s257_s3] sm:$0xf] %vm157_vm2, %v177_v24  ;;  %v180_v27 = vpack.c.bf16 %v140_v25, %v140_v25  ;;  %v138_v28 = vadd.f32 %v172_v17, %v127_v26 }
  0xdd   :  { %161 = vst.msk [vmem:[%s257_s3 + $0xc] sm:$0xf] %vm157_vm2, %v180_v27  ;;  %v178_v29 = vpack.c.bf16 %v138_v28, %v138_v28 }
  0xdf   :  { %159 = vst.msk [vmem:[%s257_s3 + $0x4] sm:$0xf] %vm157_vm2, %v178_v29 }

// kernel: _lambda_.47
= control target key start
LH: loop header
LB: loop body
LE: loop exit
PB: predicated region body
PF: predicated region fallthrough
CT: control target
= control target key end

     0   :  { %vm18_vm0 = vcmask 261120   ;;  %vm110_vm1 = vcmask 257024   ;;  %s199_s0 = inlined_call_operand.vmem [shape: f32[32,32], index: 0, kind: input, shape index: {}]   ;;  %s200_s1 = inlined_call_operand.vmem [shape: f32[1,32], index: 1, kind: input, shape index: {}]   ;;  %s201_s2 = inlined_call_operand.vmem [shape: f32[1,32], index: 2, kind: input, shape index: {}]   ;;  %s202_s3 = inlined_call_operand.vmem [shape: bf16[32,32], index: 3, kind: output, shape index: {}]  }
   0x1   :  { %v14_v0 = vld [vmem:[%s199_s0] sm:$0xff]  ;;  %v16_v1 = vld [vmem:[%s199_s0 + $0x10] sm:$0xff]  ;;  %v15_v2 = vld [vmem:[%s199_s0 + $0x8] sm:$0xff] }
   0x2   :  { %v19_v3 = vsel %vm18_vm0, %v14_v0, 0.0  ;;  %v25_v4 = vsel %vm18_vm0, %v16_v1, 0.0  ;;  %v17_v5 = vld [vmem:[%s199_s0 + $0x18] sm:$0xff]  ;;  %v22_v6 = vsel %vm18_vm0, %v15_v2, 0.0  ;;  %v119_v41 = vld [vmem:[%s200_s1] ss:$0 sm:$0xff] }
   0x3   :  { %20 = vadd.xlane.f32.xlu0 %v19_v3  ;;  %26 = vadd.xlane.f32.xlu1 %v25_v4  ;;  %v28_v7 = vsel %vm18_vm0, %v17_v5, 0.0  ;;  %v120_v43 = vld [vmem:[%s201_s2] ss:$0 sm:$0xff] }
   0x7   :  { %23 = vadd.xlane.f32.xlu0 %v22_v6  ;;  %29 = vadd.xlane.f32.xlu1 %v28_v7 }
  0x8c   :  { %v21_v8 = vpop.xlane.xlu0 %20  ;;  %v27_v9 = vpop.xlane.xlu1 %26 }
  0x8d   :  { %v32_v10 = vmul.f32 0.03125, %v21_v8  ;;  %v34_v11 = vmul.f32 0.03125, %v27_v9 }
  0x8f   :  { %v36_v12 = vsub.f32 %v14_v0, %v32_v10  ;;  %v38_v13 = vsub.f32 %v16_v1, %v34_v11 }
  0x90   :  { %v24_v14 = vpop.xlane.xlu0 %23  ;;  %v30_v15 = vpop.xlane.xlu1 %29 }
  0x91   :  { %v33_v16 = vmul.f32 0.03125, %v24_v14  ;;  %v35_v17 = vmul.f32 0.03125, %v30_v15  ;;  %v40_v18 = vmul.f32 %v36_v12, %v36_v12  ;;  %v42_v19 = vmul.f32 %v38_v13, %v38_v13 }
  0x93   :  { %v37_v20 = vsub.f32 %v15_v2, %v33_v16  ;;  %v39_v21 = vsub.f32 %v17_v5, %v35_v17  ;;  %v44_v22 = vsel %vm18_vm0, %v40_v18, 0.0  ;;  %v50_v23 = vsel %vm18_vm0, %v42_v19, 0.0 }
  0x94   :  { %45 = vadd.xlane.f32.xlu0 %v44_v22 }
  0x95   :  { %v41_v24 = vmul.f32 %v37_v20, %v37_v20  ;;  %v43_v25 = vmul.f32 %v39_v21, %v39_v21 }
  0x97   :  { %v47_v26 = vsel %vm18_vm0, %v41_v24, 0.0  ;;  %v53_v27 = vsel %vm18_vm0, %v43_v25, 0.0 }
  0x98   :  { %51 = vadd.xlane.f32.xlu0 %v50_v23  ;;  %48 = vadd.xlane.f32.xlu1 %v47_v26 }
  0x9c   :  { %54 = vadd.xlane.f32.xlu1 %v53_v27 }
 0x11d   :  { %v46_v28 = vpop.xlane.xlu0 %45 }
 0x11e   :  { %v56_v29 = vmul.f32 0.03125, %v46_v28 }
 0x120   :  { %v60_v30 = vadd.f32 1e-05, %v56_v29 }
 0x121   :  { %v49_v31 = vpop.xlane.xlu1 %48  ;;  %v52_v32 = vpop.xlane.xlu0 %51 }
 0x122   :  { %129 = vrsqrt.f32 %v60_v30  ;;  %v57_v33 = vmul.f32 0.03125, %v49_v31  ;;  %v58_v34 = vmul.f32 0.03125, %v52_v32 }
 0x124   :  { %v61_v35 = vadd.f32 1e-05, %v57_v33  ;;  %v62_v36 = vadd.f32 1e-05, %v58_v34 }
 0x125   :  { %v55_v37 = vpop.xlane.xlu1 %54 }
 0x126   :  { %131 = vrsqrt.f32 %v61_v35  ;;  %v59_v38 = vmul.f32 0.03125, %v55_v37 }
 0x127   :  { %133 = vrsqrt.f32 %v62_v36 }
 0x128   :  { %v63_v39 = vadd.f32 1e-05, %v59_v38 }
 0x12a   :  { %135 = vrsqrt.f32 %v63_v39 }
 0x12f   :  { %v130_v40 = vpop.eup %129 }
 0x130   :  { %v68_v42 = vmul.f32 %v130_v40, %v36_v12 }
 0x132   :  { %v79_v44 = vmul.f32 %v119_v41, %v68_v42 }
 0x133   :  { %v132_v45 = vpop.eup %131 }
 0x134   :  { %v134_v46 = vpop.eup %133  ;;  %v90_v47 = vadd.f32 %v120_v43, %v79_v44  ;;  %v69_v48 = vmul.f32 %v132_v45, %v37_v20 }
 0x135   :  { %v70_v49 = vmul.f32 %v134_v46, %v38_v13 }
 0x136   :  { %v125_v50 = vpack.c.bf16 %v90_v47, %v90_v47  ;;  %v80_v51 = vmul.f32 %v119_v41, %v69_v48 }
 0x137   :  { %v136_v52 = vpop.eup %135  ;;  %v81_v53 = vmul.f32 %v119_v41, %v70_v49 }
 0x138   :  { %111 = vst.msk [vmem:[%s202_s3] sm:$0xf] %vm110_vm1, %v125_v50  ;;  %v91_v54 = vadd.f32 %v120_v43, %v80_v51  ;;  %v71_v55 = vmul.f32 %v136_v52, %v39_v21 }
 0x139   :  { %v92_v56 = vadd.f32 %v120_v43, %v81_v53 }
 0x13a   :  { %v126_v57 = vpack.c.bf16 %v91_v54, %v91_v54  ;;  %v82_v58 = vmul.f32 %v119_v41, %v71_v55 }
 0x13b   :  { %v127_v59 = vpack.c.bf16 %v92_v56, %v92_v56 }
 0x13c   :  { %112 = vst.msk [vmem:[%s202_s3 + $0x4] sm:$0xf] %vm110_vm1, %v126_v57  ;;  %v93_v60 = vadd.f32 %v120_v43, %v82_v58 }
 0x13d   :  { %113 = vst.msk [vmem:[%s202_s3 + $0x8] sm:$0xf] %vm110_vm1, %v127_v59 }
 0x13e   :  { %v128_v61 = vpack.c.bf16 %v93_v60, %v93_v60 }
 0x140   :  { %114 = vst.msk [vmem:[%s202_s3 + $0xc] sm:$0xf] %vm110_vm1, %v128_v61 }

// kernel: _lambda_.49
= control target key start
LH: loop header
LB: loop body
LE: loop exit
PB: predicated region body
PF: predicated region fallthrough
CT: control target
= control target key end

     0   :  { %s732_s12 = smov 0   ;;  %s734_s13 = smov 0   ;;  %s800_s0 = inlined_call_operand.vmem [shape: bf16[2,4,16,8], index: 0, kind: input, shape index: {}]   ;;  %s801_s1 = inlined_call_operand.vmem [shape: bf16[2,4,16,8], index: 1, kind: input, shape index: {}]   ;;  %s802_s2 = inlined_call_operand.vmem [shape: bf16[2,4,16,8], index: 2, kind: input, shape index: {}]   ;;  %s803_s3 = inlined_call_operand.vmem [shape: bf16[2,4,16,8], index: 3, kind: output, shape index: {}]  }
   0x1   :  { %s736_s14 = smov 0   ;;  %s738_s15 = smov 0  }
   0x2   :  { %s740_s16 = smov 0  }
   0x3 LB: > { %s22_s17 = sadd.s32 1, %s700_s14  ;;  %s25_s18 = sadd.s32 1, %s704_s15  ;;  %s708_s16 = sphi %s740_s16, %s13_s16   ;;  %s704_s15 = sphi %s738_s15, %s807_s15   ;;  %s700_s14 = sphi %s736_s14, %s806_s14   ;;  %s696_s13 = sphi %s734_s13, %s805_s13   ;;  %s692_s12 = sphi %s732_s12, %s804_s12  }
   0x4   : > { %p23_p0 = scmp.ge.s32.totalorder %s22_s17, 4  ;;  %p577_p1 = scmp.ge.s32.totalorder %s708_s16, 1 }
   0x5   : > { %p189_p2 = scmp.lt.s32.totalorder %s708_s16, 9 }
   0x6   : > { %s809_s17 = smov (%p23_p0, %s22_s17), 0  ;;  %s811_s18 = smov (!%p23_p0, %s25_s18), %s704_s15 }
   0x7   : > { %p190_p3 = pnand %p577_p1, %p189_p2  ;;  %p27_p4 = scmp.ge.s32.totalorder %s811_s18, 2 }
   0x8   : > { %p239_p5 = scmp.lt.s32.totalorder (!%p190_p3), %s696_s13, 1  ;;  %p241_p6 = scmp.lt.s32.totalorder (!%p190_p3), %s692_s12, 3 }
   0x9   : > { %s813_s18 = smov (%p27_p4, %s811_s18), 0  ;;  %193 = sbr.rel (%p190_p3) target bundleno = 742 (0x2e6), region = 32 }
   0xe   : > { %v710_v0 = vmov 0.0   ;;  %vm711_vm0 = vmmov 0   ;;  %s815_s13 = smov (!%p239_p5, %s696_s13), 1  ;;  %s817_s12 = smov (!%p241_p6, %s692_s12), 3  ;;  %vm292_vm1 = vcmask 64512   ;;  %v342_v4 = vlaneseq }
   0xf   : > { %605 = vmatprep.subr.bf16.mxu0 %v710_v0  ;;  %607 = vmatprep.mubr.msk.bf16.mxu0 %vm711_vm0, %v710_v0  ;;  %s579_s19 = sshll.u32 %s815_s13, 3  ;;  %s578_s20 = sshll.u32 %s817_s12, 1  ;;  %vm351_vm3 = vcmask 130048   ;;  %vm433_vm5 = vcmask 60416  }
  0x10   : > { %611 = vmatprep.subr.bf16.mxu1 %v710_v0  ;;  %613 = vmatprep.mubr.msk.bf16.mxu1 %vm711_vm0, %v710_v0  ;;  %s245_s21 = sadd.s32 %s579_s19, %s578_s20  ;;  %v343_v5 = vshrl.u32 %v342_v4, 7  ;;  %v346_v6 = vand.u32 127, %v342_v4 }
  0x11   : > { %s762_s22 = sshll.u32 %s245_s21, 2 }
  0x12   : > { %s256_s25 = scalar_lea.vmem %s801_s1, %s762_s22  ;;  %s247_s28 = scalar_lea.vmem %s800_s0, %s762_s22  ;;  %vm347_vm2 = vcmp.gt.s32.totalorder %v346_v6, %v343_v5  ;;  %v344_v8 = vadd.s32 8, %v343_v5 }
  0x13   : > { %v659_v1 = vld [vmem:[%s256_s25] sm:$0xff]   ;;  %s265_s4 = scalar_lea.vmem %s802_s2, %s762_s22  ;;  %s274_s7 = scalar_lea.vmem %s803_s3, %s762_s22 }
  0x14   : > { %v297_v2 = vsel %vm292_vm1, %v659_v1, 0  ;;  %v660_v3 = vld [vmem:[%s247_s28] sm:$0xff]   ;;  %vm348_vm4 = vcmp.gt.s32.totalorder %v346_v6, %v344_v8 }
  0x15   : > { %606 = vmatpush3.bf16.xpose.msra.mxu0 %v297_v2  ;;  %v661_v28 = vld [vmem:[%s265_s4] sm:$0xff]  }
  0x16   : > { %612 = vmatpush3.bf16.msra.mxu1 %v661_v28 }
  0x1c   : > { %608 = vmatmul.mubr.msk.bf16.vlgmr.msra.gmra.mxu0 %vm292_vm1, %v660_v3 }
  0xdc   : > { %v333_v7 = vpop.f32.mrf.mxu0 }
  0xdd   : > { %v340_v9 = vmul.f32 0.35355338, %v333_v7 }
  0xde   : > { %v609_v10 = vpop.f32.mrf.mxu0 }
  0xdf   : > { %v349_v11 = vsel %vm347_vm2, -1e+30, %v340_v9 }
  0xe0   : > { %v336_v12 = vpop.f32.mrf.mxu0  ;;  %v352_v13 = vsel %vm351_vm3, %v349_v11, -inf }
  0xe1   : > { %v341_v14 = vmul.f32 0.35355338, %v336_v12  ;;  %353 = vmax.xlane.f32.xlu0 %v352_v13 }
  0xe2   : > { %v610_v15 = vpop.f32.mrf.mxu0 }
  0xe3   : > { %v350_v16 = vsel %vm348_vm4, -1e+30, %v341_v14 }
  0xe4   : > { %v355_v17 = vsel %vm351_vm3, %v350_v16, -inf }
  0xe5   : > { %356 = vmax.xlane.f32.xlu0 %v355_v17 }
 0x16a   : > { %v354_v18 = vpop.xlane.xlu0 %353 }
 0x16b   : > { %v358_v19 = vsub.f32 %v349_v11, %v354_v18 }
 0x16d   : > { %v360_v20 = vmul.f32 1.442695, %v358_v19 }
 0x16e   : > { %v357_v21 = vpop.xlane.xlu0 %356 }
 0x16f   : > { %662 = vpow2.f32 %v360_v20  ;;  %v359_v22 = vsub.f32 %v350_v16, %v357_v21 }
 0x171   : > { %v362_v23 = vmul.f32 1.442695, %v359_v22 }
 0x173   : > { %664 = vpow2.f32 %v362_v23 }
 0x17c   : > { %v663_v24 = vpop.eup %662 }
 0x17d   : > { %v364_v25 = vsel %vm351_vm3, %v663_v24, 0.0 }
 0x17e   : > { %365 = vadd.xlane.f32.xlu1 %v364_v25 }
 0x180   : > { %v665_v26 = vpop.eup %664 }
 0x181   : > { %v367_v27 = vsel %vm351_vm3, %v665_v26, 0.0 }
 0x182   : > { %368 = vadd.xlane.f32.xlu1 %v367_v27 }
 0x207   : > { %v366_v29 = vpop.xlane.xlu1 %365 }
 0x208   : > { %666 = vrcp.f32 %v366_v29 }
 0x20b   : > { %v369_v30 = vpop.xlane.xlu1 %368 }
 0x20c   : > { %668 = vrcp.f32 %v369_v30 }
 0x215   : > { %v667_v31 = vpop.eup %666 }
 0x216   : > { %v371_v33 = vmul.f32 %v667_v31, %v663_v24 }
 0x219   : > { %v669_v32 = vpop.eup %668 }
 0x21a   : > { %v373_v34 = vmul.f32 %v669_v32, %v665_v26 }
 0x21c   : > { %v374_v35 = vpack.c.bf16 %v373_v34, %v371_v33 }
 0x21e   : > { %614 = vmatmul.mubr.msk.bf16.vlgmr.msra.gmra.mxu1 %vm351_vm3, %v374_v35 }
 0x2de   : > { %v418_v36 = vpop.f32.mrf.mxu1 }
 0x2df   : > { %v599_v37 = vpack.c.bf16 %v418_v36, %v418_v36 }
 0x2e0   : > { %v615_v38 = vpop.f32.mrf.mxu1 }
 0x2e1   : > { %434 = vst.msk [vmem:[%s274_s7] sm:$0xf] %vm433_vm5, %v599_v37 }
 0x2e2   : > { %v421_v39 = vpop.f32.mrf.mxu1 }
 0x2e3   : > { %v600_v40 = vpack.c.bf16 %v421_v39, %v421_v39 }
 0x2e4   : > { %v616_v41 = vpop.f32.mrf.mxu1 }
 0x2e5   : > { %435 = vst.msk [vmem:[%s274_s7 + $0x4] sm:$0xf] %vm433_vm5, %v600_v40 }
 0x2e6 PF: > { %s13_s16 = sadd.s32 1, %s708_s16   ;;  %s804_s12 = smov %s700_s14 }
 0x2e7   : > { %p10_p7 = scmp.ge.s32.totalorder %s13_s16, 10   ;;  %s805_s13 = smov %s704_s15 }
 0x2e8   : > { %s806_s14 = smov %s809_s17  ;;  %s807_s15 = smov %s813_s18 }
 0x2e9   :  { %12 = sbr.rel (!%p10_p7) target bundleno = 3 (0x3), region = 68 }

// kernel: _lambda_.50
= control target key start
LH: loop header
LB: loop body
LE: loop exit
PB: predicated region body
PF: predicated region fallthrough
CT: control target
= control target key end

     0   :  { %vm19_vm0 = vcmask 261120   ;;  %v197_v1 = vmov 0.0   ;;  %vm156_vm1 = vcmask 257024   ;;  %s255_s1 = inlined_call_operand.vmem [shape: bf16[32,32], index: 1, kind: input, shape index: {}]   ;;  %s256_s0 = inlined_call_operand.vmem [shape: bf16[32,32], index: 0, kind: input, shape index: {}]   ;;  %s257_s2 = inlined_call_operand.vmem [shape: f32[1,32], index: 2, kind: input, shape index: {}]   ;;  %s258_s3 = inlined_call_operand.vmem [shape: bf16[32,32], index: 3, kind: output, shape index: {}]  }
   0x1   :  { %v193_v0 = vld [vmem:[%s255_s1 + $0x8] sm:$0xff]   ;;  %22 = vst.msk [vmem:[#allocation2 + $0x10] sm:$0xff] %vm19_vm0, %v197_v1  ;;  %20 = vst.msk [vmem:[#allocation2] sm:$0xff] %vm19_vm0, %v197_v1  ;;  %v194_v2 = vld [vmem:[%s255_s1] sm:$0xff]  }
   0x2   :  { %21 = vst.msk [vmem:[#allocation2 + $0x8] sm:$0xff] %vm19_vm0, %v197_v1  ;;  %23 = vst.msk [vmem:[#allocation2 + $0x18] sm:$0xff] %vm19_vm0, %v197_v1  ;;  %184 = vmatprep.subr.bf16.mxu0 %v193_v0  ;;  %v195_v3 = vld [vmem:[%s256_s0] sm:$0xff]   ;;  %v196_v4 = vld [vmem:[%s256_s0 + $0x8] sm:$0xff]  }
   0x3   :  { %185 = vmatpush3.bf16.msra.mxu0 %v193_v0  ;;  %188 = vmatprep.mubr.msk.bf16.mxu0 %vm19_vm0, %v195_v3  ;;  %v171_v17 = vld [vmem:[%s257_s2] ss:$0 sm:$0xff] }
   0x4   :  { %186 = vmatprep.subr.bf16.mxu0 %v194_v2 }
   0x7   :  { %187 = vmatpush3.bf16.msra.mxu0 %v194_v2 }
   0x8   :  { %v26_v5 = vld [vmem:[#allocation2 + $0x10] sm:$0xff]  ;;  %v24_v7 = vld [vmem:[#allocation2] sm:$0xff] }
   0x9   :  { %v27_v10 = vld [vmem:[#allocation2 + $0x18] sm:$0xff]  ;;  %v25_v13 = vld [vmem:[#allocation2 + $0x8] sm:$0xff] }
   0xa   :  { %189 = vmatmul.mubr.msk.bf16.vlgmr.msra.gmra.mxu0 %vm19_vm0, %v196_v4 }
  0xca   :  { %v190_v6 = vpop.f32.mrf.mxu0 }
  0xcb   :  { %v116_v8 = vadd.f32 %v190_v6, %v26_v5 }
  0xcc   :  { %v99_v9 = vpop.f32.mrf.mxu0 }
  0xcd   :  { %120 = vst.msk [vmem:[#allocation2 + $0x10] sm:$0xff] %vm19_vm0, %v116_v8  ;;  %v114_v11 = vadd.f32 %v99_v9, %v24_v7 }
  0xce   :  { %v191_v12 = vpop.f32.mrf.mxu0 }
  0xcf   :  { %118 = vst.msk [vmem:[#allocation2] sm:$0xff] %vm19_vm0, %v114_v11  ;;  %v117_v14 = vadd.f32 %v191_v12, %v27_v10 }
  0xd0   :  { %v102_v15 = vpop.f32.mrf.mxu0 }
  0xd1   :  { %121 = vst.msk [vmem:[#allocation2 + $0x18] sm:$0xff] %vm19_vm0, %v117_v14  ;;  %v115_v16 = vadd.f32 %v102_v15, %v25_v13 }
  0xd3   :  { %119 = vst.msk [vmem:[#allocation2 + $0x8] sm:$0xff] %vm19_vm0, %v115_v16 }
  0xd4   :  { %v127_v18 = vld [vmem:[#allocation2 + $0x10] sm:$0xff] }
  0xd5   :  { %v138_v19 = vadd.f32 %v171_v17, %v127_v18 }
  0xd6   :  { %v125_v20 = vld [vmem:[#allocation2] sm:$0xff] }
  0xd7   :  { %v178_v21 = vpack.c.bf16 %v138_v19, %v138_v19  ;;  %v136_v22 = vadd.f32 %v171_v17, %v125_v20 }
  0xd8   :  { %v128_v23 = vld [vmem:[#allocation2 + $0x18] sm:$0xff] }
  0xd9   :  { %159 = vst.msk [vmem:[%s258_s3 + $0x8] sm:$0xf] %vm156_vm1, %v178_v21  ;;  %v176_v24 = vpack.c.bf16 %v136_v22, %v136_v22  ;;  %v139_v25 = vadd.f32 %v171_v17, %v128_v23 }
  0xda   :  { %v126_v26 = vld [vmem:[#allocation2 + $0x8] sm:$0xff] }
  0xdb   :  { %157 = vst.msk [vmem:[%s258_s3] sm:$0xf] %vm156_vm1, %v176_v24  ;;  %v179_v27 = vpack.c.bf16 %v139_v25, %v139_v25  ;;  %v137_v28 = vadd.f32 %v171_v17, %v126_v26 }
  0xdd   :  { %160 = vst.msk [vmem:[%s258_s3 + $0xc] sm:$0xf] %vm156_vm1, %v179_v27  ;;  %v177_v29 = vpack.c.bf16 %v137_v28, %v137_v28 }
  0xdf   :  { %158 = vst.msk [vmem:[%s258_s3 + $0x4] sm:$0xf] %vm156_vm1, %v177_v29 }

// kernel: _lambda_.51
= control target key start
LH: loop header
LB: loop body
LE: loop exit
PB: predicated region body
PF: predicated region fallthrough
CT: control target
= control target key end

     0   :  { %vm22_vm0 = vcmask 261120   ;;  %vm114_vm1 = vcmask 257024   ;;  %s206_s0 = inlined_call_operand.vmem [shape: bf16[32,32], index: 0, kind: input, shape index: {}]   ;;  %s207_s1 = inlined_call_operand.vmem [shape: f32[1,32], index: 1, kind: input, shape index: {}]   ;;  %s208_s2 = inlined_call_operand.vmem [shape: f32[1,32], index: 2, kind: input, shape index: {}]   ;;  %s209_s3 = inlined_call_operand.vmem [shape: bf16[32,32], index: 3, kind: output, shape index: {}]  }
   0x1   :  { %v134_v0 = vld [vmem:[%s206_s0] sm:$0xff]   ;;  %v141_v1 = vld [vmem:[%s206_s0 + $0x8] sm:$0xff]  }
   0x2   :  { %v135_v2 = vunpack.c.l.bf16 %v134_v0  ;;  %v139_v3 = vunpack.c.l.bf16 %v141_v1  ;;  %v136_v4 = vunpack.c.h.bf16 %v134_v0  ;;  %v140_v5 = vunpack.c.h.bf16 %v141_v1  ;;  %v123_v43 = vld [vmem:[%s207_s1] ss:$0 sm:$0xff] }
   0x3   :  { %v124_v45 = vld [vmem:[%s208_s2] ss:$0 sm:$0xff] }
   0x4   :  { %v23_v6 = vsel %vm22_vm0, %v135_v2, 0.0  ;;  %v29_v7 = vsel %vm22_vm0, %v139_v3, 0.0  ;;  %v26_v8 = vsel %vm22_vm0, %v136_v4, 0.0  ;;  %v32_v9 = vsel %vm22_vm0, %v140_v5, 0.0 }
   0x5   :  { %24 = vadd.xlane.f32.xlu0 %v23_v6  ;;  %30 = vadd.xlane.f32.xlu1 %v29_v7 }
   0x9   :  { %27 = vadd.xlane.f32.xlu0 %v26_v8  ;;  %33 = vadd.xlane.f32.xlu1 %v32_v9 }
  0x8e   :  { %v25_v10 = vpop.xlane.xlu0 %24  ;;  %v31_v11 = vpop.xlane.xlu1 %30 }
  0x8f   :  { %v36_v12 = vmul.f32 0.03125, %v25_v10  ;;  %v38_v13 = vmul.f32 0.03125, %v31_v11 }
  0x91   :  { %v40_v14 = vsub.f32 %v135_v2, %v36_v12  ;;  %v42_v15 = vsub.f32 %v139_v3, %v38_v13 }
  0x92   :  { %v28_v16 = vpop.xlane.xlu0 %27  ;;  %v34_v17 = vpop.xlane.xlu1 %33 }
  0x93   :  { %v37_v18 = vmul.f32 0.03125, %v28_v16  ;;  %v39_v19 = vmul.f32 0.03125, %v34_v17  ;;  %v44_v20 = vmul.f32 %v40_v14, %v40_v14  ;;  %v46_v21 = vmul.f32 %v42_v15, %v42_v15 }
  0x95   :  { %v41_v22 = vsub.f32 %v136_v4, %v37_v18  ;;  %v43_v23 = vsub.f32 %v140_v5, %v39_v19  ;;  %v48_v24 = vsel %vm22_vm0, %v44_v20, 0.0  ;;  %v54_v25 = vsel %vm22_vm0, %v46_v21, 0.0 }
  0x96   :  { %49 = vadd.xlane.f32.xlu0 %v48_v24 }
  0x97   :  { %v45_v26 = vmul.f32 %v41_v22, %v41_v22  ;;  %v47_v27 = vmul.f32 %v43_v23, %v43_v23 }
  0x99   :  { %v51_v28 = vsel %vm22_vm0, %v45_v26, 0.0  ;;  %v57_v29 = vsel %vm22_vm0, %v47_v27, 0.0 }
  0x9a   :  { %55 = vadd.xlane.f32.xlu0 %v54_v25  ;;  %52 = vadd.xlane.f32.xlu1 %v51_v28 }
  0x9e   :  { %58 = vadd.xlane.f32.xlu1 %v57_v29 }
 0x11f   :  { %v50_v30 = vpop.xlane.xlu0 %49 }
 0x120   :  { %v60_v31 = vmul.f32 0.03125, %v50_v30 }
 0x122   :  { %v64_v32 = vadd.f32 1e-05, %v60_v31 }
 0x123   :  { %v53_v33 = vpop.xlane.xlu1 %52  ;;  %v56_v34 = vpop.xlane.xlu0 %55 }
 0x124   :  { %142 = vrsqrt.f32 %v64_v32  ;;  %v61_v35 = vmul.f32 0.03125, %v53_v33  ;;  %v62_v36 = vmul.f32 0.03125, %v56_v34 }
 0x126   :  { %v65_v37 = vadd.f32 1e-05, %v61_v35  ;;  %v66_v38 = vadd.f32 1e-05, %v62_v36 }
 0x127   :  { %v59_v39 = vpop.xlane.xlu1 %58 }
 0x128   :  { %144 = vrsqrt.f32 %v65_v37  ;;  %v63_v40 = vmul.f32 0.03125, %v59_v39 }
 0x129   :  { %146 = vrsqrt.f32 %v66_v38 }
 0x12a   :  { %v67_v41 = vadd.f32 1e-05, %v63_v40 }
 0x12c   :  { %148 = vrsqrt.f32 %v67_v41 }
 0x131   :  { %v143_v42 = vpop.eup %142 }
 0x132   :  { %v72_v44 = vmul.f32 %v143_v42, %v40_v14 }
 0x134   :  { %v83_v46 = vmul.f32 %v123_v43, %v72_v44 }
 0x135   :  { %v145_v47 = vpop.eup %144 }
 0x136   :  { %v147_v48 = vpop.eup %146  ;;  %v94_v49 = vadd.f32 %v124_v45, %v83_v46  ;;  %v73_v50 = vmul.f32 %v145_v47, %v41_v22 }
 0x137   :  { %v74_v51 = vmul.f32 %v147_v48, %v42_v15 }
 0x138   :  { %v129_v52 = vpack.c.bf16 %v94_v49, %v94_v49  ;;  %v84_v53 = vmul.f32 %v123_v43, %v73_v50 }
 0x139   :  { %v149_v54 = vpop.eup %148  ;;  %v85_v55 = vmul.f32 %v123_v43, %v74_v51 }
 0x13a   :  { %115 = vst.msk [vmem:[%s209_s3] sm:$0xf] %vm114_vm1, %v129_v52  ;;  %v95_v56 = vadd.f32 %v124_v45, %v84_v53  ;;  %v75_v57 = vmul.f32 %v149_v54, %v43_v23 }
 0x13b   :  { %v96_v58 = vadd.f32 %v124_v45, %v85_v55 }
 0x13c   :  { %v130_v59 = vpack.c.bf16 %v95_v56, %v95_v56  ;;  %v86_v60 = vmul.f32 %v123_v43, %v75_v57 }
 0x13d   :  { %v131_v61 = vpack.c.bf16 %v96_v58, %v96_v58 }
 0x13e   :  { %116 = vst.msk [vmem:[%s209_s3 + $0x4] sm:$0xf] %vm114_vm1, %v130_v59  ;;  %v97_v62 = vadd.f32 %v124_v45, %v86_v60 }
 0x13f   :  { %117 = vst.msk [vmem:[%s209_s3 + $0x8] sm:$0xf] %vm114_vm1, %v131_v61 }
 0x140   :  { %v132_v63 = vpack.c.bf16 %v97_v62, %v97_v62 }
 0x142   :  { %118 = vst.msk [vmem:[%s209_s3 + $0xc] sm:$0xf] %vm114_vm1, %v132_v63 }

// kernel: _lambda_.54
= control target key start
LH: loop header
LB: loop body
LE: loop exit
PB: predicated region body
PF: predicated region fallthrough
CT: control target
= control target key end

     0   :  { %vm19_vm0 = vcmask 261120   ;;  %v201_v1 = vmov 0.0   ;;  %vm160_vm1 = vcmask 257024   ;;  %s259_s1 = inlined_call_operand.vmem [shape: bf16[32,32], index: 1, kind: input, shape index: {}]   ;;  %s260_s0 = inlined_call_operand.vmem [shape: bf16[32,32], index: 0, kind: input, shape index: {}]   ;;  %s261_s2 = inlined_call_operand.vmem [shape: f32[1,32], index: 2, kind: input, shape index: {}]   ;;  %s262_s3 = inlined_call_operand.vmem [shape: bf16[32,32], index: 3, kind: output, shape index: {}]  }
   0x1   :  { %v197_v0 = vld [vmem:[%s259_s1 + $0x8] sm:$0xff]   ;;  %22 = vst.msk [vmem:[#allocation2 + $0x10] sm:$0xff] %vm19_vm0, %v201_v1  ;;  %20 = vst.msk [vmem:[#allocation2] sm:$0xff] %vm19_vm0, %v201_v1  ;;  %v198_v2 = vld [vmem:[%s259_s1] sm:$0xff]  }
   0x2   :  { %21 = vst.msk [vmem:[#allocation2 + $0x8] sm:$0xff] %vm19_vm0, %v201_v1  ;;  %23 = vst.msk [vmem:[#allocation2 + $0x18] sm:$0xff] %vm19_vm0, %v201_v1  ;;  %188 = vmatprep.subr.bf16.mxu0 %v197_v0  ;;  %v199_v3 = vld [vmem:[%s260_s0] sm:$0xff]   ;;  %v200_v4 = vld [vmem:[%s260_s0 + $0x8] sm:$0xff]  }
   0x3   :  { %189 = vmatpush3.bf16.msra.mxu0 %v197_v0  ;;  %192 = vmatprep.mubr.msk.bf16.mxu0 %vm19_vm0, %v199_v3  ;;  %v175_v17 = vld [vmem:[%s261_s2] ss:$0 sm:$0xff] }
   0x4   :  { %190 = vmatprep.subr.bf16.mxu0 %v198_v2 }
   0x7   :  { %191 = vmatpush3.bf16.msra.mxu0 %v198_v2 }
   0x8   :  { %v26_v5 = vld [vmem:[#allocation2 + $0x10] sm:$0xff]  ;;  %v24_v7 = vld [vmem:[#allocation2] sm:$0xff] }
   0x9   :  { %v27_v10 = vld [vmem:[#allocation2 + $0x18] sm:$0xff]  ;;  %v25_v13 = vld [vmem:[#allocation2 + $0x8] sm:$0xff] }
   0xa   :  { %193 = vmatmul.mubr.msk.bf16.vlgmr.msra.gmra.mxu0 %vm19_vm0, %v200_v4 }
  0xca   :  { %v194_v6 = vpop.f32.mrf.mxu0 }
  0xcb   :  { %v116_v8 = vadd.f32 %v194_v6, %v26_v5 }
  0xcc   :  { %v99_v9 = vpop.f32.mrf.mxu0 }
  0xcd   :  { %120 = vst.msk [vmem:[#allocation2 + $0x10] sm:$0xff] %vm19_vm0, %v116_v8  ;;  %v114_v11 = vadd.f32 %v99_v9, %v24_v7 }
  0xce   :  { %v195_v12 = vpop.f32.mrf.mxu0 }
  0xcf   :  { %118 = vst.msk [vmem:[#allocation2] sm:$0xff] %vm19_vm0, %v114_v11  ;;  %v117_v14 = vadd.f32 %v195_v12, %v27_v10 }
  0xd0   :  { %v102_v15 = vpop.f32.mrf.mxu0 }
  0xd1   :  { %121 = vst.msk [vmem:[#allocation2 + $0x18] sm:$0xff] %vm19_vm0, %v117_v14  ;;  %v115_v16 = vadd.f32 %v102_v15, %v25_v13 }
  0xd3   :  { %119 = vst.msk [vmem:[#allocation2 + $0x8] sm:$0xff] %vm19_vm0, %v115_v16 }
  0xd4   :  { %v127_v18 = vld [vmem:[#allocation2 + $0x10] sm:$0xff] }
  0xd5   :  { %v138_v19 = vadd.f32 %v175_v17, %v127_v18 }
  0xd6   :  { %v125_v20 = vld [vmem:[#allocation2] sm:$0xff] }
  0xd7   :  { %v142_v21 = vmax.f32 %v138_v19, 0.0  ;;  %v136_v22 = vadd.f32 %v175_v17, %v125_v20 }
  0xd8   :  { %v128_v23 = vld [vmem:[#allocation2 + $0x18] sm:$0xff] }
  0xd9   :  { %v182_v24 = vpack.c.bf16 %v142_v21, %v142_v21  ;;  %v140_v25 = vmax.f32 %v136_v22, 0.0  ;;  %v139_v26 = vadd.f32 %v175_v17, %v128_v23 }
  0xda   :  { %v126_v27 = vld [vmem:[#allocation2 + $0x8] sm:$0xff] }
  0xdb   :  { %163 = vst.msk [vmem:[%s262_s3 + $0x8] sm:$0xf] %vm160_vm1, %v182_v24  ;;  %v180_v28 = vpack.c.bf16 %v140_v25, %v140_v25  ;;  %v143_v29 = vmax.f32 %v139_v26, 0.0  ;;  %v137_v30 = vadd.f32 %v175_v17, %v126_v27 }
  0xdd   :  { %161 = vst.msk [vmem:[%s262_s3] sm:$0xf] %vm160_vm1, %v180_v28  ;;  %v183_v31 = vpack.c.bf16 %v143_v29, %v143_v29  ;;  %v141_v32 = vmax.f32 %v137_v30, 0.0 }
  0xdf   :  { %164 = vst.msk [vmem:[%s262_s3 + $0xc] sm:$0xf] %vm160_vm1, %v183_v31  ;;  %v181_v33 = vpack.c.bf16 %v141_v32, %v141_v32 }
  0xe1   :  { %162 = vst.msk [vmem:[%s262_s3 + $0x4] sm:$0xf] %vm160_vm1, %v181_v33 }

// kernel: _lambda_.57
= control target key start
LH: loop header
LB: loop body
LE: loop exit
PB: predicated region body
PF: predicated region fallthrough
CT: control target
= control target key end

     0   :  { %vm19_vm0 = vcmask 523264   ;;  %v198_v1 = vmov 0.0   ;;  %vm58_vm1 = vcmask 261120   ;;  %vm157_vm2 = vcmask 519168   ;;  %s254_s1 = inlined_call_operand.vmem [shape: bf16[32,64], index: 1, kind: input, shape index: {}]   ;;  %s255_s0 = inlined_call_operand.vmem [shape: bf16[32,32], index: 0, kind: input, shape index: {}]   ;;  %s256_s2 = inlined_call_operand.vmem [shape: f32[1,64], index: 2, kind: input, shape index: {}]   ;;  %s257_s3 = inlined_call_operand.vmem [shape: bf16[32,64], index: 3, kind: output, shape index: {}]  }
   0x1   :  { %v194_v0 = vld [vmem:[%s254_s1 + $0x8] sm:$0xff]   ;;  %22 = vst.msk [vmem:[#allocation2 + $0x10] sm:$0xff] %vm19_vm0, %v198_v1  ;;  %20 = vst.msk [vmem:[#allocation2] sm:$0xff] %vm19_vm0, %v198_v1  ;;  %v195_v2 = vld [vmem:[%s254_s1] sm:$0xff]  }
   0x2   :  { %21 = vst.msk [vmem:[#allocation2 + $0x8] sm:$0xff] %vm19_vm0, %v198_v1  ;;  %23 = vst.msk [vmem:[#allocation2 + $0x18] sm:$0xff] %vm19_vm0, %v198_v1  ;;  %185 = vmatprep.subr.bf16.mxu0 %v194_v0  ;;  %v196_v3 = vld [vmem:[%s255_s0] sm:$0xff]   ;;  %v197_v4 = vld [vmem:[%s255_s0 + $0x8] sm:$0xff]  }
   0x3   :  { %186 = vmatpush3.bf16.msra.mxu0 %v194_v0  ;;  %189 = vmatprep.mubr.msk.bf16.mxu0 %vm58_vm1, %v196_v3  ;;  %v172_v17 = vld [vmem:[%s256_s2] ss:$0 sm:$0xff] }
   0x4   :  { %187 = vmatprep.subr.bf16.mxu0 %v195_v2 }
   0x7   :  { %188 = vmatpush3.bf16.msra.mxu0 %v195_v2 }
   0x8   :  { %v26_v5 = vld [vmem:[#allocation2 + $0x10] sm:$0xff]  ;;  %v24_v7 = vld [vmem:[#allocation2] sm:$0xff] }
   0x9   :  { %v27_v10 = vld [vmem:[#allocation2 + $0x18] sm:$0xff]  ;;  %v25_v13 = vld [vmem:[#allocation2 + $0x8] sm:$0xff] }
   0xa   :  { %190 = vmatmul.mubr.msk.bf16.vlgmr.msra.gmra.mxu0 %vm58_vm1, %v197_v4 }
  0xca   :  { %v191_v6 = vpop.f32.mrf.mxu0 }
  0xcb   :  { %v116_v8 = vadd.f32 %v191_v6, %v26_v5 }
  0xcc   :  { %v99_v9 = vpop.f32.mrf.mxu0 }
  0xcd   :  { %121 = vst.msk [vmem:[#allocation2 + $0x10] sm:$0xff] %vm19_vm0, %v116_v8  ;;  %v114_v11 = vadd.f32 %v99_v9, %v24_v7 }
  0xce   :  { %v192_v12 = vpop.f32.mrf.mxu0 }
  0xcf   :  { %119 = vst.msk [vmem:[#allocation2] sm:$0xff] %vm19_vm0, %v114_v11  ;;  %v117_v14 = vadd.f32 %v192_v12, %v27_v10 }
  0xd0   :  { %v102_v15 = vpop.f32.mrf.mxu0 }
  0xd1   :  { %122 = vst.msk [vmem:[#allocation2 + $0x18] sm:$0xff] %vm19_vm0, %v117_v14  ;;  %v115_v16 = vadd.f32 %v102_v15, %v25_v13 }
  0xd3   :  { %120 = vst.msk [vmem:[#allocation2 + $0x8] sm:$0xff] %vm19_vm0, %v115_v16 }
  0xd4   :  { %v128_v18 = vld [vmem:[#allocation2 + $0x10] sm:$0xff] }
  0xd5   :  { %v139_v19 = vadd.f32 %v172_v17, %v128_v18 }
  0xd6   :  { %v126_v20 = vld [vmem:[#allocation2] sm:$0xff] }
  0xd7   :  { %v179_v21 = vpack.c.bf16 %v139_v19, %v139_v19  ;;  %v137_v22 = vadd.f32 %v172_v17, %v126_v20 }
  0xd8   :  { %v129_v23 = vld [vmem:[#allocation2 + $0x18] sm:$0xff] }
  0xd9   :  { %160 = vst.msk [vmem:[%s257_s3 + $0x8] sm:$0xf] %vm157_vm2, %v179_v21  ;;  %v177_v24 = vpack.c.bf16 %v137_v22, %v137_v22  ;;  %v140_v25 = vadd.f32 %v172_v17, %v129_v23 }
  0xda   :  { %v127_v26 = vld [vmem:[#allocation2 + $0x8] sm:$0xff] }
  0xdb   :  { %158 = vst.msk [vmem:[%s257_s3] sm:$0xf] %vm157_vm2, %v177_v24  ;;  %v180_v27 = vpack.c.bf16 %v140_v25, %v140_v25  ;;  %v138_v28 = vadd.f32 %v172_v17, %v127_v26 }
  0xdd   :  { %161 = vst.msk [vmem:[%s257_s3 + $0xc] sm:$0xf] %vm157_vm2, %v180_v27  ;;  %v178_v29 = vpack.c.bf16 %v138_v28, %v138_v28 }
  0xdf   :  { %159 = vst.msk [vmem:[%s257_s3 + $0x4] sm:$0xf] %vm157_vm2, %v178_v29 }

// kernel: _lambda_.58
= control target key start
LH: loop header
LB: loop body
LE: loop exit
PB: predicated region body
PF: predicated region fallthrough
CT: control target
= control target key end

     0   :  { %10 = vsyncpa [#allocation3], 0  ;;  %s905_s0 = inlined_call_operand.vmem [shape: bf16[2,16,32], index: 0, kind: input, shape index: {}]   ;;  %s906_s1 = inlined_call_operand.vmem [shape: bf16[2,16,32], index: 1, kind: input, shape index: {}]   ;;  %s907_s2 = inlined_call_operand.vmem [shape: bf16[2,3,32], index: 2, kind: input, shape index: {}]   ;;  %s908_s3 = inlined_call_operand.vmem [shape: f32[2,3,32], index: 3, kind: output, shape index: {0}]   ;;  %s909_s4 = inlined_call_operand.hbm [shape: f32[2,16,3], index: 4, kind: output, shape index: {1}]  }
   0x1   :  { %12 = vsyncpa [#allocation3 + $0x1], 0  ;;  %s773_s15 = smov 0   ;;  %s775_s16 = smov 0  }
   0x2   :  { %s777_s17 = smov 0   ;;  %s779_s18 = smov 0  }
   0x3 LB: > { %s794_s19 = sadd.s32 4294967295, %s741_s18   ;;  %s583_s20 = sadd.s32 4294967294, %s741_s18   ;;  %s741_s18 = sphi %s779_s18, %s915_s18   ;;  %s737_s17 = sphi %s777_s17, %s914_s17   ;;  %s733_s16 = sphi %s775_s16, %s913_s16   ;;  %s729_s15 = sphi %s773_s15, %s912_s15  }
   0x4   : > { %s798_s21 = sadd.s32 1, %s741_s18   ;;  %s129_s22 = sadd.s32 1, %s737_s17 }
   0x5   : > { %s126_s23 = ssub.s32 %s741_s18, %s798_s21  ;;  %p139_p0 = scmp.ne.s32.totalorder %s737_s17, %s733_s16 }
   0x6   : > { %p127_p1 = scmp.eq.s32.totalorder %s126_s23, 0  ;;  %p140_p2 = scmp.eq.s32.totalorder %s794_s19, 1 }
   0x7   : > { %p145_p3 = scmp.ne.s32.totalorder %s733_s16, %s729_s15  ;;  %p146_p4 = scmp.eq.s32.totalorder %s583_s20, 1 }
   0x8   : > { %s809_s24 = scalar_select %p127_p1, %s737_s17, %s129_s22  }
   0x9   : > { %p811_p5 = por %p140_p2, %p139_p0  ;;  %p815_p6 = por %p146_p4, %p145_p3 }
   0xa   : > { %p586_p7 = scmp.ge.s32.totalorder %s741_s18, 1  ;;  %p187_p8 = scmp.lt.s32.totalorder %s741_s18, 3 }
   0xc   : > { %p188_p9 = pnand %p586_p7, %p187_p8 }
   0xd   : > { %p226_p10 = scmp.lt.s32.totalorder (!%p188_p9), %s794_s19, 1  ;;  %s223_s13 = sand.u32 (!%p188_p9), 1, %s733_s16  }
   0xe   : > { %191 = sbr.rel (%p188_p9) target bundleno = 894 (0x37e), region = 32  ;;  %s587_s14 = sshll.u32 (!%p188_p9), %s223_s13, 4 }
   0xf   : > { %s225_s20 = scalar_lea.vmem (!%p188_p9), [#allocation2], %s587_s14  ;;  %s604_s22 = sshll.u32 (!%p188_p9), %s794_s19, 8 }
  0x10   : > { %s473_s23 = sshll.u32 (!%p188_p9), %s225_s20, 4  ;;  %s855_s30 = scalar_lea.hbm (!%p188_p9), %s909_s4, %s604_s22  ;;  %s857_s23 = int_to_ptr.vmem [resolvable:$true] %s473_s23 }
  0x11   : > { %s861_s5 = scalar_lea.sflag (!%p188_p9), [#allocation3], %s223_s13 }
  0x13   : > { %v743_v0 = vmov 0.0   ;;  %vm744_vm0 = vmmov 0   ;;  %s823_s27 = scalar_select %p226_p10, %s794_s19, 1  ;;  %vm253_vm1 = vcmask 261120   ;;  %vm301_vm2 = vcmask 23552  }
  0x14   : > { %614 = vmatprep.subr.bf16.mxu0 %v743_v0  ;;  %616 = vmatprep.mubr.msk.bf16.mxu0 %vm744_vm0, %v743_v0  ;;  %vm374_vm3 = vcmask 130048   ;;  %s745_s19 = smov [#allocation2]  }
  0x15   : > { %620 = vmatprep.subr.mxu1 %v743_v0  ;;  %624 = vmatprep.mubr.msk.f32.mxu1 %vm744_vm0, %v743_v0  ;;  %s592_s28 = sshll.u32 %s823_s27, 1  ;;  %s602_s29 = sshll.u32 %s823_s27, 3 }
  0x16   : > { %s239_s6 = scalar_lea.vmem %s907_s2, %s592_s28  ;;  %s230_s9 = scalar_lea.vmem %s905_s0, %s602_s29 }
  0x17   : > { %v247_v1 = vld [vmem:[%s239_s6] sm:$0x3]  ;;  %s235_s12 = scalar_lea.vmem %s906_s1, %s602_s29  ;;  %s681_s6 = scalar_lea.vmem %s857_s23, 256 }
  0x18   : > { %v258_v2 = vsel %vm253_vm1, %v247_v1, 0  ;;  %v670_v3 = vld [vmem:[%s230_s9] sm:$0xff]   ;;  %p682_p11 = scmp.ne.s32.totalorder %s857_s23, %s681_s6  ;;  %s685_s7 = sshll.u32 %s745_s19, 4  ;;  %s686_s7 = int_to_ptr.vmem [resolvable:$false] %s685_s7 }
  0x19   : > { %615 = vmatpush3.bf16.xpose.msra.mxu0 %v258_v2  ;;  %v606_v20 = vld [vmem:[%s235_s12] sm:$0xff]   ;;  %s687_s8 = scalar_lea.vmem %s686_s7, 512  ;;  %p688_p0 = scmp.lt.s32.totalorder %s857_s23, %s686_s7 }
  0x1a   : > { %v607_v21 = vunpack.c.l.bf16 %v606_v20  ;;  %v608_v22 = vunpack.c.h.bf16 %v606_v20  ;;  %p683_p12 = pnand %p682_p11, %p811_p5  ;;  %p689_p1 = scmp.lt.s32.totalorder %s687_s8, %s681_s6 }
  0x1c   : > { %621 = vmatpush3.msra.mxu1 %v608_v22  ;;  %p684_p13 = pneg %p683_p12  ;;  %p690_p2 = por %p689_p1, %p688_p0 }
  0x1d   : > { %622 = vmatprep.subr.mxu1 %v743_v0 }
  0x1e   : > { %623 = vmatpush3.msra.mxu1 %v607_v21  ;;  %p691_p3 = pnand %p690_p2, %p684_p13 }
  0x20   : > { %617 = vmatmul.mubr.msk.bf16.vlgmr.msra.gmra.mxu0 %vm253_vm1, %v670_v3 }
  0xe0   : > { %v294_v4 = vpop.f32.mrf.mxu0 }
  0xe1   : > { %v302_v5 = vsel %vm301_vm2, %v294_v4, -inf }
  0xe2   : > { %303 = vmax.xlane.f32.xlu0 %v302_v5  ;;  %v618_v6 = vpop.f32.mrf.mxu0 }
  0xe4   : > { %v297_v7 = vpop.f32.mrf.mxu0 }
  0xe5   : > { %v305_v8 = vsel %vm301_vm2, %v297_v7, -inf }
  0xe6   : > { %306 = vmax.xlane.f32.xlu0 %v305_v8  ;;  %v619_v9 = vpop.f32.mrf.mxu0 }
 0x16b   : > { %v304_v10 = vpop.xlane.xlu0 %303 }
 0x16c   : > { %v308_v11 = vsub.f32 %v294_v4, %v304_v10 }
 0x16e   : > { %v310_v12 = vmul.f32 1.442695, %v308_v11 }
 0x16f   : > { %v307_v13 = vpop.xlane.xlu0 %306 }
 0x170   : > { %671 = vpow2.f32 %v310_v12  ;;  %v309_v14 = vsub.f32 %v297_v7, %v307_v13 }
 0x172   : > { %v312_v15 = vmul.f32 1.442695, %v309_v14 }
 0x174   : > { %673 = vpow2.f32 %v312_v15 }
 0x17d   : > { %v672_v16 = vpop.eup %671 }
 0x17e   : > { %v314_v17 = vsel %vm301_vm2, %v672_v16, 0.0 }
 0x17f   : > { %315 = vadd.xlane.f32.xlu1 %v314_v17 }
 0x181   : > { %v674_v18 = vpop.eup %673 }
 0x182   : > { %v317_v19 = vsel %vm301_vm2, %v674_v18, 0.0 }
 0x183   : > { %318 = vadd.xlane.f32.xlu1 %v317_v19 }
 0x208   : > { %v316_v23 = vpop.xlane.xlu1 %315 }
 0x209   : > { %675 = vrcp.f32 %v316_v23 }
 0x20c   : > { %v319_v24 = vpop.xlane.xlu1 %318 }
 0x20d   : > { %677 = vrcp.f32 %v319_v24 }
 0x216   : > { %v676_v25 = vpop.eup %675 }
 0x217   : > { %v321_v26 = vmul.f32 %v676_v25, %v672_v16 }
 0x219   : > { %450 = vst.msk [vmem:[%s225_s20] sm:$0xff] %vm301_vm2, %v321_v26  ;;  %v324_v29 = vadd.f32 1e-08, %v321_v26 }
 0x21a   : > { %v678_v27 = vpop.eup %677 }
 0x21b   : > { %v323_v28 = vmul.f32 %v678_v27, %v674_v18  ;;  %v326_v31 = vsel %vm301_vm2, %v324_v29, 0.0 }
 0x21d   : > { %v325_v30 = vadd.f32 1e-08, %v323_v28  ;;  %451 = vst.msk [vmem:[%s225_s20 + $0x8] sm:$0xff] %vm301_vm2, %v323_v28 }
 0x21f   : > { %v327_v32 = vsel %vm301_vm2, %v325_v30, 0.0 }
 0x220   : > { %v328_v33 = vadd.f32 %v327_v32, %v326_v31 }
 0x222   : > { %v329_v34 = vrot.slane %v328_v33, 4 }
 0x224   : > { %v330_v35 = vadd.f32 %v329_v34, %v328_v33 }
 0x226   : > { %v331_v36 = vrot.slane %v330_v35, 2 }
 0x228   : > { %v332_v37 = vadd.f32 %v331_v36, %v330_v35 }
 0x22a   : > { %v333_v38 = vrot.slane %v332_v37, 1 }
 0x22c   : > { %v334_v39 = vadd.f32 %v333_v38, %v332_v37 }
 0x22e   : > { %679 = vrcp.f32 %v334_v39 }
 0x23b   : > { %v680_v40 = vpop.eup %679 }
 0x23c   : > { %v336_v41 = vmul.f32 %v680_v40, %v324_v29  ;;  %v337_v42 = vmul.f32 %v680_v40, %v325_v30 }
 0x23e   : > { %342 = vxpose.xlu0.b32.start [1/2] (short) (narrow) %v336_v41, 8 }
 0x242   : > { %343 = vxpose.xlu0.b32.end [2/2] (short) (narrow) %v337_v42, 8 }
 0x2ba   : > { %v358_v43 = vpop.trf.xlu0 }
 0x2bb   : > { %625 = vmatmul.mubr.msk.f32.vlgmr.msra.gmra.mxu1 %vm374_vm3, %v358_v43 }
 0x2bc   : > { %694 = shalt.err (!%p691_p3)
}
 0x2bd   : > { %s695_s9 = scalar_lea.hbm %s855_s30, 256  ;;  %s699_s12 = scalar_lea.hbm %s909_s4, 512 }
 0x2be   : > { %p696_p4 = scmp.ne.s32.totalorder %s855_s30, %s695_s9  ;;  %p700_p9 = scmp.lt.s32.totalorder %s855_s30, %s909_s4 }
 0x2bf   : > { %p701_p10 = scmp.lt.s32.totalorder %s699_s12, %s695_s9 }
 0x2c0   : > { %p697_p7 = pnand %p696_p4, %p811_p5 }
 0x2c1   : > { %p702_p11 = por %p701_p10, %p700_p9 }
 0x2c2   : > { %p698_p8 = pneg %p697_p7 }
 0x2c4   : > { %p703_p12 = pnand %p702_p11, %p698_p8 }
 0x2c6   : > { %706 = shalt.err (!%p703_p12)
}
 0x2c7   : > { %s746_s20 = smov 128   ;;  %s747_s22 = smov 8   ;;  %vm448_vm4 = vcmask 256000  }
 0x2c8   : > { %627 = dma.vmem_to_hbm [thread:$0]  (%p811_p5), %s857_s23, 256, %s855_s30, %s861_s5, %s746_s20, %s746_s20, %s747_s22  }
 0x2c9   : > { %s593_s28 = sshll.u32 %s823_s27, 2 }
 0x2ca   : > { %s243_s19 = scalar_lea.vmem %s908_s3, %s593_s28 }
 0x37b   : > { %v444_v44 = vpop.f32.mrf.mxu1 }
 0x37c   : > { %449 = vst.msk [vmem:[%s243_s19] sm:$0x7] %vm448_vm4, %v444_v44 }
 0x37d   : > { %v626_v45 = vpop.f32.mrf.mxu1 }
 0x37e PF: > { %p633_p13 = scmp.ge.s32.totalorder %s741_s18, 2  ;;  %s495_s7 = sand.u32 1, %s729_s15  }
 0x37f   : > { %s496_s25 = scalar_lea.sflag [#allocation3], %s495_s7 }
 0x380   : > { %p630_p0 = pnand %p633_p13, %p815_p6 }
 0x382   : > { %p631_p1 = pneg %p630_p0 }
 0x384   : > { %724 = dma.done.wait (%p631_p1), %s496_s25, 256  }
 0x385   : > { %726 = vsyncadd (%p631_p1), %s496_s25, 4294967040  ;;  %p15_p5 = scmp.ge.s32.totalorder %s798_s21, 4   ;;  %s912_s15 = smov %s733_s16 }
 0x386   : > { %s913_s16 = smov %s737_s17  ;;  %s914_s17 = smov %s809_s24 }
 0x387   : > { %s915_s18 = smov %s798_s21  ;;  %17 = sbr.rel (!%p15_p5) target bundleno = 3 (0x3), region = 85 }
 0x38c   :  { %501 = vsyncpa [#allocation3], 1 }
 0x38d   :  { %503 = vsyncpa [#allocation3 + $0x1], 1 }

// kernel: _lambda_.59
= control target key start
LH: loop header
LB: loop body
LE: loop exit
PB: predicated region body
PF: predicated region fallthrough
CT: control target
= control target key end

     0   :  { %s663_s15 = smov 0   ;;  %s707_s0 = inlined_call_operand.vmem [shape: bf16[2,16,32], index: 0, kind: input, shape index: {}]   ;;  %s708_s1 = inlined_call_operand.vmem [shape: bf16[2,16,32], index: 1, kind: input, shape index: {}]   ;;  %s709_s2 = inlined_call_operand.vmem [shape: bf16[2,3,32], index: 2, kind: input, shape index: {}]   ;;  %s710_s3 = inlined_call_operand.vmem [shape: f32[2,3,32], index: 3, kind: output, shape index: {0}]   ;;  %s711_s4 = inlined_call_operand.vmem [shape: f32[2,16,3], index: 4, kind: output, shape index: {1}]  }
   0x1 LB: > { %s564_s16 = sadd.s32 4294967295, %s634_s15   ;;  %p568_p0 = scmp.ge.s32.totalorder %s634_s15, 1  ;;  %s634_s15 = sphi %s663_s15, %s15_s15  }
   0x2   : > { %p184_p1 = scmp.lt.s32.totalorder %s634_s15, 3 }
   0x4   : > { %p185_p2 = pnand %p568_p0, %p184_p1 }
   0x5   : > { %p223_p3 = scmp.lt.s32.totalorder (!%p185_p2), %s564_s16, 1 }
   0x6   : > { %188 = sbr.rel (%p185_p2) target bundleno = 885 (0x375), region = 32 }
   0xb   : > { %v636_v0 = vmov 0.0   ;;  %vm637_vm0 = vmmov 0   ;;  %s713_s16 = smov (!%p223_p3, %s564_s16), 1  ;;  %vm255_vm1 = vcmask 261120   ;;  %vm303_vm2 = vcmask 23552  }
   0xc   : > { %594 = vmatprep.subr.bf16.mxu0 %v636_v0  ;;  %596 = vmatprep.mubr.msk.bf16.mxu0 %vm637_vm0, %v636_v0  ;;  %s573_s17 = sshll.u32 %s713_s16, 1  ;;  %s582_s18 = sshll.u32 %s713_s16, 3  ;;  %vm376_vm3 = vcmask 130048   ;;  %vm450_vm4 = vcmask 256000  }
   0xd   : > { %600 = vmatprep.subr.mxu1 %v636_v0  ;;  %604 = vmatprep.mubr.msk.f32.mxu1 %vm637_vm0, %v636_v0  ;;  %s236_s21 = scalar_lea.vmem %s709_s2, %s573_s17  ;;  %s227_s24 = scalar_lea.vmem %s707_s0, %s582_s18 }
   0xe   : > { %v249_v1 = vld [vmem:[%s236_s21] sm:$0x3]  ;;  %s232_s27 = scalar_lea.vmem %s708_s1, %s582_s18  ;;  %s584_s28 = sshll.u32 %s713_s16, 4 }
   0xf   : > { %v260_v2 = vsel %vm255_vm1, %v249_v1, 0  ;;  %v617_v3 = vld [vmem:[%s227_s24] sm:$0xff]   ;;  %s245_s5 = scalar_lea.vmem %s711_s4, %s584_s28  ;;  %s574_s6 = sshll.u32 %s713_s16, 2 }
  0x10   : > { %595 = vmatpush3.bf16.xpose.msra.mxu0 %v260_v2  ;;  %v586_v20 = vld [vmem:[%s232_s27] sm:$0xff]   ;;  %s240_s9 = scalar_lea.vmem %s710_s3, %s574_s6 }
  0x11   : > { %v587_v21 = vunpack.c.l.bf16 %v586_v20  ;;  %v588_v22 = vunpack.c.h.bf16 %v586_v20 }
  0x13   : > { %601 = vmatpush3.msra.mxu1 %v588_v22 }
  0x14   : > { %602 = vmatprep.subr.mxu1 %v636_v0 }
  0x15   : > { %603 = vmatpush3.msra.mxu1 %v587_v21 }
  0x17   : > { %597 = vmatmul.mubr.msk.bf16.vlgmr.msra.gmra.mxu0 %vm255_vm1, %v617_v3 }
  0xd7   : > { %v296_v4 = vpop.f32.mrf.mxu0 }
  0xd8   : > { %v304_v5 = vsel %vm303_vm2, %v296_v4, -inf }
  0xd9   : > { %305 = vmax.xlane.f32.xlu0 %v304_v5  ;;  %v598_v6 = vpop.f32.mrf.mxu0 }
  0xdb   : > { %v299_v7 = vpop.f32.mrf.mxu0 }
  0xdc   : > { %v307_v8 = vsel %vm303_vm2, %v299_v7, -inf }
  0xdd   : > { %308 = vmax.xlane.f32.xlu0 %v307_v8  ;;  %v599_v9 = vpop.f32.mrf.mxu0 }
 0x162   : > { %v306_v10 = vpop.xlane.xlu0 %305 }
 0x163   : > { %v310_v11 = vsub.f32 %v296_v4, %v306_v10 }
 0x165   : > { %v312_v12 = vmul.f32 1.442695, %v310_v11 }
 0x166   : > { %v309_v13 = vpop.xlane.xlu0 %308 }
 0x167   : > { %618 = vpow2.f32 %v312_v12  ;;  %v311_v14 = vsub.f32 %v299_v7, %v309_v13 }
 0x169   : > { %v314_v15 = vmul.f32 1.442695, %v311_v14 }
 0x16b   : > { %620 = vpow2.f32 %v314_v15 }
 0x174   : > { %v619_v16 = vpop.eup %618 }
 0x175   : > { %v316_v17 = vsel %vm303_vm2, %v619_v16, 0.0 }
 0x176   : > { %317 = vadd.xlane.f32.xlu1 %v316_v17 }
 0x178   : > { %v621_v18 = vpop.eup %620 }
 0x179   : > { %v319_v19 = vsel %vm303_vm2, %v621_v18, 0.0 }
 0x17a   : > { %320 = vadd.xlane.f32.xlu1 %v319_v19 }
 0x1ff   : > { %v318_v23 = vpop.xlane.xlu1 %317 }
 0x200   : > { %622 = vrcp.f32 %v318_v23 }
 0x203   : > { %v321_v24 = vpop.xlane.xlu1 %320 }
 0x204   : > { %624 = vrcp.f32 %v321_v24 }
 0x20d   : > { %v623_v25 = vpop.eup %622 }
 0x20e   : > { %v323_v26 = vmul.f32 %v623_v25, %v619_v16 }
 0x210   : > { %452 = vst.msk [vmem:[%s245_s5] sm:$0xff] %vm303_vm2, %v323_v26  ;;  %v326_v29 = vadd.f32 1e-08, %v323_v26 }
 0x211   : > { %v625_v27 = vpop.eup %624 }
 0x212   : > { %v325_v28 = vmul.f32 %v625_v27, %v621_v18  ;;  %v328_v31 = vsel %vm303_vm2, %v326_v29, 0.0 }
 0x214   : > { %v327_v30 = vadd.f32 1e-08, %v325_v28  ;;  %453 = vst.msk [vmem:[%s245_s5 + $0x8] sm:$0xff] %vm303_vm2, %v325_v28 }
 0x216   : > { %v329_v32 = vsel %vm303_vm2, %v327_v30, 0.0 }
 0x217   : > { %v330_v33 = vadd.f32 %v329_v32, %v328_v31 }
 0x219   : > { %v331_v34 = vrot.slane %v330_v33, 4 }
 0x21b   : > { %v332_v35 = vadd.f32 %v331_v34, %v330_v33 }
 0x21d   : > { %v333_v36 = vrot.slane %v332_v35, 2 }
 0x21f   : > { %v334_v37 = vadd.f32 %v333_v36, %v332_v35 }
 0x221   : > { %v335_v38 = vrot.slane %v334_v37, 1 }
 0x223   : > { %v336_v39 = vadd.f32 %v335_v38, %v334_v37 }
 0x225   : > { %626 = vrcp.f32 %v336_v39 }
 0x232   : > { %v627_v40 = vpop.eup %626 }
 0x233   : > { %v338_v41 = vmul.f32 %v627_v40, %v326_v29  ;;  %v339_v42 = vmul.f32 %v627_v40, %v327_v30 }
 0x235   : > { %344 = vxpose.xlu0.b32.start [1/2] (short) (narrow) %v338_v41, 8 }
 0x239   : > { %345 = vxpose.xlu0.b32.end [2/2] (short) (narrow) %v339_v42, 8 }
 0x2b1   : > { %v360_v43 = vpop.trf.xlu0 }
 0x2b2   : > { %605 = vmatmul.mubr.msk.f32.vlgmr.msra.gmra.mxu1 %vm376_vm3, %v360_v43 }
 0x372   : > { %v446_v44 = vpop.f32.mrf.mxu1 }
 0x373   : > { %451 = vst.msk [vmem:[%s240_s9] sm:$0x7] %vm450_vm4, %v446_v44 }
 0x374   : > { %v606_v45 = vpop.f32.mrf.mxu1 }
 0x375 PF: > { %s15_s15 = sadd.s32 1, %s634_s15  }
 0x376   : > { %p12_p4 = scmp.ge.s32.totalorder %s15_s15, 4  }
 0x378   :  { %14 = sbr.rel (!%p12_p4) target bundleno = 1 (0x1), region = 80 }

// kernel: _lambda_.60
= control target key start
LH: loop header
LB: loop body
LE: loop exit
PB: predicated region body
PF: predicated region fallthrough
CT: control target
= control target key end

     0   :  { %s701_s12 = smov 0   ;;  %s703_s13 = smov 0   ;;  %s777_s0 = inlined_call_operand.vmem [shape: bf16[2,4,16,8], index: 0, kind: input, shape index: {}]   ;;  %s778_s1 = inlined_call_operand.vmem [shape: bf16[2,4,3,8], index: 1, kind: input, shape index: {}]   ;;  %s779_s2 = inlined_call_operand.vmem [shape: bf16[2,4,3,8], index: 2, kind: input, shape index: {}]   ;;  %s780_s3 = inlined_call_operand.vmem [shape: bf16[2,4,16,8], index: 3, kind: output, shape index: {}]  }
   0x1   :  { %s705_s14 = smov 0   ;;  %s707_s15 = smov 0  }
   0x2   :  { %s709_s16 = smov 0  }
   0x3 LB: > { %s22_s17 = sadd.s32 1, %s668_s14  ;;  %s25_s18 = sadd.s32 1, %s672_s15  ;;  %s676_s16 = sphi %s709_s16, %s13_s16   ;;  %s672_s15 = sphi %s707_s15, %s784_s15   ;;  %s668_s14 = sphi %s705_s14, %s783_s14   ;;  %s664_s13 = sphi %s703_s13, %s782_s13   ;;  %s660_s12 = sphi %s701_s12, %s781_s12  }
   0x4   : > { %p23_p0 = scmp.ge.s32.totalorder %s22_s17, 4  ;;  %p550_p1 = scmp.ge.s32.totalorder %s676_s16, 1 }
   0x5   : > { %p187_p2 = scmp.lt.s32.totalorder %s676_s16, 9 }
   0x6   : > { %s786_s17 = smov (%p23_p0, %s22_s17), 0  ;;  %s788_s18 = smov (!%p23_p0, %s25_s18), %s672_s15 }
   0x7   : > { %p188_p3 = pnand %p550_p1, %p187_p2  ;;  %p27_p4 = scmp.ge.s32.totalorder %s788_s18, 2 }
   0x8   : > { %p235_p5 = scmp.lt.s32.totalorder (!%p188_p3), %s664_s13, 1  ;;  %p237_p6 = scmp.lt.s32.totalorder (!%p188_p3), %s660_s12, 3 }
   0x9   : > { %s790_s18 = smov (%p27_p4, %s788_s18), 0  ;;  %191 = sbr.rel (%p188_p3) target bundleno = 741 (0x2e5), region = 32 }
   0xe   : > { %v678_v0 = vmov 0.0   ;;  %vm679_vm0 = vmmov 0   ;;  %s792_s13 = smov (!%p235_p5, %s664_s13), 1  ;;  %s794_s12 = smov (!%p237_p6, %s660_s12), 3  ;;  %vm279_vm1 = vcmask 64512   ;;  %vm329_vm2 = vcmask 23552  }
   0xf   : > { %574 = vmatprep.subr.bf16.mxu0 %v678_v0  ;;  %576 = vmatprep.mubr.msk.bf16.mxu0 %vm679_vm0, %v678_v0  ;;  %s552_s19 = sshll.u32 %s792_s13, 3  ;;  %s554_s20 = sshll.u32 %s792_s13, 2  ;;  %vm356_vm3 = vcmask 1040384   ;;  %vm357_vm4 = vcmask 1041408   ;;  %v680_v23 = vmov 65535   ;;  %vm412_vm5 = vcmask 60416  }
  0x10   : > { %580 = vmatprep.subr.bf16.mxu1 %v678_v0  ;;  %582 = vmatprep.mubr.msk.bf16.mxu1 %vm679_vm0, %v678_v0  ;;  %s551_s21 = sshll.u32 %s794_s12, 1  ;;  %s731_s22 = sadd.s32 %s554_s20, %s794_s12  ;;  %v358_v24 = vsel %vm356_vm3, 4294967295, %v680_v23 }
  0x11   : > { %s733_s23 = sadd.s32 %s552_s19, %s551_s21  ;;  %s555_s24 = sshll.u32 %s731_s22, 1  ;;  %v359_v25 = vsel %vm357_vm4, %v358_v24, 0 }
  0x12   : > { %s553_s25 = sshll.u32 %s733_s23, 2  ;;  %s251_s28 = scalar_lea.vmem %s778_s1, %s555_s24 }
  0x13   : > { %s243_s4 = scalar_lea.vmem %s777_s0, %s553_s25  ;;  %v272_v1 = vld [vmem:[%s251_s28] sm:$0x3]  ;;  %s259_s7 = scalar_lea.vmem %s779_s2, %s555_s24 }
  0x14   : > { %v284_v2 = vsel %vm279_vm1, %v272_v1, 0  ;;  %v629_v3 = vld [vmem:[%s243_s4] sm:$0xff]   ;;  %s268_s10 = scalar_lea.vmem %s780_s3, %s553_s25 }
  0x15   : > { %575 = vmatpush3.bf16.xpose.msra.mxu0 %v284_v2  ;;  %v273_v22 = vld [vmem:[%s259_s7] sm:$0x3] }
  0x16   : > { %v361_v26 = vand.u32 %v359_v25, %v273_v22 }
  0x18   : > { %581 = vmatpush3.bf16.msra.mxu1 %v361_v26 }
  0x1c   : > { %577 = vmatmul.mubr.msk.bf16.vlgmr.msra.gmra.mxu0 %vm279_vm1, %v629_v3 }
  0xdc   : > { %v320_v4 = vpop.f32.mrf.mxu0 }
  0xdd   : > { %v327_v5 = vmul.f32 0.35355338, %v320_v4 }
  0xde   : > { %v578_v6 = vpop.f32.mrf.mxu0 }
  0xdf   : > { %v330_v7 = vsel %vm329_vm2, %v327_v5, -inf }
  0xe0   : > { %331 = vmax.xlane.f32.xlu0 %v330_v7  ;;  %v323_v8 = vpop.f32.mrf.mxu0 }
  0xe1   : > { %v328_v9 = vmul.f32 0.35355338, %v323_v8 }
  0xe2   : > { %v579_v10 = vpop.f32.mrf.mxu0 }
  0xe3   : > { %v333_v11 = vsel %vm329_vm2, %v328_v9, -inf }
  0xe4   : > { %334 = vmax.xlane.f32.xlu0 %v333_v11 }
 0x169   : > { %v332_v12 = vpop.xlane.xlu0 %331 }
 0x16a   : > { %v336_v13 = vsub.f32 %v327_v5, %v332_v12 }
 0x16c   : > { %v338_v14 = vmul.f32 1.442695, %v336_v13 }
 0x16d   : > { %v335_v15 = vpop.xlane.xlu0 %334 }
 0x16e   : > { %630 = vpow2.f32 %v338_v14  ;;  %v337_v16 = vsub.f32 %v328_v9, %v335_v15 }
 0x170   : > { %v340_v17 = vmul.f32 1.442695, %v337_v16 }
 0x172   : > { %632 = vpow2.f32 %v340_v17 }
 0x17b   : > { %v631_v18 = vpop.eup %630 }
 0x17c   : > { %v342_v19 = vsel %vm329_vm2, %v631_v18, 0.0 }
 0x17d   : > { %343 = vadd.xlane.f32.xlu1 %v342_v19 }
 0x17f   : > { %v633_v20 = vpop.eup %632 }
 0x180   : > { %v345_v21 = vsel %vm329_vm2, %v633_v20, 0.0 }
 0x181   : > { %346 = vadd.xlane.f32.xlu1 %v345_v21 }
 0x206   : > { %v344_v27 = vpop.xlane.xlu1 %343 }
 0x207   : > { %634 = vrcp.f32 %v344_v27 }
 0x20a   : > { %v347_v28 = vpop.xlane.xlu1 %346 }
 0x20b   : > { %636 = vrcp.f32 %v347_v28 }
 0x214   : > { %v635_v29 = vpop.eup %634 }
 0x215   : > { %v349_v31 = vmul.f32 %v635_v29, %v631_v18 }
 0x218   : > { %v637_v30 = vpop.eup %636 }
 0x219   : > { %v351_v32 = vmul.f32 %v637_v30, %v633_v20 }
 0x21b   : > { %v352_v33 = vpack.c.bf16 %v351_v32, %v349_v31 }
 0x21d   : > { %583 = vmatmul.mubr.msk.bf16.vlgmr.msra.gmra.mxu1 %vm329_vm2, %v352_v33 }
 0x2dd   : > { %v397_v34 = vpop.f32.mrf.mxu1 }
 0x2de   : > { %v568_v35 = vpack.c.bf16 %v397_v34, %v397_v34 }
 0x2df   : > { %v584_v36 = vpop.f32.mrf.mxu1 }
 0x2e0   : > { %413 = vst.msk [vmem:[%s268_s10] sm:$0xf] %vm412_vm5, %v568_v35 }
 0x2e1   : > { %v400_v37 = vpop.f32.mrf.mxu1 }
 0x2e2   : > { %v569_v38 = vpack.c.bf16 %v400_v37, %v400_v37 }
 0x2e3   : > { %v585_v39 = vpop.f32.mrf.mxu1 }
 0x2e4   : > { %414 = vst.msk [vmem:[%s268_s10 + $0x4] sm:$0xf] %vm412_vm5, %v569_v38 }
 0x2e5 PF: > { %s13_s16 = sadd.s32 1, %s676_s16   ;;  %s781_s12 = smov %s668_s14 }
 0x2e6   : > { %p10_p7 = scmp.ge.s32.totalorder %s13_s16, 10   ;;  %s782_s13 = smov %s672_s15 }
 0x2e7   : > { %s783_s14 = smov %s786_s17  ;;  %s784_s15 = smov %s790_s18 }
 0x2e8   :  { %12 = sbr.rel (!%p10_p7) target bundleno = 3 (0x3), region = 68 }

// kernel: _lambda_.63
= control target key start
LH: loop header
LB: loop body
LE: loop exit
PB: predicated region body
PF: predicated region fallthrough
CT: control target
= control target key end

     0   :  { %vm57_vm0 = vcmask 261120   ;;  %s250_s1 = inlined_call_operand.vmem [shape: bf16[32,128], index: 1, kind: input, shape index: {}]   ;;  %s251_s0 = inlined_call_operand.vmem [shape: bf16[32,32], index: 0, kind: input, shape index: {}]   ;;  %s252_s2 = inlined_call_operand.vmem [shape: f32[1,128], index: 2, kind: input, shape index: {}]   ;;  %s253_s3 = inlined_call_operand.vmem [shape: bf16[32,128], index: 3, kind: output, shape index: {}]  }
   0x1   :  { %v205_v0 = vld [vmem:[%s250_s1 + $0x8] sm:$0xff]   ;;  %v206_v1 = vld [vmem:[%s250_s1] sm:$0xff]  }
   0x2   :  { %197 = vmatprep.subr.bf16.mxu0 %v205_v0  ;;  %v207_v2 = vld [vmem:[%s251_s0] sm:$0xff]   ;;  %v208_v3 = vld [vmem:[%s251_s0 + $0x8] sm:$0xff]  }
   0x3   :  { %198 = vmatpush3.bf16.msra.mxu0 %v205_v0  ;;  %201 = vmatprep.mubr.msk.bf16.mxu0 %vm57_vm0, %v207_v2  ;;  %v173_v5 = vld [vmem:[%s252_s2] ss:$0 sm:$0xff] }
   0x4   :  { %199 = vmatprep.subr.bf16.mxu0 %v206_v1 }
   0x7   :  { %200 = vmatpush3.bf16.msra.mxu0 %v206_v1 }
   0xa   :  { %202 = vmatmul.mubr.msk.bf16.vlgmr.msra.gmra.mxu0 %vm57_vm0, %v208_v3 }
  0xca   :  { %v203_v4 = vpop.f32.mrf.mxu0 }
  0xcb   :  { %v137_v7 = vadd.f32 %v203_v4, %v173_v5 }
  0xcc   :  { %v98_v6 = vpop.f32.mrf.mxu0 }
  0xcd   :  { %v135_v9 = vadd.f32 %v173_v5, %v98_v6  ;;  %v141_v12 = vmax.f32 %v137_v7, 0.0 }
  0xce   :  { %v204_v8 = vpop.f32.mrf.mxu0 }
  0xcf   :  { %v138_v10 = vadd.f32 %v204_v8, %v173_v5  ;;  %v139_v15 = vmax.f32 %v135_v9, 0.0 }
  0xd0   :  { %v101_v11 = vpop.f32.mrf.mxu0 }
  0xd1   :  { %v142_v13 = vmax.f32 %v138_v10, 0.0  ;;  %v136_v14 = vadd.f32 %v173_v5, %v101_v11 }
  0xd3   :  { %v190_v16 = vpack.c.bf16 %v142_v13, %v141_v12  ;;  %v140_v17 = vmax.f32 %v136_v14, 0.0 }
  0xd5   :  { %192 = vst [vmem:[%s253_s3 + $0x8] sm:$0xff] %v190_v16   ;;  %v185_v18 = vpack.c.bf16 %v140_v17, %v139_v15 }
  0xd7   :  { %186 = vst [vmem:[%s253_s3] sm:$0xff] %v185_v18  }

// kernel: _lambda_.64
= control target key start
LH: loop header
LB: loop body
LE: loop exit
PB: predicated region body
PF: predicated region fallthrough
CT: control target
= control target key end

     0   :  { %vm19_vm0 = vcmask 261120   ;;  %v269_v1 = vmov 0.0   ;;  %vm200_vm1 = vcmask 257024   ;;  %s343_s1 = inlined_call_operand.vmem [shape: bf16[128,32], index: 1, kind: input, shape index: {}]   ;;  %s344_s0 = inlined_call_operand.vmem [shape: bf16[32,128], index: 0, kind: input, shape index: {}]   ;;  %s345_s2 = inlined_call_operand.vmem [shape: f32[1,32], index: 2, kind: input, shape index: {}]   ;;  %s346_s3 = inlined_call_operand.vmem [shape: bf16[32,32], index: 3, kind: output, shape index: {}]  }
   0x1   :  { %v259_v0 = vld [vmem:[%s343_s1 + $0x38] sm:$0xff]   ;;  %22 = vst.msk [vmem:[#allocation2 + $0x10] sm:$0xff] %vm19_vm0, %v269_v1  ;;  %20 = vst.msk [vmem:[#allocation2] sm:$0xff] %vm19_vm0, %v269_v1  ;;  %v260_v2 = vld [vmem:[%s343_s1 + $0x30] sm:$0xff]  }
   0x2   :  { %21 = vst.msk [vmem:[#allocation2 + $0x8] sm:$0xff] %vm19_vm0, %v269_v1  ;;  %23 = vst.msk [vmem:[#allocation2 + $0x18] sm:$0xff] %vm19_vm0, %v269_v1  ;;  %238 = vmatprep.subr.bf16.mxu0 %v259_v0  ;;  %v261_v3 = vld [vmem:[%s343_s1 + $0x28] sm:$0xff]   ;;  %v262_v4 = vld [vmem:[%s343_s1 + $0x20] sm:$0xff]  }
   0x3   :  { %239 = vmatpush3.bf16.msra.mxu0 %v259_v0  ;;  %v267_v5 = vld [vmem:[%s344_s0] sm:$0xff]   ;;  %v263_v6 = vld [vmem:[%s343_s1 + $0x18] sm:$0xff]   ;;  %v264_v7 = vld [vmem:[%s343_s1 + $0x10] sm:$0xff]  }
   0x4   :  { %240 = vmatprep.subr.bf16.mxu0 %v260_v2  ;;  %254 = vmatprep.mubr.bf16.mxu0 %v267_v5  ;;  %v265_v8 = vld [vmem:[%s343_s1 + $0x8] sm:$0xff]   ;;  %v266_v9 = vld [vmem:[%s343_s1] sm:$0xff]  }
   0x5   :  { %v268_v10 = vld [vmem:[%s344_s0 + $0x8] sm:$0xff]   ;;  %v219_v23 = vld [vmem:[%s345_s2] ss:$0 sm:$0xff] }
   0x7   :  { %241 = vmatpush3.bf16.msra.mxu0 %v260_v2 }
   0x8   :  { %242 = vmatprep.subr.bf16.mxu0 %v261_v3  ;;  %v26_v11 = vld [vmem:[#allocation2 + $0x10] sm:$0xff]  ;;  %v24_v13 = vld [vmem:[#allocation2] sm:$0xff] }
   0x9   :  { %v27_v16 = vld [vmem:[#allocation2 + $0x18] sm:$0xff]  ;;  %v25_v19 = vld [vmem:[#allocation2 + $0x8] sm:$0xff] }
   0xb   :  { %243 = vmatpush3.bf16.msra.mxu0 %v261_v3 }
   0xc   :  { %244 = vmatprep.subr.bf16.mxu0 %v262_v4 }
   0xf   :  { %245 = vmatpush3.bf16.msra.mxu0 %v262_v4 }
  0x10   :  { %246 = vmatprep.subr.bf16.mxu0 %v263_v6 }
  0x13   :  { %247 = vmatpush3.bf16.msra.mxu0 %v263_v6 }
  0x14   :  { %248 = vmatprep.subr.bf16.mxu0 %v264_v7 }
  0x17   :  { %249 = vmatpush3.bf16.msra.mxu0 %v264_v7 }
  0x18   :  { %250 = vmatprep.subr.bf16.mxu0 %v265_v8 }
  0x1b   :  { %251 = vmatpush3.bf16.msra.mxu0 %v265_v8 }
  0x1c   :  { %252 = vmatprep.subr.bf16.mxu0 %v266_v9 }
  0x1f   :  { %253 = vmatpush3.bf16.msra.mxu0 %v266_v9 }
  0x22   :  { %255 = vmatmul.mubr.bf16.vlgmr.msra.gmra.mxu0 %v268_v10 }
  0xe2   :  { %v256_v12 = vpop.f32.mrf.mxu0 }
  0xe3   :  { %v159_v14 = vadd.f32 %v256_v12, %v26_v11 }
  0xe4   :  { %v142_v15 = vpop.f32.mrf.mxu0 }
  0xe5   :  { %164 = vst.msk [vmem:[#allocation2 + $0x10] sm:$0xff] %vm19_vm0, %v159_v14  ;;  %v157_v17 = vadd.f32 %v142_v15, %v24_v13 }
  0xe6   :  { %v257_v18 = vpop.f32.mrf.mxu0 }
  0xe7   :  { %162 = vst.msk [vmem:[#allocation2] sm:$0xff] %vm19_vm0, %v157_v17  ;;  %v160_v20 = vadd.f32 %v257_v18, %v27_v16 }
  0xe8   :  { %v145_v21 = vpop.f32.mrf.mxu0 }
  0xe9   :  { %165 = vst.msk [vmem:[#allocation2 + $0x18] sm:$0xff] %vm19_vm0, %v160_v20  ;;  %v158_v22 = vadd.f32 %v145_v21, %v25_v19 }
  0xeb   :  { %163 = vst.msk [vmem:[#allocation2 + $0x8] sm:$0xff] %vm19_vm0, %v158_v22 }
  0xec   :  { %v171_v24 = vld [vmem:[#allocation2 + $0x10] sm:$0xff] }
  0xed   :  { %v182_v25 = vadd.f32 %v219_v23, %v171_v24 }
  0xee   :  { %v169_v26 = vld [vmem:[#allocation2] sm:$0xff] }
  0xef   :  { %v226_v27 = vpack.c.bf16 %v182_v25, %v182_v25  ;;  %v180_v28 = vadd.f32 %v219_v23, %v169_v26 }
  0xf0   :  { %v172_v29 = vld [vmem:[#allocation2 + $0x18] sm:$0xff] }
  0xf1   :  { %203 = vst.msk [vmem:[%s346_s3 + $0x8] sm:$0xf] %vm200_vm1, %v226_v27  ;;  %v224_v30 = vpack.c.bf16 %v180_v28, %v180_v28  ;;  %v183_v31 = vadd.f32 %v219_v23, %v172_v29 }
  0xf2   :  { %v170_v32 = vld [vmem:[#allocation2 + $0x8] sm:$0xff] }
  0xf3   :  { %201 = vst.msk [vmem:[%s346_s3] sm:$0xf] %vm200_vm1, %v224_v30  ;;  %v227_v33 = vpack.c.bf16 %v183_v31, %v183_v31  ;;  %v181_v34 = vadd.f32 %v219_v23, %v170_v32 }
  0xf5   :  { %204 = vst.msk [vmem:[%s346_s3 + $0xc] sm:$0xf] %vm200_vm1, %v227_v33  ;;  %v225_v35 = vpack.c.bf16 %v181_v34, %v181_v34 }
  0xf7   :  { %202 = vst.msk [vmem:[%s346_s3 + $0x4] sm:$0xf] %vm200_vm1, %v225_v35 }

// kernel: _lambda_.77
= control target key start
LH: loop header
LB: loop body
LE: loop exit
PB: predicated region body
PF: predicated region fallthrough
CT: control target
= control target key end

     0   :  { %vm19_vm0 = vcmask 261120   ;;  %v172_v1 = vmov 0.0   ;;  %s234_s1 = inlined_call_operand.vmem [shape: bf16[32,32], index: 1, kind: input, shape index: {}]   ;;  %s235_s0 = inlined_call_operand.vmem [shape: bf16[32,32], index: 0, kind: input, shape index: {}]   ;;  %s236_s2 = inlined_call_operand.vmem [shape: f32[1,32], index: 2, kind: input, shape index: {}]   ;;  %s237_s3 = inlined_call_operand.vmem [shape: f32[32,32], index: 3, kind: output, shape index: {}]  }
   0x1   :  { %v168_v0 = vld [vmem:[%s234_s1 + $0x8] sm:$0xff]   ;;  %22 = vst.msk [vmem:[#allocation2 + $0x10] sm:$0xff] %vm19_vm0, %v172_v1  ;;  %20 = vst.msk [vmem:[#allocation2] sm:$0xff] %vm19_vm0, %v172_v1  ;;  %v169_v2 = vld [vmem:[%s234_s1] sm:$0xff]  }
   0x2   :  { %21 = vst.msk [vmem:[#allocation2 + $0x8] sm:$0xff] %vm19_vm0, %v172_v1  ;;  %23 = vst.msk [vmem:[#allocation2 + $0x18] sm:$0xff] %vm19_vm0, %v172_v1  ;;  %159 = vmatprep.subr.bf16.mxu0 %v168_v0  ;;  %v170_v3 = vld [vmem:[%s235_s0] sm:$0xff]   ;;  %v171_v4 = vld [vmem:[%s235_s0 + $0x8] sm:$0xff]  }
   0x3   :  { %160 = vmatpush3.bf16.msra.mxu0 %v168_v0  ;;  %163 = vmatprep.mubr.msk.bf16.mxu0 %vm19_vm0, %v170_v3  ;;  %v154_v17 = vld [vmem:[%s236_s2] ss:$0 sm:$0xff] }
   0x4   :  { %161 = vmatprep.subr.bf16.mxu0 %v169_v2 }
   0x7   :  { %162 = vmatpush3.bf16.msra.mxu0 %v169_v2 }
   0x8   :  { %v26_v5 = vld [vmem:[#allocation2 + $0x10] sm:$0xff]  ;;  %v24_v7 = vld [vmem:[#allocation2] sm:$0xff] }
   0x9   :  { %v27_v10 = vld [vmem:[#allocation2 + $0x18] sm:$0xff]  ;;  %v25_v13 = vld [vmem:[#allocation2 + $0x8] sm:$0xff] }
   0xa   :  { %164 = vmatmul.mubr.msk.bf16.vlgmr.msra.gmra.mxu0 %vm19_vm0, %v171_v4 }
  0xca   :  { %v165_v6 = vpop.f32.mrf.mxu0 }
  0xcb   :  { %v116_v8 = vadd.f32 %v165_v6, %v26_v5 }
  0xcc   :  { %v99_v9 = vpop.f32.mrf.mxu0 }
  0xcd   :  { %120 = vst.msk [vmem:[#allocation2 + $0x10] sm:$0xff] %vm19_vm0, %v116_v8  ;;  %v114_v11 = vadd.f32 %v99_v9, %v24_v7 }
  0xce   :  { %v166_v12 = vpop.f32.mrf.mxu0 }
  0xcf   :  { %118 = vst.msk [vmem:[#allocation2] sm:$0xff] %vm19_vm0, %v114_v11  ;;  %v117_v14 = vadd.f32 %v166_v12, %v27_v10 }
  0xd0   :  { %v102_v15 = vpop.f32.mrf.mxu0 }
  0xd1   :  { %121 = vst.msk [vmem:[#allocation2 + $0x18] sm:$0xff] %vm19_vm0, %v117_v14  ;;  %v115_v16 = vadd.f32 %v102_v15, %v25_v13 }
  0xd3   :  { %119 = vst.msk [vmem:[#allocation2 + $0x8] sm:$0xff] %vm19_vm0, %v115_v16 }
  0xd4   :  { %v127_v18 = vld [vmem:[#allocation2 + $0x10] sm:$0xff] }
  0xd5   :  { %v138_v19 = vadd.f32 %v154_v17, %v127_v18 }
  0xd6   :  { %v125_v20 = vld [vmem:[#allocation2] sm:$0xff] }
  0xd7   :  { %142 = vst.msk [vmem:[%s237_s3 + $0x10] sm:$0xff] %vm19_vm0, %v138_v19  ;;  %v136_v21 = vadd.f32 %v154_v17, %v125_v20 }
  0xd8   :  { %v128_v22 = vld [vmem:[#allocation2 + $0x18] sm:$0xff] }
  0xd9   :  { %140 = vst.msk [vmem:[%s237_s3] sm:$0xff] %vm19_vm0, %v136_v21  ;;  %v139_v23 = vadd.f32 %v154_v17, %v128_v22 }
  0xda   :  { %v126_v24 = vld [vmem:[#allocation2 + $0x8] sm:$0xff] }
  0xdb   :  { %143 = vst.msk [vmem:[%s237_s3 + $0x18] sm:$0xff] %vm19_vm0, %v139_v23  ;;  %v137_v25 = vadd.f32 %v154_v17, %v126_v24 }
  0xdd   :  { %141 = vst.msk [vmem:[%s237_s3 + $0x8] sm:$0xff] %vm19_vm0, %v137_v25 }

</bundles_post_ra>
